<compile_context>
chip_gen: v7x
topology: tpu7x:2x2x1
jax: 0.10.0
libtpu: 0.0.40
codegen_flags: <defaults>
</compile_context>

<pallas_src>
import functools

import jax
import jax.numpy as jnp
from jax.experimental import pallas as pl
from jax.experimental.pallas import tpu as pltpu

_LANE = 128
_VMEM_LIMIT = 48 << 20  # safe on v7x (64 MiB physical), ample on v5e/v6e


def _round_up(x: int, m: int) -> int:
    return (x + m - 1) // m * m


def _pad_axis(a, axis: int, mult: int):
    size = a.shape[axis]
    pad = _round_up(size, mult) - size
    if pad == 0:
        return a
    widths = [(0, 0)] * a.ndim
    widths[axis] = (0, pad)
    return jnp.pad(a, widths)


def _pick_tile(dim: int, target: int) -> int:
    """Largest tile <= target dividing dim (dim is a multiple of 128)."""
    if dim <= target:
        return dim
    t = target
    while t > _LANE:
        if dim % t == 0:
            return t
        t //= 2
    return _LANE


def _linear_kernel_acc(x_ref, w_ref, b_ref, o_ref, acc_ref, *, apply_relu: bool):
    """Tiled matmul + bias (+ ReLU); K is a reduction axis with f32 VMEM acc."""
    k = pl.program_id(2)

    @pl.when(k == 0)
    def _():
        acc_ref[...] = jnp.zeros_like(acc_ref)

    acc_ref[...] += jnp.dot(
        x_ref[...], w_ref[...], preferred_element_type=jnp.float32
    )

    @pl.when(k == pl.num_programs(2) - 1)
    def _():
        out = acc_ref[...] + b_ref[...]
        if apply_relu:
            out = jnp.maximum(out, 0.0)
        o_ref[...] = out.astype(o_ref.dtype)


def _linear_kernel_single_k(x_ref, w_ref, b_ref, o_ref, *, apply_relu: bool):
    """Single-K-step variant: no accumulator scratch, no phase gating."""
    out = (
        jnp.dot(x_ref[...], w_ref[...], preferred_element_type=jnp.float32)
        + b_ref[...]
    )
    if apply_relu:
        out = jnp.maximum(out, 0.0)
    o_ref[...] = out.astype(o_ref.dtype)


def pallas_linear(x, w, b, *, apply_relu: bool, tn_target: int = 2048,
                  tk_target: int = 2048):
    """y = relu?(x @ w + b) with f32 accumulation.

    x: (M, K), w: (K, N), b: (N,)  ->  (M, N) f32.
    N and K are zero-padded to multiples of 128 (lane-dense blocks); the
    padded output columns are sliced off before returning.
    """
    M, K = x.shape
    K2, N = w.shape
    assert K == K2 and b.shape == (N,)

    x_p = _pad_axis(x, 1, _LANE)
    w_p = _pad_axis(_pad_axis(w, 0, _LANE), 1, _LANE)
    b_p = _pad_axis(b.reshape(1, N).astype(jnp.float32), 1, _LANE)
    Kp = x_p.shape[1]
    Np = w_p.shape[1]

    # Batch tile: small batches stay whole; cap larger ones at 256 rows.
    tm = M if M <= 256 else (256 if M % 256 == 0 else M)
    tn = _pick_tile(Np, tn_target)
    tk = _pick_tile(Kp, tk_target)

    grid_m, grid_n, n_k = M // tm, Np // tn, Kp // tk

    cost = pl.CostEstimate(
        flops=2 * M * Np * Kp,
        transcendentals=0,
        bytes_accessed=(
            M * Kp * x_p.dtype.itemsize
            + Kp * Np * w_p.dtype.itemsize
            + Np * 4
            + M * Np * 4
        ),
    )

    if n_k == 1:
        kernel = functools.partial(_linear_kernel_single_k, apply_relu=apply_relu)
        out_p = pl.pallas_call(
            kernel,
            out_shape=jax.ShapeDtypeStruct((M, Np), jnp.float32),
            grid_spec=pltpu.PrefetchScalarGridSpec(
                num_scalar_prefetch=0,
                grid=(grid_m, grid_n),
                in_specs=[
                    pl.BlockSpec((tm, Kp), lambda i, j: (i, 0)),   # x
                    pl.BlockSpec((Kp, tn), lambda i, j: (0, j)),   # w
                    pl.BlockSpec((1, tn), lambda i, j: (0, j)),    # bias
                ],
                out_specs=pl.BlockSpec((tm, tn), lambda i, j: (i, j)),
            ),
            compiler_params=pltpu.CompilerParams(
                dimension_semantics=("parallel", "parallel"),
                vmem_limit_bytes=_VMEM_LIMIT,
            ),
            cost_estimate=cost,
        )(x_p, w_p, b_p)
    else:
        kernel = functools.partial(_linear_kernel_acc, apply_relu=apply_relu)
        out_p = pl.pallas_call(
            kernel,
            out_shape=jax.ShapeDtypeStruct((M, Np), jnp.float32),
            grid_spec=pltpu.PrefetchScalarGridSpec(
                num_scalar_prefetch=0,
                grid=(grid_m, grid_n, n_k),
                in_specs=[
                    pl.BlockSpec((tm, tk), lambda i, j, k: (i, k)),  # x
                    pl.BlockSpec((tk, tn), lambda i, j, k: (k, j)),  # w
                    pl.BlockSpec((1, tn), lambda i, j, k: (0, j)),   # bias
                ],
                out_specs=pl.BlockSpec((tm, tn), lambda i, j, k: (i, j)),
                scratch_shapes=[pltpu.VMEM((tm, tn), jnp.float32)],
            ),
            compiler_params=pltpu.CompilerParams(
                dimension_semantics=("parallel", "parallel", "arbitrary"),
                vmem_limit_bytes=_VMEM_LIMIT,
            ),
            cost_estimate=cost,
        )(x_p, w_p, b_p)

    if Np != N:
        out_p = out_p[:, :N]
    return out_p


def init_classifier_params(key, in_features: int, n_classes: int):
    """Deterministic synthetic parameters (PyTorch Linear shapes, pre-transposed)."""
    hidden = 4096
    ks = jax.random.split(key, 6)

    def linear_init(kw, kb, fan_in, fan_out):
        bound = 1.0 / jnp.sqrt(fan_in)
        w = jax.random.uniform(kw, (fan_in, fan_out), jnp.float32, -bound, bound)
        b = jax.random.uniform(kb, (fan_out,), jnp.float32, -bound, bound)
        return w, b

    w1, b1 = linear_init(ks[0], ks[1], in_features, hidden)
    w2, b2 = linear_init(ks[2], ks[3], hidden, hidden)
    w3, b3 = linear_init(ks[4], ks[5], hidden, n_classes)
    return (w1, b1), (w2, b2), (w3, b3)


def classifier_forward(x_nchw, params, *, compute_dtype=jnp.bfloat16):
    """Forward pass of the Classifier head (eval mode: dropout = identity).

    Weights/activations are streamed in `compute_dtype` (bf16 by default) to
    halve HBM traffic; accumulation, bias add and outputs stay f32.
    """
    (w1, b1), (w2, b2), (w3, b3) = params
    n = x_nchw.shape[0]
    x = x_nchw.reshape(n, -1).astype(compute_dtype)          # nn.Flatten()
    w1c = w1.astype(compute_dtype)
    w2c = w2.astype(compute_dtype)
    w3c = w3.astype(compute_dtype)

    h1 = pallas_linear(x, w1c, b1, apply_relu=True)           # Linear + ReLU
    # Dropout(p=0.5) -> identity in eval mode
    h2 = pallas_linear(h1.astype(compute_dtype), w2c, b2, apply_relu=True)
    # Dropout(p=0.5) -> identity in eval mode
    out = pallas_linear(h2.astype(compute_dtype), w3c, b3, apply_relu=False)
    return out


if __name__ == "__main__":
    key = jax.random.PRNGKey(0)
    k_x, k_p = jax.random.split(key)

    # Small NCHW input: batch=2, channels=4, spatial=16 -> in_features = 1024
    batch, channels, spatial = 2, 4, 16
    n_classes = 10
    in_features = channels * spatial * spatial

    x = jax.random.normal(k_x, (batch, channels, spatial, spatial), jnp.float32)
    params = init_classifier_params(k_p, in_features, n_classes)

    out = classifier_forward(x, params)
    out = jax.block_until_ready(out)

    # Pure-JAX reference with the same bf16-operand / f32-accumulate recipe.
    (w1, b1), (w2, b2), (w3, b3) = params
    cd = jnp.bfloat16

    def ref_linear(a, w, b, relu):
        y = jnp.dot(a.astype(cd), w.astype(cd),
                    preferred_element_type=jnp.float32) + b
        return jnp.maximum(y, 0.0) if relu else y

    xf = x.reshape(batch, -1)
    ref = ref_linear(xf, w1, b1, True)
    ref = ref_linear(ref, w2, b2, True)
    ref = ref_linear(ref, w3, b3, False)

    assert out.shape == (batch, n_classes)
    assert jnp.allclose(out, ref, atol=2e-2, rtol=2e-2)

    print("KERNEL_OK")
</pallas_src>

<mosaic_0001>
module attributes {stable_mosaic.version = 11 : i64} {
  func.func @_linear_kernel_single_k(%arg0: i32, %arg1: i32, %arg2: memref<2x1024xbf16, #tpu.memory_space<vmem>>, %arg3: memref<1024x2048xbf16, #tpu.memory_space<vmem>>, %arg4: memref<1x2048xf32, #tpu.memory_space<vmem>>, %arg5: memref<2x2048xf32, #tpu.memory_space<vmem>>) attributes {dimension_semantics = [#tpu.dimension_semantics<parallel>, #tpu.dimension_semantics<parallel>], iteration_bounds = array<i64: 1, 2>, scalar_prefetch = 0 : i64, scratch_operands = 0 : i64, tpu.core_type = #tpu.core_type<tc>, window_params = [{transform_indices = @transform_0, window_bounds = array<i64: 2, 1024>}, {transform_indices = @transform_1, window_bounds = array<i64: 1024, 2048>}, {transform_indices = @transform_2, window_bounds = array<i64: 1, 2048>}, {transform_indices = @transform_3, window_bounds = array<i64: 2, 2048>}]} {
    %c0 = arith.constant 0 : index
    %c0_0 = arith.constant 0 : index
    %0 = vector.load %arg2[%c0, %c0_0] : memref<2x1024xbf16, #tpu.memory_space<vmem>>, vector<2x1024xbf16>
    %c0_1 = arith.constant 0 : index
    %c0_2 = arith.constant 0 : index
    %1 = vector.load %arg3[%c0_1, %c0_2] : memref<1024x2048xbf16, #tpu.memory_space<vmem>>, vector<1024x2048xbf16>
    %cst = arith.constant dense<0.000000e+00> : vector<2x2048xf32>
    %2 = tpu.matmul %0, %1, %cst {dimension_numbers = #tpu.dot_dimension_numbers<[1], [0], [0], [1], [0, 0, 1, 1], [], []>} : vector<2x1024xbf16>, vector<1024x2048xbf16>, vector<2x2048xf32> -> vector<2x2048xf32>
    %c0_3 = arith.constant 0 : index
    %c0_4 = arith.constant 0 : index
    %3 = vector.load %arg4[%c0_3, %c0_4] : memref<1x2048xf32, #tpu.memory_space<vmem>>, vector<1x2048xf32>
    %4 = vector.broadcast %3 : vector<1x2048xf32> to vector<2x2048xf32>
    %5 = arith.addf %2, %4 : vector<2x2048xf32>
    %cst_5 = arith.constant 0.000000e+00 : f32
    %6 = vector.broadcast %cst_5 : f32 to vector<2x2048xf32>
    %7 = arith.maximumf %5, %6 : vector<2x2048xf32>
    %c0_6 = arith.constant 0 : index
    %c0_7 = arith.constant 0 : index
    %8 = vector.load %arg5[%c0_6, %c0_7] : memref<2x2048xf32, #tpu.memory_space<vmem>>, vector<2x2048xf32>
    tpu.vector_store %arg5[%c0_6, %c0_7], %7 {strides = array<i32>} : memref<2x2048xf32, #tpu.memory_space<vmem>>, vector<2x2048xf32>,
    return
  }
  func.func @transform_0(%arg0: i32, %arg1: i32) -> (i32, i32) {
    %c0_i32 = arith.constant 0 : i32
    %c0_i32_0 = arith.constant 0 : i32
    return %arg0, %c0_i32 : i32, i32
  }
  func.func @transform_1(%arg0: i32, %arg1: i32) -> (i32, i32) {
    %c0_i32 = arith.constant 0 : i32
    %c0_i32_0 = arith.constant 0 : i32
    return %c0_i32, %arg1 : i32, i32
  }
  func.func @transform_2(%arg0: i32, %arg1: i32) -> (i32, i32) {
    %c0_i32 = arith.constant 0 : i32
    %c0_i32_0 = arith.constant 0 : i32
    return %c0_i32, %arg1 : i32, i32
  }
  func.func @transform_3(%arg0: i32, %arg1: i32) -> (i32, i32) {
    %c0_i32 = arith.constant 0 : i32
    return %arg0, %arg1 : i32, i32
  }
}

</mosaic_0001>

<bundles_post_ra>
// kernel: tpu_custom_call.1
= control target key start
LH: loop header
LB: loop body
LE: loop exit
PB: predicated region body
PF: predicated region fallthrough
CT: control target
= control target key end

     0   :  { %s11010_s0 = inlined_call_operand.hbm [shape: bf16[2,1024], index: 0, kind: input, shape index: {}]   ;;  %s11011_s1 = inlined_call_operand.hbm [shape: bf16[1024,4096], index: 1, kind: input, shape index: {}]   ;;  %s11012_s2 = inlined_call_operand.hbm [shape: f32[1,4096], index: 2, kind: input, shape index: {}]   ;;  %s11013_s3 = inlined_call_operand.hbm [shape: f32[2,4096], index: 3, kind: output, shape index: {}]  }
   0x1   :  { %11019 = sst [smem:[#allocation12_spill]] %s11011_s1 }
   0x2   :  { %8 = vsyncpa [#allocation3], 0 }
   0x3   :  { %9 = vsyncpa [#allocation6], 0 }
   0x4   :  { %11 = vsyncpa [#allocation6 + $0x1], 0 }
   0x5   :  { %12 = vsyncpa [#allocation4], 0 }
   0x6   :  { %14 = vsyncpa [#allocation4 + $0x1], 0  ;;  %s9551_s12 = smov 0   ;;  %s9553_s13 = smov 0  }
   0x7   :  { %s9555_s14 = smov 0   ;;  %s9557_s15 = smov 0  }
   0x8   :  { %s9559_s16 = smov 0   ;;  %s9561_s17 = smov 0  }
   0x9 LB: > { %s29_s18 = sadd.s32 1, %s9516_s16  ;;  %s65_s19 = sadd.s32 1, %s9508_s14  ;;  %s9520_s17 = sphi %s9561_s17, %s20_s17   ;;  %s9516_s16 = sphi %s9559_s16, %s11039_s16   ;;  %s9512_s15 = sphi %s9557_s15, %s11038_s15   ;;  %s9508_s14 = sphi %s9555_s14, %s11037_s14   ;;  %s9504_s13 = sphi %s9553_s13, %s11036_s13   ;;  %s9500_s12 = sphi %s9551_s12, %s11035_s12  }
   0xa   : > { %p30_p0 = scmp.ge.s32.totalorder %s29_s18, 2  ;;  %p72_p1 = scmp.ne.s32.totalorder %s9508_s14, %s9504_s13 }
   0xb   : > { %p73_p2 = scmp.eq.s32.totalorder %s9520_s17, 0  ;;  %p9287_p5 = scmp.lt.s32.totalorder %s9520_s17, 2 }
   0xc   : > { %s11041_s18 = smov (%p30_p0, %s29_s18), 0  ;;  %s170_s21 = sand.u32 1, %s9520_s17  }
   0xd   : > { %p74_p4 = por %p73_p2, %p72_p1  ;;  %s62_s20 = ssub.s32 %s9516_s16, %s11041_s18 }
   0xe   : > { %p63_p6 = scmp.eq.s32.totalorder %s62_s20, 0  ;;  %s172_s22 = sand.u32 1, %s9508_s14  }
   0xf   : > { %s9146_s23 = sshll.u32 %s9516_s16, 10  ;;  %s8106_s25 = sshll.u32 %s172_s22, 13 }
  0x10   : > { %s9599_s24 = scalar_select %p63_p6, %s9508_s14, %s65_s19  }
  0x11   : > { %s11020_s1 = sld [smem:[#allocation12_spill]]  ;;  %p9608_p7 = pnand %p9287_p5, %p74_p4 }
  0x12   : > { %s174_s30 = scalar_lea.vmem [#allocation5], %s8106_s25  ;;  %s9614_s5 = scalar_lea.sflag [#allocation6], %s170_s21 }
  0x13   : > { %s181_s4 = sshll.u32 %s174_s30, 4  ;;  %p9348_p9 = pneg %p9608_p7  ;;  %s9612_s4 = int_to_ptr.vmem [resolvable:$true] %s181_s4 }
  0x17   : > { %s9606_s28 = scalar_lea.hbm %s11020_s1, %s9146_s23  ;;  %s9351_s9 = scalar_lea.hbm %s11020_s1, 262144 }
  0x18   : > { %s9346_s6 = scalar_lea.hbm %s9606_s28, 131072  ;;  %p9352_p12 = scmp.lt.u32.totalorder %s9606_s28, %s11020_s1 }
  0x19   : > { %p9347_p8 = scmp.ne.s32.totalorder %s9606_s28, %s9346_s6  ;;  %p9353_p13 = scmp.lt.u32.totalorder %s9351_s9, %s9346_s6 }
  0x1a   : > { %p9355_p2 = scmp.lt.u32.totalorder %s9346_s6, %s9606_s28 }
  0x1b   : > { %p9349_p10 = pnand %p9348_p9, %p9347_p8  ;;  %p9354_p0 = por %p9353_p13, %p9352_p12 }
  0x1d   : > { %p9350_p11 = pneg %p9349_p10  ;;  %p9356_p4 = por %p9355_p2, %p9354_p0 }
  0x1f   : > { %p9357_p5 = pnand %p9356_p4, %p9350_p11 }
  0x21   : > { %9360 = shalt.err (!%p9357_p5)
}
  0x22   : > { %s9361_s19 = scalar_lea.vmem %s9612_s4, 131072  ;;  %s9522_s20 = smov [#allocation5]  }
  0x23   : > { %p9362_p6 = scmp.ne.s32.totalorder %s9612_s4, %s9361_s19  ;;  %s9366_s21 = sshll.u32 %s9522_s20, 4  ;;  %s9367_s21 = int_to_ptr.vmem [resolvable:$false] %s9366_s21 }
  0x24   : > { %s9368_s23 = scalar_lea.vmem %s9367_s21, 262144  ;;  %p9369_p3 = scmp.lt.s32.totalorder %s9612_s4, %s9367_s21 }
  0x25   : > { %p9364_p8 = pnand %p9362_p6, %p9348_p9  ;;  %p9370_p12 = scmp.lt.s32.totalorder %s9368_s23, %s9361_s19 }
  0x27   : > { %p9365_p10 = pneg %p9364_p8  ;;  %p9371_p13 = por %p9370_p12, %p9369_p3 }
  0x29   : > { %p9372_p0 = pnand %p9371_p13, %p9365_p10 }
  0x2b   : > { %9375 = shalt.err (!%p9372_p0)
}
  0x2c   : > { %s9523_s25 = smov 2048   ;;  %s9524_s26 = smov 1024  }
  0x2d   : > { %s9525_s27 = smov 64   ;;  %s9643_s30 = sadd.s32 4294967295, %s9520_s17  }
  0x2e   : > { %9278 = dma.hbm_to_vmem [thread:$0]  (!%p9608_p7), %s9606_s28, 131072, %s9612_s4, %s9614_s5, %s9523_s25, %s9524_s26, %s9525_s27  }
  0x2f   : > { %s8102_s6 = sadd.s32 4294967294, %s9520_s17   ;;  %p78_p3 = scmp.ne.s32.totalorder %s9504_s13, %s9500_s12 }
  0x30   : > { %p11014_p11 = scmp.eq.s32.totalorder %s9643_s30, 0  ;;  %p130_p2 = scmp.eq.s32.totalorder %s9643_s30, 1 }
  0x31   : > { %p136_p4 = scmp.eq.s32.totalorder %s8102_s6, 1  ;;  %p8103_p6 = scmp.ge.s32.totalorder %s9520_s17, 1 }
  0x32   : > { %p9652_p5 = por %p11014_p11, %p78_p3  ;;  %p9660_p8 = por %p130_p2, %p72_p1 }
  0x33   : > { %p9664_p10 = por %p136_p4, %p78_p3  ;;  %p143_p12 = scmp.lt.s32.totalorder %s9520_s17, 3 }
  0x34   : > { %s11022_s7 = scalar_select %p9652_p5, 1, 0 }
  0x35   : > { %s11023_s28 = scalar_select %p9660_p8, 1, 0 }
  0x36   : > { %s11024_s4 = scalar_select %p9664_p10, 1, 0 }
  0x37   : > { %s8109_s8 = sshll.u32 %s172_s22, 4  ;;  %p9671_p13 = pnand %p8103_p6, %p143_p12 }
  0x38   : > { %s9526_s10 = smov [#allocation2]   ;;  %s9147_s19 = sshll.u32 %s9516_s16, 8 }
  0x39   : > { %s11025_s9 = scalar_select %p9671_p13, 1, 0 }
  0x3a   : > { %s159_s11 = sshll.u32 %s9526_s10, 4  ;;  %p9271_p1 = pneg %p9671_p13  ;;  %s9675_s11 = int_to_ptr.vmem [resolvable:$true] %s159_s11 }
  0x3b   : > { %s9683_s23 = scalar_lea.hbm %s11012_s2, %s9147_s19  ;;  %s195_s22 = scalar_lea.vmem [#allocation7], %s8109_s8 }
  0x3c   : > { %s203_s25 = sshll.u32 %s195_s22, 4  ;;  %p9687_p0 = pnand %p9271_p1, %p11014_p11  ;;  %s204_s25 = int_to_ptr.vmem [resolvable:$true] %s203_s25 }
  0x3d   : > { %s9376_s27 = scalar_lea.hbm %s9683_s23, 256  ;;  %s9381_s19 = scalar_lea.hbm %s11012_s2, 512 }
  0x3e   : > { %s11026_s26 = scalar_select %p9687_p0, 1, 0 }
  0x3f   : > { %p9377_p3 = scmp.ne.s32.totalorder %s9683_s23, %s9376_s27  ;;  %p9382_p6 = scmp.lt.u32.totalorder %s9683_s23, %s11012_s2 }
  0x40   : > { %p9383_p12 = scmp.lt.u32.totalorder %s9381_s19, %s9376_s27  ;;  %p9385_p11 = scmp.lt.u32.totalorder %s9376_s27, %s9683_s23 }
  0x41   : > { %p9379_p2 = pnand %p9377_p3, %p9348_p9 }
  0x42   : > { %p9384_p1 = por %p9383_p12, %p9382_p6 }
  0x43   : > { %p9380_p4 = pneg %p9379_p2 }
  0x44   : > { %p9386_p10 = por %p9385_p11, %p9384_p1 }
  0x46   : > { %p9387_p8 = pnand %p9386_p10, %p9380_p4 }
  0x48   : > { %9390 = shalt.err (!%p9387_p8)
}
  0x49   : > { %s9391_s8 = scalar_lea.vmem %s204_s25, 256  ;;  %s9527_s22 = smov [#allocation7]  }
  0x4a   : > { %p9392_p5 = scmp.ne.s32.totalorder %s204_s25, %s9391_s8  ;;  %s9396_s6 = sshll.u32 %s9527_s22, 4  ;;  %s9397_s6 = int_to_ptr.vmem [resolvable:$false] %s9396_s6 }
  0x4b   : > { %s9398_s10 = scalar_lea.vmem %s9397_s6, 512  ;;  %p9399_p13 = scmp.lt.s32.totalorder %s204_s25, %s9397_s6 }
  0x4c   : > { %p9394_p3 = pnand %p9392_p5, %p9348_p9  ;;  %p9400_p0 = scmp.lt.s32.totalorder %s9398_s10, %s9391_s8 }
  0x4e   : > { %p9395_p2 = pneg %p9394_p3  ;;  %p9401_p6 = por %p9400_p0, %p9399_p13 }
  0x50   : > { %p9402_p12 = pnand %p9401_p6, %p9395_p2 }
  0x52   : > { %9405 = shalt.err (!%p9402_p12)
}
  0x53   : > { %9281 = dma.hbm_to_vmem [thread:$0]  (!%p9608_p7), %s9683_s23, 256, %s204_s25, %s9614_s5  }
  0x54   : > { %s9406_s20 = scalar_lea.hbm %s11010_s0, 128  ;;  %p11027_p11 = scmp.ne.s32.totalorder %s11026_s26, 0 }
  0x55   : > { %p9407_p9 = scmp.ne.s32.totalorder %s11010_s0, %s9406_s20  ;;  %p9413_p13 = scmp.lt.u32.totalorder %s9406_s20, %s11010_s0 }
  0x56   : > { %p9408_p5 = pneg %p11027_p11 }
  0x58   : > { %p9409_p8 = pnand %p9408_p5, %p9407_p9 }
  0x5a   : > { %p9410_p10 = pneg %p9409_p8 }
  0x5c   : > { %p9415_p0 = pnand %p9413_p13, %p9410_p10 }
  0x5e   : > { %9418 = shalt.err (!%p9415_p0)
}
  0x5f   : > { %s9419_s29 = scalar_lea.vmem %s9675_s11, 128  ;;  %p9427_p3 = scmp.lt.s32.totalorder %s9675_s11, %s9675_s11 }
  0x60   : > { %p9420_p7 = scmp.ne.s32.totalorder %s9675_s11, %s9419_s29  ;;  %p9428_p2 = scmp.lt.s32.totalorder %s9419_s29, %s9419_s29 }
  0x62   : > { %p9422_p4 = pnand %p9420_p7, %p9408_p5  ;;  %p9429_p6 = por %p9428_p2, %p9427_p3 }
  0x64   : > { %p9423_p1 = pneg %p9422_p4 }
  0x66   : > { %p9430_p12 = pnand %p9429_p6, %p9423_p1 }
  0x68   : > { %9433 = shalt.err (!%p9430_p12)
}
  0x69   : > { %9274 = dma.hbm_to_vmem [thread:$0]  (!%p11027_p11), %s11010_s0, 128, %s9675_s11, [#allocation3]  }
  0x6a   : > { %p11028_p9 = scmp.ne.s32.totalorder %s11025_s9, 0 }
  0x6b   : > { %p11029_p8 = scmp.eq.s32.totalorder (!%p11028_p9), %s9643_s30, 0 }
  0x6c   : > { %212 = sbr.rel (%p11028_p9) target bundleno = 1386 (0x56a), region = 32 }
  0x73   : > { %9487 = dma.done.wait (%p11029_p8), [#allocation3], 128   ;;  %p11030_p5 = pmov %p11029_p8 }
  0x74   : > { %s218_s23 = sand.u32 1, %s9643_s30   ;;  %s9740_s25 = sand.u32 1, %s9504_s13  }
  0x75   : > { %9489 = vsyncadd (%p11030_p5), [#allocation3], 4294967168  ;;  %s8114_s26 = sshll.u32 %s9740_s25, 13  ;;  %s219_s6 = scalar_lea.sflag [#allocation6], %s218_s23 }
  0x76   : > { %s9743_s10 = scalar_lea.vmem [#allocation5], %s8114_s26  ;;  %p11031_p11 = scmp.ne.s32.totalorder %s11022_s7, 0 }
  0x78   : > { %9491 = dma.done.wait (%p11031_p11), %s219_s6, 131328  }
  0x79   : > { %9493 = vsyncadd (%p11031_p11), %s219_s6, 4294835968  ;;  %v263_v0 = vld [vmem:[%s9743_s10] sm:$0xff]  ;;  %v264_v2 = vld [vmem:[%s9743_s10 + $0x8] sm:$0xff]  ;;  %v1291_v32 = vlaneseq  ;;  %v9528_v33 = vmov 1966171168   ;;  %s8115_s30 = sshll.u32 %s9740_s25, 4 }
  0x7a   : > { %v271_v1 = vld [vmem:[%s9743_s10 + $0x40] sm:$0xff]  ;;  %v272_v4 = vld [vmem:[%s9743_s10 + $0x48] sm:$0xff]  ;;  %v1374_v34 = vunpack.c.l.s4 %v9528_v33  ;;  %v9782_v59 = vld [vmem:[#allocation2] sm:$0xff]  ;;  %s10298_s7 = scalar_lea.vmem [#allocation7], %s8115_s30  ;;  %s8116_s9 = sshll.u32 %s9740_s25, 5 }
  0x7b   : > { %v8118_v3 = vcombine.high %v263_v0, %v271_v1  ;;  %v8117_v5 = vcombine.low %v263_v0, %v271_v1  ;;  %v279_v6 = vld [vmem:[%s9743_s10 + $0x80] sm:$0xff]  ;;  %v8120_v8 = vcombine.high %v264_v2, %v272_v4  ;;  %v8119_v9 = vcombine.low %v264_v2, %v272_v4  ;;  %v280_v11 = vld [vmem:[%s9743_s10 + $0x88] sm:$0xff]  ;;  %s10336_s11 = scalar_lea.vmem [#allocation8], %s8116_s9  ;;  %s9148_s27 = sshll.u32 %s9512_s15, 9 }
  0x7c   : > { %v287_v7 = vld [vmem:[%s9743_s10 + $0xc0] sm:$0xff]  ;;  %v288_v12 = vld [vmem:[%s9743_s10 + $0xc8] sm:$0xff]  ;;  %v9771_v43 = vshrl.u32 %v1291_v32, 7  ;;  %v1375_v44 = vunpack.c.0.s8 %v1374_v34  ;;  %s7986_s19 = sshll.u32 %s10336_s11, 4  ;;  %s10960_s8 = scalar_lea.hbm %s11013_s3, %s9148_s27  ;;  %s10962_s19 = int_to_ptr.vmem [resolvable:$true] %s7986_s19 }
  0x7d   : > { %v8134_v10 = vcombine.high %v279_v6, %v287_v7  ;;  %v295_v13 = vld [vmem:[%s9743_s10 + $0x100] sm:$0xff]  ;;  %6549 = vmatprep.subr.bf16.mxu0 %v8118_v3  ;;  %v8136_v14 = vcombine.high %v280_v11, %v288_v12  ;;  %v296_v16 = vld [vmem:[%s9743_s10 + $0x108] sm:$0xff]  ;;  %6713 = vmatprep.subr.bf16.mxu1 %v8120_v8  ;;  %v8133_v18 = vcombine.low %v279_v6, %v287_v7  ;;  %s7970_s22 = scalar_lea.sflag [#allocation4], %s9740_s25  ;;  %s9434_s29 = scalar_lea.vmem %s10962_s19, 512 }
  0x7e   : > { %v303_v15 = vld [vmem:[%s9743_s10 + $0x140] sm:$0xff]  ;;  %v304_v17 = vld [vmem:[%s9743_s10 + $0x148] sm:$0xff]  ;;  %6550 = vmatpush1.bf16.msra.mxu0 %v8117_v5  ;;  %6714 = vmatpush1.bf16.msra.mxu1 %v8119_v9  ;;  %v8135_v19 = vcombine.low %v280_v11, %v288_v12  ;;  %v9778_v53 = vsub.s32 %v1375_v44, %v9771_v43  ;;  %p9435_p10 = scmp.ne.s32.totalorder %s10962_s19, %s9434_s29  ;;  %p11032_p13 = scmp.ne.s32.totalorder %s11023_s28, 0 }
  0x7f   : > { %6551 = vmatprep.subr.bf16.mxu0 %v8134_v10  ;;  %v8150_v20 = vcombine.high %v295_v13, %v303_v15  ;;  %6715 = vmatprep.subr.bf16.mxu1 %v8136_v14  ;;  %v8152_v21 = vcombine.high %v296_v16, %v304_v17  ;;  %v311_v22 = vld [vmem:[%s9743_s10 + $0x180] sm:$0xff]  ;;  %v312_v24 = vld [vmem:[%s9743_s10 + $0x188] sm:$0xff]  ;;  %v8149_v26 = vcombine.low %v295_v13, %v303_v15  ;;  %s9530_s15 = smov [#allocation8]  }
  0x80   : > { %v319_v23 = vld [vmem:[%s9743_s10 + $0x1c0] sm:$0xff]  ;;  %v320_v25 = vld [vmem:[%s9743_s10 + $0x1c8] sm:$0xff]  ;;  %v8151_v27 = vcombine.low %v296_v16, %v304_v17  ;;  %v9788_v63 = vrot.slane %v9782_v59, %v9778_v53  ;;  %p9436_p0 = pnand %p9435_p10, %p11032_p13  ;;  %s9438_s1 = sshll.u32 %s9530_s15, 4  ;;  %s9439_s1 = int_to_ptr.vmem [resolvable:$false] %s9438_s1 }
  0x81   : > { %v8166_v28 = vcombine.high %v311_v22, %v319_v23  ;;  %v8168_v29 = vcombine.high %v312_v24, %v320_v25  ;;  %v327_v30 = vld [vmem:[%s9743_s10 + $0x200] sm:$0xff]  ;;  %v328_v35 = vld [vmem:[%s9743_s10 + $0x208] sm:$0xff]  ;;  %v8165_v37 = vcombine.low %v311_v22, %v319_v23  ;;  %v8167_v38 = vcombine.low %v312_v24, %v320_v25  ;;  %s9440_s5 = scalar_lea.vmem %s9439_s1, 1024  ;;  %p9441_p4 = scmp.lt.s32.totalorder %s10962_s19, %s9439_s1 }
  0x82   : > { %6552 = vmatpush1.bf16.msra.mxu0 %v8133_v18  ;;  %6716 = vmatpush1.bf16.msra.mxu1 %v8135_v19  ;;  %v335_v31 = vld [vmem:[%s9743_s10 + $0x240] sm:$0xff]  ;;  %v336_v36 = vld [vmem:[%s9743_s10 + $0x248] sm:$0xff]  ;;  %v1387_v3 = vcombine.high %v9788_v63, %v9788_v63  ;;  %p9437_p7 = pneg %p9436_p0  ;;  %p9442_p1 = scmp.lt.s32.totalorder %s9440_s5, %s9434_s29 }
  0x83   : > { %6553 = vmatprep.subr.bf16.mxu0 %v8150_v20  ;;  %6717 = vmatprep.subr.bf16.mxu1 %v8152_v21  ;;  %v8182_v39 = vcombine.high %v327_v30, %v335_v31  ;;  %v8184_v40 = vcombine.high %v328_v35, %v336_v36  ;;  %v343_v41 = vld [vmem:[%s9743_s10 + $0x280] sm:$0xff]  ;;  %v344_v45 = vld [vmem:[%s9743_s10 + $0x288] sm:$0xff]  ;;  %v8181_v47 = vcombine.low %v327_v30, %v335_v31 }
  0x84   : > { %v351_v42 = vld [vmem:[%s9743_s10 + $0x2c0] sm:$0xff]  ;;  %v352_v46 = vld [vmem:[%s9743_s10 + $0x2c8] sm:$0xff]  ;;  %v8183_v48 = vcombine.low %v328_v35, %v336_v36  ;;  %v9797_v9 = vrot.slane %v1387_v3, %v9778_v53  ;;  %p9443_p3 = por %p9442_p1, %p9441_p4 }
  0x85   : > { %v8198_v49 = vcombine.high %v343_v41, %v351_v42  ;;  %v8200_v50 = vcombine.high %v344_v45, %v352_v46  ;;  %v359_v51 = vld [vmem:[%s9743_s10 + $0x300] sm:$0xff]  ;;  %v360_v54 = vld [vmem:[%s9743_s10 + $0x308] sm:$0xff]  ;;  %v8197_v56 = vcombine.low %v343_v41, %v351_v42  ;;  %v8199_v57 = vcombine.low %v344_v45, %v352_v46 }
  0x86   : > { %6554 = vmatpush1.bf16.msra.mxu0 %v8149_v26  ;;  %6718 = vmatpush1.bf16.msra.mxu1 %v8151_v27  ;;  %v367_v52 = vld [vmem:[%s9743_s10 + $0x340] sm:$0xff]  ;;  %v368_v55 = vld [vmem:[%s9743_s10 + $0x348] sm:$0xff]  ;;  %p9444_p2 = pnand %p9443_p3, %p9437_p7 }
  0x87   : > { %6555 = vmatprep.subr.bf16.mxu0 %v8166_v28  ;;  %6719 = vmatprep.subr.bf16.mxu1 %v8168_v29  ;;  %v8214_v58 = vcombine.high %v359_v51, %v367_v52  ;;  %v8216_v60 = vcombine.high %v360_v54, %v368_v55  ;;  %v375_v61 = vld [vmem:[%s9743_s10 + $0x380] sm:$0xff]  ;;  %v376_v0 = vld [vmem:[%s9743_s10 + $0x388] sm:$0xff]  ;;  %v8213_v2 = vcombine.low %v359_v51, %v367_v52 }
  0x88   : > { %v383_v62 = vld [vmem:[%s9743_s10 + $0x3c0] sm:$0xff]  ;;  %v384_v1 = vld [vmem:[%s9743_s10 + $0x3c8] sm:$0xff]  ;;  %v8215_v4 = vcombine.low %v360_v54, %v368_v55  ;;  %6581 = vmatprep.mubr.bf16.mxu0 %v9797_v9  ;;  %6745 = vmatprep.mubr.bf16.mxu1 %v9797_v9 }
  0x89   : > { %v8230_v5 = vcombine.high %v375_v61, %v383_v62  ;;  %v8232_v6 = vcombine.high %v376_v0, %v384_v1  ;;  %v391_v7 = vld [vmem:[%s9743_s10 + $0x400] sm:$0xff]  ;;  %v392_v10 = vld [vmem:[%s9743_s10 + $0x408] sm:$0xff]  ;;  %v8229_v12 = vcombine.low %v375_v61, %v383_v62  ;;  %v8231_v13 = vcombine.low %v376_v0, %v384_v1 }
  0x8a   : > { %6556 = vmatpush1.bf16.msra.mxu0 %v8165_v37  ;;  %6720 = vmatpush1.bf16.msra.mxu1 %v8167_v38  ;;  %v399_v8 = vld [vmem:[%s9743_s10 + $0x440] sm:$0xff]  ;;  %v400_v11 = vld [vmem:[%s9743_s10 + $0x448] sm:$0xff] }
  0x8b   : > { %6557 = vmatprep.subr.bf16.mxu0 %v8182_v39  ;;  %6721 = vmatprep.subr.bf16.mxu1 %v8184_v40  ;;  %v8246_v14 = vcombine.high %v391_v7, %v399_v8  ;;  %v8248_v15 = vcombine.high %v392_v10, %v400_v11  ;;  %v407_v16 = vld [vmem:[%s9743_s10 + $0x480] sm:$0xff]  ;;  %v408_v18 = vld [vmem:[%s9743_s10 + $0x488] sm:$0xff]  ;;  %v8245_v20 = vcombine.low %v391_v7, %v399_v8 }
  0x8c   : > { %v415_v17 = vld [vmem:[%s9743_s10 + $0x4c0] sm:$0xff]  ;;  %v416_v19 = vld [vmem:[%s9743_s10 + $0x4c8] sm:$0xff]  ;;  %v8247_v21 = vcombine.low %v392_v10, %v400_v11 }
  0x8d   : > { %v8262_v22 = vcombine.high %v407_v16, %v415_v17  ;;  %v8264_v23 = vcombine.high %v408_v18, %v416_v19  ;;  %v423_v24 = vld [vmem:[%s9743_s10 + $0x500] sm:$0xff]  ;;  %v424_v26 = vld [vmem:[%s9743_s10 + $0x508] sm:$0xff]  ;;  %v8261_v28 = vcombine.low %v407_v16, %v415_v17  ;;  %v8263_v29 = vcombine.low %v408_v18, %v416_v19 }
  0x8e   : > { %6558 = vmatpush1.bf16.msra.mxu0 %v8181_v47  ;;  %6722 = vmatpush1.bf16.msra.mxu1 %v8183_v48  ;;  %v431_v25 = vld [vmem:[%s9743_s10 + $0x540] sm:$0xff]  ;;  %v432_v27 = vld [vmem:[%s9743_s10 + $0x548] sm:$0xff]  ;;  %v1372_v18 = vcombine.high %v9782_v59, %v9782_v59 }
  0x8f   : > { %6559 = vmatprep.subr.bf16.mxu0 %v8198_v49  ;;  %6723 = vmatprep.subr.bf16.mxu1 %v8200_v50  ;;  %v8278_v30 = vcombine.high %v423_v24, %v431_v25  ;;  %v8280_v31 = vcombine.high %v424_v26, %v432_v27  ;;  %v439_v32 = vld [vmem:[%s9743_s10 + $0x580] sm:$0xff]  ;;  %v440_v34 = vld [vmem:[%s9743_s10 + $0x588] sm:$0xff]  ;;  %v8277_v36 = vcombine.low %v423_v24, %v431_v25 }
  0x90   : > { %v447_v33 = vld [vmem:[%s9743_s10 + $0x5c0] sm:$0xff]  ;;  %v448_v35 = vld [vmem:[%s9743_s10 + $0x5c8] sm:$0xff]  ;;  %v8279_v37 = vcombine.low %v424_v26, %v432_v27  ;;  %v1386_v24 = vrot.slane %v1372_v18, %v9778_v53  ;;  %v9842_v25 = vrot.slane %v9788_v63, %v9778_v53  ;;  %v9850_v63 = vcombine.high %v9797_v9, %v9797_v9 }
  0x91   : > { %v8294_v38 = vcombine.high %v439_v32, %v447_v33  ;;  %v8296_v39 = vcombine.high %v440_v34, %v448_v35  ;;  %v455_v40 = vld [vmem:[%s9743_s10 + $0x600] sm:$0xff]  ;;  %v456_v42 = vld [vmem:[%s9743_s10 + $0x608] sm:$0xff]  ;;  %v8293_v45 = vcombine.low %v439_v32, %v447_v33  ;;  %v8295_v46 = vcombine.low %v440_v34, %v448_v35 }
  0x92   : > { %6560 = vmatpush1.bf16.msra.mxu0 %v8197_v56  ;;  %6724 = vmatpush1.bf16.msra.mxu1 %v8199_v57  ;;  %v463_v41 = vld [vmem:[%s9743_s10 + $0x640] sm:$0xff]  ;;  %v464_v44 = vld [vmem:[%s9743_s10 + $0x648] sm:$0xff]  ;;  %v9856_v35 = vrot.slane %v1386_v24, %v9778_v53 }
  0x93   : > { %6561 = vmatprep.subr.bf16.mxu0 %v8214_v58  ;;  %6725 = vmatprep.subr.bf16.mxu1 %v8216_v60  ;;  %v8310_v47 = vcombine.high %v455_v40, %v463_v41  ;;  %v8312_v48 = vcombine.high %v456_v42, %v464_v44  ;;  %v471_v49 = vld [vmem:[%s9743_s10 + $0x680] sm:$0xff]  ;;  %v472_v51 = vld [vmem:[%s9743_s10 + $0x688] sm:$0xff]  ;;  %v8309_v54 = vcombine.low %v455_v40, %v463_v41 }
  0x94   : > { %v479_v50 = vld [vmem:[%s9743_s10 + $0x6c0] sm:$0xff]  ;;  %v480_v52 = vld [vmem:[%s9743_s10 + $0x6c8] sm:$0xff]  ;;  %v8311_v55 = vcombine.low %v456_v42, %v464_v44 }
  0x95   : > { %v8326_v56 = vcombine.high %v471_v49, %v479_v50  ;;  %v8328_v57 = vcombine.high %v472_v51, %v480_v52  ;;  %v487_v58 = vld [vmem:[%s9743_s10 + $0x700] sm:$0xff]  ;;  %v488_v61 = vld [vmem:[%s9743_s10 + $0x708] sm:$0xff]  ;;  %v8325_v0 = vcombine.low %v471_v49, %v479_v50  ;;  %v8327_v1 = vcombine.low %v472_v51, %v480_v52 }
  0x96   : > { %6562 = vmatpush1.bf16.msra.mxu0 %v8213_v2  ;;  %6726 = vmatpush1.bf16.msra.mxu1 %v8215_v4  ;;  %v495_v60 = vld [vmem:[%s9743_s10 + $0x740] sm:$0xff]  ;;  %v496_v62 = vld [vmem:[%s9743_s10 + $0x748] sm:$0xff] }
  0x97   : > { %6563 = vmatprep.subr.bf16.mxu0 %v8230_v5  ;;  %6727 = vmatprep.subr.bf16.mxu1 %v8232_v6  ;;  %v8342_v2 = vcombine.high %v487_v58, %v495_v60  ;;  %v8344_v3 = vcombine.high %v488_v61, %v496_v62  ;;  %v503_v4 = vld [vmem:[%s9743_s10 + $0x780] sm:$0xff]  ;;  %v504_v6 = vld [vmem:[%s9743_s10 + $0x788] sm:$0xff]  ;;  %v8341_v8 = vcombine.low %v487_v58, %v495_v60 }
  0x98   : > { %v511_v5 = vld [vmem:[%s9743_s10 + $0x7c0] sm:$0xff]  ;;  %v512_v7 = vld [vmem:[%s9743_s10 + $0x7c8] sm:$0xff]  ;;  %v8343_v10 = vcombine.low %v488_v61, %v496_v62 }
  0x99   : > { %v8358_v11 = vcombine.high %v503_v4, %v511_v5  ;;  %v528_v16 = vld [vmem:[%s9743_s10 + $0x848] sm:$0xff]  ;;  %v8357_v17 = vcombine.low %v503_v4, %v511_v5  ;;  %v8359_v19 = vcombine.low %v504_v6, %v512_v7  ;;  %v551_v32 = vld [vmem:[%s9743_s10 + $0x900] sm:$0xff] }
  0x9a   : > { %6564 = vmatpush1.bf16.msra.mxu0 %v8229_v12  ;;  %6728 = vmatpush1.bf16.msra.mxu1 %v8231_v13  ;;  %v8360_v12 = vcombine.high %v504_v6, %v512_v7  ;;  %v519_v13 = vld [vmem:[%s9743_s10 + $0x800] sm:$0xff]  ;;  %v536_v26 = vld [vmem:[%s9743_s10 + $0x888] sm:$0xff] }
  0x9b   : > { %6565 = vmatprep.subr.bf16.mxu0 %v8246_v14  ;;  %6729 = vmatprep.subr.bf16.mxu1 %v8248_v15  ;;  %v527_v14 = vld [vmem:[%s9743_s10 + $0x840] sm:$0xff]  ;;  %v520_v15 = vld [vmem:[%s9743_s10 + $0x808] sm:$0xff] }
  0x9c   : > { %v544_v27 = vld [vmem:[%s9743_s10 + $0x8c8] sm:$0xff]  ;;  %v8373_v59 = vcombine.low %v519_v13, %v527_v14  ;;  %v559_v33 = vld [vmem:[%s9743_s10 + $0x940] sm:$0xff] }
  0x9d   : > { %v8406_v40 = vcombine.high %v551_v32, %v559_v33  ;;  %v575_v42 = vld [vmem:[%s9743_s10 + $0x9c0] sm:$0xff]  ;;  %v568_v44 = vld [vmem:[%s9743_s10 + $0x988] sm:$0xff] }
  0x9e   : > { %6566 = vmatpush1.bf16.msra.mxu0 %v8245_v20  ;;  %6730 = vmatpush1.bf16.msra.mxu1 %v8247_v21  ;;  %v8374_v20 = vcombine.high %v519_v13, %v527_v14  ;;  %v8376_v21 = vcombine.high %v520_v15, %v528_v16  ;;  %v583_v50 = vld [vmem:[%s9743_s10 + $0xa00] sm:$0xff]  ;;  %v584_v52 = vld [vmem:[%s9743_s10 + $0xa08] sm:$0xff] }
  0x9f   : > { %6567 = vmatprep.subr.bf16.mxu0 %v8262_v22  ;;  %6731 = vmatprep.subr.bf16.mxu1 %v8264_v23  ;;  %v535_v22 = vld [vmem:[%s9743_s10 + $0x880] sm:$0xff]  ;;  %v600_v62 = vld [vmem:[%s9743_s10 + $0xa88] sm:$0xff] }
  0xa0   : > { %v543_v23 = vld [vmem:[%s9743_s10 + $0x8c0] sm:$0xff]  ;;  %v616_v7 = vld [vmem:[%s9743_s10 + $0xb08] sm:$0xff] }
  0xa1   : > { %v591_v51 = vld [vmem:[%s9743_s10 + $0xa40] sm:$0xff] }
  0xa2   : > { %6568 = vmatpush1.bf16.msra.mxu0 %v8261_v28  ;;  %6732 = vmatpush1.bf16.msra.mxu1 %v8263_v29  ;;  %v1388_v28 = vcombine.high %v1386_v24, %v1386_v24  ;;  %v8375_v29 = vcombine.low %v520_v15, %v528_v16  ;;  %v599_v60 = vld [vmem:[%s9743_s10 + $0xa80] sm:$0xff]  ;;  %v632_v16 = vld [vmem:[%s9743_s10 + $0xb88] sm:$0xff] }
  0xa3   : > { %6569 = vmatprep.subr.bf16.mxu0 %v8278_v30  ;;  %6733 = vmatprep.subr.bf16.mxu1 %v8280_v31  ;;  %v8390_v30 = vcombine.high %v535_v22, %v543_v23  ;;  %v8392_v31 = vcombine.high %v536_v26, %v544_v27  ;;  %v607_v61 = vld [vmem:[%s9743_s10 + $0xac0] sm:$0xff]  ;;  %v648_v24 = vld [vmem:[%s9743_s10 + $0xc08] sm:$0xff] }
  0xa4   : > { %v9853_v34 = vrot.slane %v1388_v28, %v9778_v53  ;;  %v567_v53 = vld [vmem:[%s9743_s10 + $0x980] sm:$0xff] }
  0xa5   : > { %v615_v5 = vld [vmem:[%s9743_s10 + $0xb00] sm:$0xff] }
  0xa6   : > { %6570 = vmatpush1.bf16.msra.mxu0 %v8277_v36  ;;  %6734 = vmatpush1.bf16.msra.mxu1 %v8279_v37  ;;  %v552_v36 = vld [vmem:[%s9743_s10 + $0x908] sm:$0xff]  ;;  %v623_v6 = vld [vmem:[%s9743_s10 + $0xb40] sm:$0xff] }
  0xa7   : > { %6571 = vmatprep.subr.bf16.mxu0 %v8294_v38  ;;  %6735 = vmatprep.subr.bf16.mxu1 %v8296_v39  ;;  %v560_v37 = vld [vmem:[%s9743_s10 + $0x948] sm:$0xff]  ;;  %v8389_v38 = vcombine.low %v535_v22, %v543_v23  ;;  %v8391_v39 = vcombine.low %v536_v26, %v544_v27  ;;  %v631_v14 = vld [vmem:[%s9743_s10 + $0xb80] sm:$0xff]  ;;  %v8469_v18 = vcombine.low %v615_v5, %v623_v6 }
  0xa8   : > { %v8408_v41 = vcombine.high %v552_v36, %v560_v37  ;;  %v639_v15 = vld [vmem:[%s9743_s10 + $0xbc0] sm:$0xff]  ;;  %v656_v26 = vld [vmem:[%s9743_s10 + $0xc48] sm:$0xff] }
  0xa9   : > { %v647_v22 = vld [vmem:[%s9743_s10 + $0xc00] sm:$0xff]  ;;  %v8485_v27 = vcombine.low %v631_v14, %v639_v15 }
  0xaa   : > { %6572 = vmatpush1.bf16.msra.mxu0 %v8293_v45  ;;  %6736 = vmatpush1.bf16.msra.mxu1 %v8295_v46  ;;  %v576_v45 = vld [vmem:[%s9743_s10 + $0x9c8] sm:$0xff]  ;;  %v8405_v46 = vcombine.low %v551_v32, %v559_v33  ;;  %v655_v23 = vld [vmem:[%s9743_s10 + $0xc40] sm:$0xff] }
  0xab   : > { %6573 = vmatprep.subr.bf16.mxu0 %v8310_v47  ;;  %6737 = vmatprep.subr.bf16.mxu1 %v8312_v48  ;;  %v8407_v47 = vcombine.low %v552_v36, %v560_v37  ;;  %v8422_v48 = vcombine.high %v567_v53, %v575_v42  ;;  %v8424_v49 = vcombine.high %v568_v44, %v576_v45  ;;  %v664_v32 = vld [vmem:[%s9743_s10 + $0xc88] sm:$0xff] }
  0xac   : > { %v8502_v28 = vcombine.high %v647_v22, %v655_v23  ;;  %v672_v33 = vld [vmem:[%s9743_s10 + $0xcc8] sm:$0xff]  ;;  %v8501_v36 = vcombine.low %v647_v22, %v655_v23  ;;  %v8503_v37 = vcombine.low %v648_v24, %v656_v26 }
  0xad   : > { %v760_v22 = vld [vmem:[%s9743_s10 + $0xf88] sm:$0xff] }
  0xae   : > { %6574 = vmatpush1.bf16.msra.mxu0 %v8309_v54  ;;  %6738 = vmatpush1.bf16.msra.mxu1 %v8311_v55  ;;  %v592_v54 = vld [vmem:[%s9743_s10 + $0xa48] sm:$0xff]  ;;  %v8421_v55 = vcombine.low %v567_v53, %v575_v42 }
  0xaf   : > { %6575 = vmatprep.subr.bf16.mxu0 %v8326_v56  ;;  %6739 = vmatprep.subr.bf16.mxu1 %v8328_v57  ;;  %v8423_v56 = vcombine.low %v568_v44, %v576_v45  ;;  %v8438_v57 = vcombine.high %v583_v50, %v591_v51  ;;  %v8440_v58 = vcombine.high %v584_v52, %v592_v54  ;;  %v680_v53 = vld [vmem:[%s9743_s10 + $0xd08] sm:$0xff] }
  0xb0   : > { %v688_v42 = vld [vmem:[%s9743_s10 + $0xd48] sm:$0xff]  ;;  %v8519_v45 = vcombine.low %v664_v32, %v672_v33 }
  0xb1   : > { %v768_v23 = vld [vmem:[%s9743_s10 + $0xfc8] sm:$0xff] }
  0xb2   : > { %6576 = vmatpush1.bf16.msra.mxu0 %v8325_v0  ;;  %6740 = vmatpush1.bf16.msra.mxu1 %v8327_v1  ;;  %v608_v0 = vld [vmem:[%s9743_s10 + $0xac8] sm:$0xff]  ;;  %v8437_v1 = vcombine.low %v583_v50, %v591_v51 }
  0xb3   : > { %6577 = vmatprep.subr.bf16.mxu0 %v8342_v2  ;;  %6741 = vmatprep.subr.bf16.mxu1 %v8344_v3  ;;  %v8439_v2 = vcombine.low %v584_v52, %v592_v54  ;;  %v8454_v3 = vcombine.high %v599_v60, %v607_v61  ;;  %v8456_v4 = vcombine.high %v600_v62, %v608_v0  ;;  %v696_v50 = vld [vmem:[%s9743_s10 + $0xd88] sm:$0xff] }
  0xb4   : > { %v704_v51 = vld [vmem:[%s9743_s10 + $0xdc8] sm:$0xff]  ;;  %v8535_v54 = vcombine.low %v680_v53, %v688_v42 }
  0xb6   : > { %6578 = vmatpush1.bf16.msra.mxu0 %v8341_v8  ;;  %6742 = vmatpush1.bf16.msra.mxu1 %v8343_v10  ;;  %v624_v8 = vld [vmem:[%s9743_s10 + $0xb48] sm:$0xff]  ;;  %v8453_v10 = vcombine.low %v599_v60, %v607_v61 }
  0xb7   : > { %6579 = vmatprep.subr.bf16.mxu0 %v8358_v11  ;;  %6743 = vmatprep.subr.bf16.mxu1 %v8360_v12  ;;  %v8455_v11 = vcombine.low %v600_v62, %v608_v0  ;;  %v8470_v12 = vcombine.high %v615_v5, %v623_v6  ;;  %v8472_v13 = vcombine.high %v616_v7, %v624_v8  ;;  %v712_v60 = vld [vmem:[%s9743_s10 + $0xe08] sm:$0xff] }
  0xb8   : > { %v720_v61 = vld [vmem:[%s9743_s10 + $0xe48] sm:$0xff]  ;;  %v8551_v0 = vcombine.low %v696_v50, %v704_v51 }
  0xb9   : > { %v728_v5 = vld [vmem:[%s9743_s10 + $0xe88] sm:$0xff] }
  0xba   : > { %6580 = vmatpush1.bf16.msra.mxu0 %v8357_v17  ;;  %6744 = vmatpush1.bf16.msra.mxu1 %v8359_v19  ;;  %v640_v17 = vld [vmem:[%s9743_s10 + $0xbc8] sm:$0xff]  ;;  %v8471_v19 = vcombine.low %v616_v7, %v624_v8  ;;  %v8567_v8 = vcombine.low %v712_v60, %v720_v61 }
  0xbb   : > { %6590 = vmatprep.subr.bf16.mxu0 %v8374_v20  ;;  %6754 = vmatprep.subr.bf16.mxu1 %v8376_v21  ;;  %v8486_v20 = vcombine.high %v631_v14, %v639_v15  ;;  %v8488_v21 = vcombine.high %v632_v16, %v640_v17  ;;  %v736_v6 = vld [vmem:[%s9743_s10 + $0xec8] sm:$0xff] }
  0xbc   : > { %v744_v14 = vld [vmem:[%s9743_s10 + $0xf08] sm:$0xff] }
  0xbd   : > { %6582 = vmatmul.mubr.bf16.vlgmr.msra.gmra.mrb[0].mxu0 %v9842_v25  ;;  %6746 = vmatmul.mubr.bf16.vlgmr.msra.gmra.mrb[0].mxu1 %v9842_v25  ;;  %v752_v15 = vld [vmem:[%s9743_s10 + $0xf48] sm:$0xff] }
  0xbe   : > { %6591 = vmatpush1.bf16.msra.mxu0 %v8373_v59  ;;  %6755 = vmatpush1.bf16.msra.mxu1 %v8375_v29  ;;  %v8487_v59 = vcombine.low %v632_v16, %v640_v17  ;;  %v8504_v29 = vcombine.high %v648_v24, %v656_v26  ;;  %v8583_v17 = vcombine.low %v728_v5, %v736_v6 }
  0xbf   : > { %6592 = vmatprep.subr.bf16.mxu0 %v8390_v30  ;;  %6756 = vmatprep.subr.bf16.mxu1 %v8392_v31  ;;  %v663_v30 = vld [vmem:[%s9743_s10 + $0xc80] sm:$0xff]  ;;  %v8599_v26 = vcombine.low %v744_v14, %v752_v15 }
  0xc0   : > { %6622 = vmatprep.mubr.bf16.mxu0 %v9850_v63  ;;  %6786 = vmatprep.mubr.bf16.mxu1 %v9850_v63  ;;  %v671_v31 = vld [vmem:[%s9743_s10 + $0xcc0] sm:$0xff] }
  0xc1   : > { %v8517_v44 = vcombine.low %v663_v30, %v671_v31 }
  0xc2   : > { %6593 = vmatpush1.bf16.msra.mxu0 %v8389_v38  ;;  %6757 = vmatpush1.bf16.msra.mxu1 %v8391_v39  ;;  %v8518_v38 = vcombine.high %v663_v30, %v671_v31  ;;  %v8520_v39 = vcombine.high %v664_v32, %v672_v33  ;;  %v776_v30 = vld [vmem:[%s9743_s10 + $0x1008] sm:$0xff]  ;;  %v8615_v33 = vcombine.low %v760_v22, %v768_v23 }
  0xc3   : > { %6594 = vmatprep.subr.bf16.mxu0 %v8406_v40  ;;  %6758 = vmatprep.subr.bf16.mxu1 %v8408_v41  ;;  %v679_v40 = vld [vmem:[%s9743_s10 + $0xd00] sm:$0xff]  ;;  %v784_v31 = vld [vmem:[%s9743_s10 + $0x1048] sm:$0xff] }
  0xc4   : > { %v687_v41 = vld [vmem:[%s9743_s10 + $0xd40] sm:$0xff] }
  0xc5   : > { %v8533_v52 = vcombine.low %v679_v40, %v687_v41 }
  0xc6   : > { %6595 = vmatpush1.bf16.msra.mxu0 %v8405_v46  ;;  %6759 = vmatpush1.bf16.msra.mxu1 %v8407_v47  ;;  %v8534_v46 = vcombine.high %v679_v40, %v687_v41  ;;  %v8536_v47 = vcombine.high %v680_v53, %v688_v42  ;;  %v9924_v40 = vcombine.high %v9842_v25, %v9842_v25  ;;  %v792_v41 = vld [vmem:[%s9743_s10 + $0x1088] sm:$0xff] }
  0xc7   : > { %6596 = vmatprep.subr.bf16.mxu0 %v8422_v48  ;;  %6760 = vmatprep.subr.bf16.mxu1 %v8424_v49  ;;  %v695_v48 = vld [vmem:[%s9743_s10 + $0xd80] sm:$0xff]  ;;  %v800_v53 = vld [vmem:[%s9743_s10 + $0x10c8] sm:$0xff] }
  0xc8   : > { %v703_v49 = vld [vmem:[%s9743_s10 + $0xdc0] sm:$0xff] }
  0xc9   : > { %v8549_v62 = vcombine.low %v695_v48, %v703_v49 }
  0xca   : > { %6597 = vmatpush1.bf16.msra.mxu0 %v8421_v55  ;;  %6761 = vmatpush1.bf16.msra.mxu1 %v8423_v56  ;;  %v8550_v55 = vcombine.high %v695_v48, %v703_v49  ;;  %v8552_v56 = vcombine.high %v696_v50, %v704_v51  ;;  %v815_v48 = vld [vmem:[%s9743_s10 + $0x1140] sm:$0xff]  ;;  %v808_v49 = vld [vmem:[%s9743_s10 + $0x1108] sm:$0xff] }
  0xcb   : > { %6598 = vmatprep.subr.bf16.mxu0 %v8438_v57  ;;  %6762 = vmatprep.subr.bf16.mxu1 %v8440_v58  ;;  %v711_v57 = vld [vmem:[%s9743_s10 + $0xe00] sm:$0xff]  ;;  %v816_v50 = vld [vmem:[%s9743_s10 + $0x1148] sm:$0xff] }
  0xcc   : > { %v719_v58 = vld [vmem:[%s9743_s10 + $0xe40] sm:$0xff] }
  0xcd   : > { %v8565_v7 = vcombine.low %v711_v57, %v719_v58 }
  0xce   : > { %6599 = vmatpush1.bf16.msra.mxu0 %v8437_v1  ;;  %6763 = vmatpush1.bf16.msra.mxu1 %v8439_v2  ;;  %v8566_v1 = vcombine.high %v711_v57, %v719_v58  ;;  %v8568_v2 = vcombine.high %v712_v60, %v720_v61  ;;  %v831_v57 = vld [vmem:[%s9743_s10 + $0x11c0] sm:$0xff]  ;;  %v824_v58 = vld [vmem:[%s9743_s10 + $0x1188] sm:$0xff] }
  0xcf   : > { %6600 = vmatprep.subr.bf16.mxu0 %v8454_v3  ;;  %6764 = vmatprep.subr.bf16.mxu1 %v8456_v4  ;;  %v727_v3 = vld [vmem:[%s9743_s10 + $0xe80] sm:$0xff]  ;;  %v832_v60 = vld [vmem:[%s9743_s10 + $0x11c8] sm:$0xff] }
  0xd0   : > { %v735_v4 = vld [vmem:[%s9743_s10 + $0xec0] sm:$0xff] }
  0xd1   : > { %v8581_v16 = vcombine.low %v727_v3, %v735_v4 }
  0xd2   : > { %6601 = vmatpush1.bf16.msra.mxu0 %v8453_v10  ;;  %6765 = vmatpush1.bf16.msra.mxu1 %v8455_v11  ;;  %v8582_v10 = vcombine.high %v727_v3, %v735_v4  ;;  %v8584_v11 = vcombine.high %v728_v5, %v736_v6  ;;  %v847_v3 = vld [vmem:[%s9743_s10 + $0x1240] sm:$0xff]  ;;  %v840_v4 = vld [vmem:[%s9743_s10 + $0x1208] sm:$0xff] }
  0xd3   : > { %6602 = vmatprep.subr.bf16.mxu0 %v8470_v12  ;;  %6766 = vmatprep.subr.bf16.mxu1 %v8472_v13  ;;  %v743_v12 = vld [vmem:[%s9743_s10 + $0xf00] sm:$0xff]  ;;  %v848_v5 = vld [vmem:[%s9743_s10 + $0x1248] sm:$0xff] }
  0xd4   : > { %v751_v13 = vld [vmem:[%s9743_s10 + $0xf40] sm:$0xff] }
  0xd5   : > { %v8597_v24 = vcombine.low %v743_v12, %v751_v13 }
  0xd6   : > { %6603 = vmatpush1.bf16.msra.mxu0 %v8469_v18  ;;  %6767 = vmatpush1.bf16.msra.mxu1 %v8471_v19  ;;  %v8598_v18 = vcombine.high %v743_v12, %v751_v13  ;;  %v8600_v19 = vcombine.high %v744_v14, %v752_v15  ;;  %v863_v12 = vld [vmem:[%s9743_s10 + $0x12c0] sm:$0xff]  ;;  %v856_v13 = vld [vmem:[%s9743_s10 + $0x1288] sm:$0xff] }
  0xd7   : > { %6604 = vmatprep.subr.bf16.mxu0 %v8486_v20  ;;  %6768 = vmatprep.subr.bf16.mxu1 %v8488_v21  ;;  %v759_v20 = vld [vmem:[%s9743_s10 + $0xf80] sm:$0xff]  ;;  %v864_v14 = vld [vmem:[%s9743_s10 + $0x12c8] sm:$0xff] }
  0xd8   : > { %v767_v21 = vld [vmem:[%s9743_s10 + $0xfc0] sm:$0xff] }
  0xd9   : > { %v8613_v32 = vcombine.low %v759_v20, %v767_v21 }
  0xda   : > { %6605 = vmatpush1.bf16.msra.mxu0 %v8485_v27  ;;  %6769 = vmatpush1.bf16.msra.mxu1 %v8487_v59  ;;  %v8614_v27 = vcombine.high %v759_v20, %v767_v21  ;;  %v8616_v59 = vcombine.high %v760_v22, %v768_v23  ;;  %v879_v20 = vld [vmem:[%s9743_s10 + $0x1340] sm:$0xff]  ;;  %v872_v21 = vld [vmem:[%s9743_s10 + $0x1308] sm:$0xff] }
  0xdb   : > { %6606 = vmatprep.subr.bf16.mxu0 %v8502_v28  ;;  %6770 = vmatprep.subr.bf16.mxu1 %v8504_v29  ;;  %v775_v28 = vld [vmem:[%s9743_s10 + $0x1000] sm:$0xff]  ;;  %v880_v22 = vld [vmem:[%s9743_s10 + $0x1348] sm:$0xff] }
  0xdc   : > { %v783_v29 = vld [vmem:[%s9743_s10 + $0x1040] sm:$0xff] }
  0xdd   : > { %v8629_v42 = vcombine.low %v775_v28, %v783_v29 }
  0xde   : > { %6607 = vmatpush1.bf16.msra.mxu0 %v8501_v36  ;;  %6771 = vmatpush1.bf16.msra.mxu1 %v8503_v37  ;;  %v8630_v36 = vcombine.high %v775_v28, %v783_v29  ;;  %v8632_v37 = vcombine.high %v776_v30, %v784_v31  ;;  %v895_v28 = vld [vmem:[%s9743_s10 + $0x13c0] sm:$0xff]  ;;  %v888_v29 = vld [vmem:[%s9743_s10 + $0x1388] sm:$0xff] }
  0xdf   : > { %6608 = vmatprep.subr.bf16.mxu0 %v8518_v38  ;;  %6772 = vmatprep.subr.bf16.mxu1 %v8520_v39  ;;  %v791_v38 = vld [vmem:[%s9743_s10 + $0x1080] sm:$0xff] }
  0xe0   : > { %v799_v39 = vld [vmem:[%s9743_s10 + $0x10c0] sm:$0xff] }
  0xe1   : > { %v8645_v51 = vcombine.low %v791_v38, %v799_v39 }
  0xe2   : > { %6609 = vmatpush1.bf16.msra.mxu0 %v8517_v44  ;;  %6773 = vmatpush1.bf16.msra.mxu1 %v8519_v45  ;;  %v8631_v44 = vcombine.low %v776_v30, %v784_v31  ;;  %v8646_v45 = vcombine.high %v791_v38, %v799_v39  ;;  %v896_v30 = vld [vmem:[%s9743_s10 + $0x13c8] sm:$0xff]  ;;  %v911_v38 = vld [vmem:[%s9743_s10 + $0x1440] sm:$0xff] }
  0xe3   : > { %6610 = vmatprep.subr.bf16.mxu0 %v8534_v46  ;;  %6774 = vmatprep.subr.bf16.mxu1 %v8536_v47  ;;  %v8648_v46 = vcombine.high %v792_v41, %v800_v53  ;;  %v807_v47 = vld [vmem:[%s9743_s10 + $0x1100] sm:$0xff]  ;;  %v904_v39 = vld [vmem:[%s9743_s10 + $0x1408] sm:$0xff] }
  0xe4   : > { %v8661_v61 = vcombine.low %v807_v47, %v815_v48 }
  0xe6   : > { %6611 = vmatpush1.bf16.msra.mxu0 %v8533_v52  ;;  %6775 = vmatpush1.bf16.msra.mxu1 %v8535_v54  ;;  %v8647_v52 = vcombine.low %v792_v41, %v800_v53  ;;  %v8662_v54 = vcombine.high %v807_v47, %v815_v48  ;;  %v912_v41 = vld [vmem:[%s9743_s10 + $0x1448] sm:$0xff]  ;;  %v927_v47 = vld [vmem:[%s9743_s10 + $0x14c0] sm:$0xff] }
  0xe7   : > { %6612 = vmatprep.subr.bf16.mxu0 %v8550_v55  ;;  %6776 = vmatprep.subr.bf16.mxu1 %v8552_v56  ;;  %v8664_v55 = vcombine.high %v808_v49, %v816_v50  ;;  %v823_v56 = vld [vmem:[%s9743_s10 + $0x1180] sm:$0xff]  ;;  %v920_v48 = vld [vmem:[%s9743_s10 + $0x1488] sm:$0xff] }
  0xe8   : > { %v8677_v6 = vcombine.low %v823_v56, %v831_v57 }
  0xea   : > { %6613 = vmatpush1.bf16.msra.mxu0 %v8549_v62  ;;  %6777 = vmatpush1.bf16.msra.mxu1 %v8551_v0  ;;  %v8663_v62 = vcombine.low %v808_v49, %v816_v50  ;;  %v8678_v0 = vcombine.high %v823_v56, %v831_v57  ;;  %v928_v49 = vld [vmem:[%s9743_s10 + $0x14c8] sm:$0xff]  ;;  %v943_v56 = vld [vmem:[%s9743_s10 + $0x1540] sm:$0xff] }
  0xeb   : > { %6614 = vmatprep.subr.bf16.mxu0 %v8566_v1  ;;  %6778 = vmatprep.subr.bf16.mxu1 %v8568_v2  ;;  %v8680_v1 = vcombine.high %v824_v58, %v832_v60  ;;  %v839_v2 = vld [vmem:[%s9743_s10 + $0x1200] sm:$0xff]  ;;  %v936_v57 = vld [vmem:[%s9743_s10 + $0x1508] sm:$0xff] }
  0xec   : > { %v8693_v15 = vcombine.low %v839_v2, %v847_v3 }
  0xee   : > { %6615 = vmatpush1.bf16.msra.mxu0 %v8565_v7  ;;  %6779 = vmatpush1.bf16.msra.mxu1 %v8567_v8  ;;  %v8679_v7 = vcombine.low %v824_v58, %v832_v60  ;;  %v8694_v8 = vcombine.high %v839_v2, %v847_v3  ;;  %v944_v58 = vld [vmem:[%s9743_s10 + $0x1548] sm:$0xff]  ;;  %v959_v2 = vld [vmem:[%s9743_s10 + $0x15c0] sm:$0xff] }
  0xef   : > { %6616 = vmatprep.subr.bf16.mxu0 %v8582_v10  ;;  %6780 = vmatprep.subr.bf16.mxu1 %v8584_v11  ;;  %v8696_v10 = vcombine.high %v840_v4, %v848_v5  ;;  %v855_v11 = vld [vmem:[%s9743_s10 + $0x1280] sm:$0xff]  ;;  %v952_v3 = vld [vmem:[%s9743_s10 + $0x1588] sm:$0xff] }
  0xf0   : > { %v8709_v23 = vcombine.low %v855_v11, %v863_v12 }
  0xf2   : > { %6617 = vmatpush1.bf16.msra.mxu0 %v8581_v16  ;;  %6781 = vmatpush1.bf16.msra.mxu1 %v8583_v17  ;;  %v8695_v16 = vcombine.low %v840_v4, %v848_v5  ;;  %v8710_v17 = vcombine.high %v855_v11, %v863_v12  ;;  %v960_v4 = vld [vmem:[%s9743_s10 + $0x15c8] sm:$0xff]  ;;  %v975_v11 = vld [vmem:[%s9743_s10 + $0x1640] sm:$0xff] }
  0xf3   : > { %6618 = vmatprep.subr.bf16.mxu0 %v8598_v18  ;;  %6782 = vmatprep.subr.bf16.mxu1 %v8600_v19  ;;  %v8712_v18 = vcombine.high %v856_v13, %v864_v14  ;;  %v871_v19 = vld [vmem:[%s9743_s10 + $0x1300] sm:$0xff]  ;;  %v968_v12 = vld [vmem:[%s9743_s10 + $0x1608] sm:$0xff] }
  0xf4   : > { %v8725_v31 = vcombine.low %v871_v19, %v879_v20 }
  0xf6   : > { %6619 = vmatpush1.bf16.msra.mxu0 %v8597_v24  ;;  %6783 = vmatpush1.bf16.msra.mxu1 %v8599_v26  ;;  %v8711_v24 = vcombine.low %v856_v13, %v864_v14  ;;  %v8726_v26 = vcombine.high %v871_v19, %v879_v20  ;;  %v976_v13 = vld [vmem:[%s9743_s10 + $0x1648] sm:$0xff]  ;;  %v991_v19 = vld [vmem:[%s9743_s10 + $0x16c0] sm:$0xff] }
  0xf7   : > { %6620 = vmatprep.subr.bf16.mxu0 %v8614_v27  ;;  %6784 = vmatprep.subr.bf16.mxu1 %v8616_v59  ;;  %v8728_v27 = vcombine.high %v872_v21, %v880_v22  ;;  %v887_v59 = vld [vmem:[%s9743_s10 + $0x1380] sm:$0xff]  ;;  %v984_v20 = vld [vmem:[%s9743_s10 + $0x1688] sm:$0xff] }
  0xf8   : > { %v8741_v53 = vcombine.low %v887_v59, %v895_v28 }
  0xfa   : > { %6621 = vmatpush1.bf16.msra.mxu0 %v8613_v32  ;;  %6785 = vmatpush1.bf16.msra.mxu1 %v8615_v33  ;;  %v8727_v32 = vcombine.low %v872_v21, %v880_v22  ;;  %v8742_v33 = vcombine.high %v887_v59, %v895_v28  ;;  %v992_v21 = vld [vmem:[%s9743_s10 + $0x16c8] sm:$0xff]  ;;  %v1007_v59 = vld [vmem:[%s9743_s10 + $0x1740] sm:$0xff] }
  0xfb   : > { %6631 = vmatprep.subr.bf16.mxu0 %v8630_v36  ;;  %6795 = vmatprep.subr.bf16.mxu1 %v8632_v37  ;;  %v8744_v36 = vcombine.high %v888_v29, %v896_v30  ;;  %v903_v37 = vld [vmem:[%s9743_s10 + $0x1400] sm:$0xff]  ;;  %v1000_v28 = vld [vmem:[%s9743_s10 + $0x1708] sm:$0xff] }
  0xfc   : > { %v8757_v50 = vcombine.low %v903_v37, %v911_v38 }
  0xfd   : > { %6623 = vmatmul.mubr.bf16.vlgmr.msra.gmra.mrb[0].mxu0 %v9924_v40  ;;  %6787 = vmatmul.mubr.bf16.vlgmr.msra.gmra.mrb[0].mxu1 %v9924_v40 }
  0xfe   : > { %6632 = vmatpush1.bf16.msra.mxu0 %v8629_v42  ;;  %6796 = vmatpush1.bf16.msra.mxu1 %v8631_v44  ;;  %v8743_v42 = vcombine.low %v888_v29, %v896_v30  ;;  %v8758_v44 = vcombine.high %v903_v37, %v911_v38  ;;  %v1008_v29 = vld [vmem:[%s9743_s10 + $0x1748] sm:$0xff]  ;;  %v1023_v37 = vld [vmem:[%s9743_s10 + $0x17c0] sm:$0xff] }
  0xff   : > { %6633 = vmatprep.subr.bf16.mxu0 %v8646_v45  ;;  %6797 = vmatprep.subr.bf16.mxu1 %v8648_v46  ;;  %v8760_v45 = vcombine.high %v904_v39, %v912_v41  ;;  %v919_v46 = vld [vmem:[%s9743_s10 + $0x1480] sm:$0xff]  ;;  %v1016_v38 = vld [vmem:[%s9743_s10 + $0x1788] sm:$0xff] }
 0x100   : > { %6663 = vmatprep.mubr.bf16.mxu0 %v9853_v34  ;;  %6827 = vmatprep.mubr.bf16.mxu1 %v9853_v34  ;;  %v8773_v60 = vcombine.low %v919_v46, %v927_v47 }
 0x102   : > { %6634 = vmatpush1.bf16.msra.mxu0 %v8645_v51  ;;  %6798 = vmatpush1.bf16.msra.mxu1 %v8647_v52  ;;  %v8759_v51 = vcombine.low %v904_v39, %v912_v41  ;;  %v8774_v52 = vcombine.high %v919_v46, %v927_v47  ;;  %v1024_v39 = vld [vmem:[%s9743_s10 + $0x17c8] sm:$0xff]  ;;  %v1039_v46 = vld [vmem:[%s9743_s10 + $0x1840] sm:$0xff] }
 0x103   : > { %6635 = vmatprep.subr.bf16.mxu0 %v8662_v54  ;;  %6799 = vmatprep.subr.bf16.mxu1 %v8664_v55  ;;  %v8776_v54 = vcombine.high %v920_v48, %v928_v49  ;;  %v935_v55 = vld [vmem:[%s9743_s10 + $0x1500] sm:$0xff]  ;;  %v1032_v47 = vld [vmem:[%s9743_s10 + $0x1808] sm:$0xff] }
 0x104   : > { %v8789_v5 = vcombine.low %v935_v55, %v943_v56 }
 0x106   : > { %6636 = vmatpush1.bf16.msra.mxu0 %v8661_v61  ;;  %6800 = vmatpush1.bf16.msra.mxu1 %v8663_v62  ;;  %v8775_v61 = vcombine.low %v920_v48, %v928_v49  ;;  %v8790_v62 = vcombine.high %v935_v55, %v943_v56  ;;  %v1040_v48 = vld [vmem:[%s9743_s10 + $0x1848] sm:$0xff]  ;;  %v1055_v55 = vld [vmem:[%s9743_s10 + $0x18c0] sm:$0xff] }
 0x107   : > { %6637 = vmatprep.subr.bf16.mxu0 %v8678_v0  ;;  %6801 = vmatprep.subr.bf16.mxu1 %v8680_v1  ;;  %v8792_v0 = vcombine.high %v936_v57, %v944_v58  ;;  %v951_v1 = vld [vmem:[%s9743_s10 + $0x1580] sm:$0xff]  ;;  %v1048_v56 = vld [vmem:[%s9743_s10 + $0x1888] sm:$0xff] }
 0x108   : > { %v8805_v14 = vcombine.low %v951_v1, %v959_v2 }
 0x10a   : > { %6638 = vmatpush1.bf16.msra.mxu0 %v8677_v6  ;;  %6802 = vmatpush1.bf16.msra.mxu1 %v8679_v7  ;;  %v8791_v6 = vcombine.low %v936_v57, %v944_v58  ;;  %v8806_v7 = vcombine.high %v951_v1, %v959_v2  ;;  %v1056_v57 = vld [vmem:[%s9743_s10 + $0x18c8] sm:$0xff]  ;;  %v1071_v1 = vld [vmem:[%s9743_s10 + $0x1940] sm:$0xff]  ;;  %v10000_v2 = vcombine.high %v9853_v34, %v9853_v34 }
 0x10b   : > { %6639 = vmatprep.subr.bf16.mxu0 %v8694_v8  ;;  %6803 = vmatprep.subr.bf16.mxu1 %v8696_v10  ;;  %v8808_v8 = vcombine.high %v952_v3, %v960_v4  ;;  %v967_v10 = vld [vmem:[%s9743_s10 + $0x1600] sm:$0xff] }
 0x10c   : > { %v8821_v22 = vcombine.low %v967_v10, %v975_v11 }
 0x10e   : > { %6640 = vmatpush1.bf16.msra.mxu0 %v8693_v15  ;;  %6804 = vmatpush1.bf16.msra.mxu1 %v8695_v16  ;;  %v8807_v15 = vcombine.low %v952_v3, %v960_v4  ;;  %v8822_v16 = vcombine.high %v967_v10, %v975_v11  ;;  %v1064_v3 = vld [vmem:[%s9743_s10 + $0x1908] sm:$0xff]  ;;  %v1079_v10 = vld [vmem:[%s9743_s10 + $0x1980] sm:$0xff] }
 0x10f   : > { %6641 = vmatprep.subr.bf16.mxu0 %v8710_v17  ;;  %6805 = vmatprep.subr.bf16.mxu1 %v8712_v18  ;;  %v8824_v17 = vcombine.high %v968_v12, %v976_v13  ;;  %v983_v18 = vld [vmem:[%s9743_s10 + $0x1680] sm:$0xff]  ;;  %v1072_v4 = vld [vmem:[%s9743_s10 + $0x1948] sm:$0xff] }
 0x110   : > { %v8837_v30 = vcombine.low %v983_v18, %v991_v19  ;;  %v1087_v11 = vld [vmem:[%s9743_s10 + $0x19c0] sm:$0xff] }
 0x112   : > { %6642 = vmatpush1.bf16.msra.mxu0 %v8709_v23  ;;  %6806 = vmatpush1.bf16.msra.mxu1 %v8711_v24  ;;  %v8823_v23 = vcombine.low %v968_v12, %v976_v13  ;;  %v8838_v24 = vcombine.high %v983_v18, %v991_v19  ;;  %v1080_v12 = vld [vmem:[%s9743_s10 + $0x1988] sm:$0xff]  ;;  %v1095_v18 = vld [vmem:[%s9743_s10 + $0x1a00] sm:$0xff] }
 0x113   : > { %6643 = vmatprep.subr.bf16.mxu0 %v8726_v26  ;;  %6807 = vmatprep.subr.bf16.mxu1 %v8728_v27  ;;  %v8840_v26 = vcombine.high %v984_v20, %v992_v21  ;;  %v999_v27 = vld [vmem:[%s9743_s10 + $0x1700] sm:$0xff]  ;;  %v1088_v13 = vld [vmem:[%s9743_s10 + $0x19c8] sm:$0xff] }
 0x114   : > { %v8853_v41 = vcombine.low %v999_v27, %v1007_v59  ;;  %v1103_v19 = vld [vmem:[%s9743_s10 + $0x1a40] sm:$0xff] }
 0x116   : > { %6644 = vmatpush1.bf16.msra.mxu0 %v8725_v31  ;;  %6808 = vmatpush1.bf16.msra.mxu1 %v8727_v32  ;;  %v8839_v31 = vcombine.low %v984_v20, %v992_v21  ;;  %v8854_v32 = vcombine.high %v999_v27, %v1007_v59  ;;  %v1096_v20 = vld [vmem:[%s9743_s10 + $0x1a08] sm:$0xff]  ;;  %v1111_v27 = vld [vmem:[%s9743_s10 + $0x1a80] sm:$0xff] }
 0x117   : > { %6645 = vmatprep.subr.bf16.mxu0 %v8742_v33  ;;  %6809 = vmatprep.subr.bf16.mxu1 %v8744_v36  ;;  %v8856_v33 = vcombine.high %v1000_v28, %v1008_v29  ;;  %v1015_v36 = vld [vmem:[%s9743_s10 + $0x1780] sm:$0xff]  ;;  %v1104_v21 = vld [vmem:[%s9743_s10 + $0x1a48] sm:$0xff] }
 0x118   : > { %v8869_v49 = vcombine.low %v1015_v36, %v1023_v37  ;;  %v1119_v59 = vld [vmem:[%s9743_s10 + $0x1ac0] sm:$0xff] }
 0x11a   : > { %6646 = vmatpush1.bf16.msra.mxu0 %v8741_v53  ;;  %6810 = vmatpush1.bf16.msra.mxu1 %v8743_v42  ;;  %v8855_v53 = vcombine.low %v1000_v28, %v1008_v29  ;;  %v8870_v42 = vcombine.high %v1015_v36, %v1023_v37  ;;  %v1112_v28 = vld [vmem:[%s9743_s10 + $0x1a88] sm:$0xff]  ;;  %v1127_v36 = vld [vmem:[%s9743_s10 + $0x1b00] sm:$0xff] }
 0x11b   : > { %6647 = vmatprep.subr.bf16.mxu0 %v8758_v44  ;;  %6811 = vmatprep.subr.bf16.mxu1 %v8760_v45  ;;  %v8872_v44 = vcombine.high %v1016_v38, %v1024_v39  ;;  %v1031_v45 = vld [vmem:[%s9743_s10 + $0x1800] sm:$0xff]  ;;  %v1120_v29 = vld [vmem:[%s9743_s10 + $0x1ac8] sm:$0xff] }
 0x11c   : > { %v8885_v58 = vcombine.low %v1031_v45, %v1039_v46  ;;  %v1135_v37 = vld [vmem:[%s9743_s10 + $0x1b40] sm:$0xff] }
 0x11e   : > { %6648 = vmatpush1.bf16.msra.mxu0 %v8757_v50  ;;  %6812 = vmatpush1.bf16.msra.mxu1 %v8759_v51  ;;  %v8871_v50 = vcombine.low %v1016_v38, %v1024_v39  ;;  %v8886_v51 = vcombine.high %v1031_v45, %v1039_v46  ;;  %v1128_v38 = vld [vmem:[%s9743_s10 + $0x1b08] sm:$0xff]  ;;  %v1143_v45 = vld [vmem:[%s9743_s10 + $0x1b80] sm:$0xff] }
 0x11f   : > { %6649 = vmatprep.subr.bf16.mxu0 %v8774_v52  ;;  %6813 = vmatprep.subr.bf16.mxu1 %v8776_v54  ;;  %v8888_v52 = vcombine.high %v1032_v47, %v1040_v48  ;;  %v1047_v54 = vld [vmem:[%s9743_s10 + $0x1880] sm:$0xff]  ;;  %v1136_v39 = vld [vmem:[%s9743_s10 + $0x1b48] sm:$0xff] }
 0x120   : > { %v1151_v46 = vld [vmem:[%s9743_s10 + $0x1bc0] sm:$0xff] }
 0x122   : > { %6650 = vmatpush1.bf16.msra.mxu0 %v8773_v60  ;;  %6814 = vmatpush1.bf16.msra.mxu1 %v8775_v61  ;;  %v8887_v60 = vcombine.low %v1032_v47, %v1040_v48  ;;  %v8902_v61 = vcombine.high %v1047_v54, %v1055_v55  ;;  %v1144_v47 = vld [vmem:[%s9743_s10 + $0x1b88] sm:$0xff] }
 0x123   : > { %6651 = vmatprep.subr.bf16.mxu0 %v8790_v62  ;;  %6815 = vmatprep.subr.bf16.mxu1 %v8792_v0  ;;  %v8904_v62 = vcombine.high %v1048_v56, %v1056_v57  ;;  %v1063_v0 = vld [vmem:[%s9743_s10 + $0x1900] sm:$0xff]  ;;  %v1152_v48 = vld [vmem:[%s9743_s10 + $0x1bc8] sm:$0xff] }
 0x126   : > { %6652 = vmatpush1.bf16.msra.mxu0 %v8789_v5  ;;  %6816 = vmatpush1.bf16.msra.mxu1 %v8791_v6  ;;  %v8901_v5 = vcombine.low %v1047_v54, %v1055_v55  ;;  %v8903_v6 = vcombine.low %v1048_v56, %v1056_v57  ;;  %v1159_v54 = vld [vmem:[%s9743_s10 + $0x1c00] sm:$0xff]  ;;  %v1160_v56 = vld [vmem:[%s9743_s10 + $0x1c08] sm:$0xff] }
 0x127   : > { %6653 = vmatprep.subr.bf16.mxu0 %v8806_v7  ;;  %6817 = vmatprep.subr.bf16.mxu1 %v8808_v8  ;;  %v8918_v7 = vcombine.high %v1063_v0, %v1071_v1  ;;  %v8920_v8 = vcombine.high %v1064_v3, %v1072_v4  ;;  %v1167_v55 = vld [vmem:[%s9743_s10 + $0x1c40] sm:$0xff]  ;;  %v1168_v57 = vld [vmem:[%s9743_s10 + $0x1c48] sm:$0xff] }
 0x12a   : > { %6654 = vmatpush1.bf16.msra.mxu0 %v8805_v14  ;;  %6818 = vmatpush1.bf16.msra.mxu1 %v8807_v15  ;;  %v8917_v14 = vcombine.low %v1063_v0, %v1071_v1  ;;  %v8919_v15 = vcombine.low %v1064_v3, %v1072_v4  ;;  %v1175_v0 = vld [vmem:[%s9743_s10 + $0x1c80] sm:$0xff]  ;;  %v1176_v3 = vld [vmem:[%s9743_s10 + $0x1c88] sm:$0xff] }
 0x12b   : > { %6655 = vmatprep.subr.bf16.mxu0 %v8822_v16  ;;  %6819 = vmatprep.subr.bf16.mxu1 %v8824_v17  ;;  %v8934_v16 = vcombine.high %v1079_v10, %v1087_v11  ;;  %v8936_v17 = vcombine.high %v1080_v12, %v1088_v13  ;;  %v1183_v1 = vld [vmem:[%s9743_s10 + $0x1cc0] sm:$0xff]  ;;  %v1184_v4 = vld [vmem:[%s9743_s10 + $0x1cc8] sm:$0xff] }
 0x12e   : > { %6656 = vmatpush1.bf16.msra.mxu0 %v8821_v22  ;;  %6820 = vmatpush1.bf16.msra.mxu1 %v8823_v23  ;;  %v8933_v22 = vcombine.low %v1079_v10, %v1087_v11  ;;  %v8935_v23 = vcombine.low %v1080_v12, %v1088_v13  ;;  %v1191_v10 = vld [vmem:[%s9743_s10 + $0x1d00] sm:$0xff]  ;;  %v1192_v12 = vld [vmem:[%s9743_s10 + $0x1d08] sm:$0xff] }
 0x12f   : > { %6657 = vmatprep.subr.bf16.mxu0 %v8838_v24  ;;  %6821 = vmatprep.subr.bf16.mxu1 %v8840_v26  ;;  %v8950_v24 = vcombine.high %v1095_v18, %v1103_v19  ;;  %v8952_v26 = vcombine.high %v1096_v20, %v1104_v21  ;;  %v1199_v11 = vld [vmem:[%s9743_s10 + $0x1d40] sm:$0xff]  ;;  %v1200_v13 = vld [vmem:[%s9743_s10 + $0x1d48] sm:$0xff] }
 0x132   : > { %6658 = vmatpush1.bf16.msra.mxu0 %v8837_v30  ;;  %6822 = vmatpush1.bf16.msra.mxu1 %v8839_v31  ;;  %v8949_v30 = vcombine.low %v1095_v18, %v1103_v19  ;;  %v8951_v31 = vcombine.low %v1096_v20, %v1104_v21  ;;  %v1207_v18 = vld [vmem:[%s9743_s10 + $0x1d80] sm:$0xff]  ;;  %v1208_v20 = vld [vmem:[%s9743_s10 + $0x1d88] sm:$0xff] }
 0x133   : > { %6659 = vmatprep.subr.bf16.mxu0 %v8854_v32  ;;  %6823 = vmatprep.subr.bf16.mxu1 %v8856_v33  ;;  %v8966_v32 = vcombine.high %v1111_v27, %v1119_v59  ;;  %v8968_v33 = vcombine.high %v1112_v28, %v1120_v29  ;;  %v1215_v19 = vld [vmem:[%s9743_s10 + $0x1dc0] sm:$0xff]  ;;  %v1216_v21 = vld [vmem:[%s9743_s10 + $0x1dc8] sm:$0xff] }
 0x136   : > { %6660 = vmatpush1.bf16.msra.mxu0 %v8853_v41  ;;  %6824 = vmatpush1.bf16.msra.mxu1 %v8855_v53  ;;  %v8965_v41 = vcombine.low %v1111_v27, %v1119_v59  ;;  %v8967_v53 = vcombine.low %v1112_v28, %v1120_v29  ;;  %v1223_v27 = vld [vmem:[%s9743_s10 + $0x1e00] sm:$0xff]  ;;  %v1224_v28 = vld [vmem:[%s9743_s10 + $0x1e08] sm:$0xff] }
 0x137   : > { %6661 = vmatprep.subr.bf16.mxu0 %v8870_v42  ;;  %6825 = vmatprep.subr.bf16.mxu1 %v8872_v44  ;;  %v8982_v42 = vcombine.high %v1127_v36, %v1135_v37  ;;  %v8984_v44 = vcombine.high %v1128_v38, %v1136_v39  ;;  %v1231_v59 = vld [vmem:[%s9743_s10 + $0x1e40] sm:$0xff]  ;;  %v1232_v29 = vld [vmem:[%s9743_s10 + $0x1e48] sm:$0xff] }
 0x13a   : > { %6662 = vmatpush1.bf16.msra.mxu0 %v8869_v49  ;;  %6826 = vmatpush1.bf16.msra.mxu1 %v8871_v50  ;;  %v8981_v49 = vcombine.low %v1127_v36, %v1135_v37  ;;  %v8983_v50 = vcombine.low %v1128_v38, %v1136_v39  ;;  %v1239_v36 = vld [vmem:[%s9743_s10 + $0x1e80] sm:$0xff]  ;;  %v1240_v38 = vld [vmem:[%s9743_s10 + $0x1e88] sm:$0xff] }
 0x13b   : > { %6672 = vmatprep.subr.bf16.mxu0 %v8886_v51  ;;  %6836 = vmatprep.subr.bf16.mxu1 %v8888_v52  ;;  %v8998_v51 = vcombine.high %v1143_v45, %v1151_v46  ;;  %v9000_v52 = vcombine.high %v1144_v47, %v1152_v48  ;;  %v1247_v37 = vld [vmem:[%s9743_s10 + $0x1ec0] sm:$0xff]  ;;  %v1248_v39 = vld [vmem:[%s9743_s10 + $0x1ec8] sm:$0xff] }
 0x13d   : > { %6664 = vmatmul.mubr.bf16.vlgmr.msra.gmra.mrb[0].mxu0 %v9856_v35  ;;  %6828 = vmatmul.mubr.bf16.vlgmr.msra.gmra.mrb[0].mxu1 %v9856_v35 }
 0x13e   : > { %6673 = vmatpush1.bf16.msra.mxu0 %v8885_v58  ;;  %6837 = vmatpush1.bf16.msra.mxu1 %v8887_v60  ;;  %v8997_v58 = vcombine.low %v1143_v45, %v1151_v46  ;;  %v8999_v60 = vcombine.low %v1144_v47, %v1152_v48  ;;  %v1255_v45 = vld [vmem:[%s9743_s10 + $0x1f00] sm:$0xff]  ;;  %v1256_v47 = vld [vmem:[%s9743_s10 + $0x1f08] sm:$0xff] }
 0x13f   : > { %6674 = vmatprep.subr.bf16.mxu0 %v8902_v61  ;;  %6838 = vmatprep.subr.bf16.mxu1 %v8904_v62  ;;  %v9014_v61 = vcombine.high %v1159_v54, %v1167_v55  ;;  %v9016_v62 = vcombine.high %v1160_v56, %v1168_v57  ;;  %v1263_v46 = vld [vmem:[%s9743_s10 + $0x1f40] sm:$0xff]  ;;  %v1264_v48 = vld [vmem:[%s9743_s10 + $0x1f48] sm:$0xff] }
 0x140   : > { %6704 = vmatprep.mubr.bf16.mxu0 %v10000_v2  ;;  %6868 = vmatprep.mubr.bf16.mxu1 %v10000_v2 }
 0x142   : > { %6675 = vmatpush1.bf16.msra.mxu0 %v8901_v5  ;;  %6839 = vmatpush1.bf16.msra.mxu1 %v8903_v6  ;;  %v9013_v5 = vcombine.low %v1159_v54, %v1167_v55  ;;  %v9015_v6 = vcombine.low %v1160_v56, %v1168_v57  ;;  %v1271_v54 = vld [vmem:[%s9743_s10 + $0x1f80] sm:$0xff]  ;;  %v1272_v56 = vld [vmem:[%s9743_s10 + $0x1f88] sm:$0xff] }
 0x143   : > { %6676 = vmatprep.subr.bf16.mxu0 %v8918_v7  ;;  %6840 = vmatprep.subr.bf16.mxu1 %v8920_v8  ;;  %v9030_v7 = vcombine.high %v1175_v0, %v1183_v1  ;;  %v9032_v8 = vcombine.high %v1176_v3, %v1184_v4  ;;  %v1279_v55 = vld [vmem:[%s9743_s10 + $0x1fc0] sm:$0xff]  ;;  %v1280_v57 = vld [vmem:[%s9743_s10 + $0x1fc8] sm:$0xff] }
 0x146   : > { %6677 = vmatpush1.bf16.msra.mxu0 %v8917_v14  ;;  %6841 = vmatpush1.bf16.msra.mxu1 %v8919_v15  ;;  %v9029_v14 = vcombine.low %v1175_v0, %v1183_v1  ;;  %v9031_v15 = vcombine.low %v1176_v3, %v1184_v4  ;;  %v265_v0 = vld [vmem:[%s9743_s10 + $0x10] sm:$0xff]  ;;  %v266_v3 = vld [vmem:[%s9743_s10 + $0x18] sm:$0xff] }
 0x147   : > { %6678 = vmatprep.subr.bf16.mxu0 %v8934_v16  ;;  %6842 = vmatprep.subr.bf16.mxu1 %v8936_v17  ;;  %v9046_v16 = vcombine.high %v1191_v10, %v1199_v11  ;;  %v9048_v17 = vcombine.high %v1192_v12, %v1200_v13  ;;  %v273_v1 = vld [vmem:[%s9743_s10 + $0x50] sm:$0xff]  ;;  %v274_v4 = vld [vmem:[%s9743_s10 + $0x58] sm:$0xff] }
 0x14a   : > { %6679 = vmatpush1.bf16.msra.mxu0 %v8933_v22  ;;  %6843 = vmatpush1.bf16.msra.mxu1 %v8935_v23  ;;  %v9045_v22 = vcombine.low %v1191_v10, %v1199_v11  ;;  %v9047_v23 = vcombine.low %v1192_v12, %v1200_v13  ;;  %v281_v10 = vld [vmem:[%s9743_s10 + $0x90] sm:$0xff]  ;;  %v10068_v12 = vcombine.high %v9856_v35, %v9856_v35  ;;  %v282_v13 = vld [vmem:[%s9743_s10 + $0x98] sm:$0xff] }
 0x14b   : > { %6680 = vmatprep.subr.bf16.mxu0 %v8950_v24  ;;  %6844 = vmatprep.subr.bf16.mxu1 %v8952_v26  ;;  %v9062_v24 = vcombine.high %v1207_v18, %v1215_v19  ;;  %v9064_v26 = vcombine.high %v1208_v20, %v1216_v21  ;;  %v289_v11 = vld [vmem:[%s9743_s10 + $0xd0] sm:$0xff] }
 0x14e   : > { %6681 = vmatpush1.bf16.msra.mxu0 %v8949_v30  ;;  %6845 = vmatpush1.bf16.msra.mxu1 %v8951_v31  ;;  %v9061_v30 = vcombine.low %v1207_v18, %v1215_v19  ;;  %v9063_v31 = vcombine.low %v1208_v20, %v1216_v21  ;;  %v297_v19 = vld [vmem:[%s9743_s10 + $0x110] sm:$0xff]  ;;  %v298_v21 = vld [vmem:[%s9743_s10 + $0x118] sm:$0xff] }
 0x14f   : > { %6682 = vmatprep.subr.bf16.mxu0 %v8966_v32  ;;  %6846 = vmatprep.subr.bf16.mxu1 %v8968_v33  ;;  %v9078_v32 = vcombine.high %v1223_v27, %v1231_v59  ;;  %v9080_v33 = vcombine.high %v1224_v28, %v1232_v29  ;;  %v305_v20 = vld [vmem:[%s9743_s10 + $0x150] sm:$0xff] }
 0x152   : > { %6683 = vmatpush1.bf16.msra.mxu0 %v8965_v41  ;;  %6847 = vmatpush1.bf16.msra.mxu1 %v8967_v53  ;;  %v9077_v41 = vcombine.low %v1223_v27, %v1231_v59  ;;  %v9079_v53 = vcombine.low %v1224_v28, %v1232_v29  ;;  %v313_v59 = vld [vmem:[%s9743_s10 + $0x190] sm:$0xff]  ;;  %v314_v29 = vld [vmem:[%s9743_s10 + $0x198] sm:$0xff] }
 0x153   : > { %6684 = vmatprep.subr.bf16.mxu0 %v8982_v42  ;;  %6848 = vmatprep.subr.bf16.mxu1 %v8984_v44  ;;  %v9094_v42 = vcombine.high %v1239_v36, %v1247_v37  ;;  %v9096_v44 = vcombine.high %v1240_v38, %v1248_v39  ;;  %v321_v28 = vld [vmem:[%s9743_s10 + $0x1d0] sm:$0xff] }
 0x156   : > { %6685 = vmatpush1.bf16.msra.mxu0 %v8981_v49  ;;  %6849 = vmatpush1.bf16.msra.mxu1 %v8983_v50  ;;  %v9093_v49 = vcombine.low %v1239_v36, %v1247_v37  ;;  %v9095_v50 = vcombine.low %v1240_v38, %v1248_v39  ;;  %v329_v37 = vld [vmem:[%s9743_s10 + $0x210] sm:$0xff]  ;;  %v330_v39 = vld [vmem:[%s9743_s10 + $0x218] sm:$0xff] }
 0x157   : > { %6686 = vmatprep.subr.bf16.mxu0 %v8998_v51  ;;  %6850 = vmatprep.subr.bf16.mxu1 %v9000_v52  ;;  %v9110_v51 = vcombine.high %v1255_v45, %v1263_v46  ;;  %v9112_v52 = vcombine.high %v1256_v47, %v1264_v48  ;;  %v337_v38 = vld [vmem:[%s9743_s10 + $0x250] sm:$0xff] }
 0x15a   : > { %6687 = vmatpush1.bf16.msra.mxu0 %v8997_v58  ;;  %6851 = vmatpush1.bf16.msra.mxu1 %v8999_v60  ;;  %v9109_v58 = vcombine.low %v1255_v45, %v1263_v46  ;;  %v9111_v60 = vcombine.low %v1256_v47, %v1264_v48  ;;  %v345_v46 = vld [vmem:[%s9743_s10 + $0x290] sm:$0xff]  ;;  %v346_v48 = vld [vmem:[%s9743_s10 + $0x298] sm:$0xff] }
 0x15b   : > { %6688 = vmatprep.subr.bf16.mxu0 %v9014_v61  ;;  %6852 = vmatprep.subr.bf16.mxu1 %v9016_v62  ;;  %v9126_v61 = vcombine.high %v1271_v54, %v1279_v55  ;;  %v9128_v62 = vcombine.high %v1272_v56, %v1280_v57  ;;  %v353_v47 = vld [vmem:[%s9743_s10 + $0x2d0] sm:$0xff] }
 0x15e   : > { %6689 = vmatpush1.bf16.msra.mxu0 %v9013_v5  ;;  %6853 = vmatpush1.bf16.msra.mxu1 %v9015_v6  ;;  %v9125_v5 = vcombine.low %v1271_v54, %v1279_v55  ;;  %v9127_v6 = vcombine.low %v1272_v56, %v1280_v57  ;;  %v361_v55 = vld [vmem:[%s9743_s10 + $0x310] sm:$0xff]  ;;  %v362_v57 = vld [vmem:[%s9743_s10 + $0x318] sm:$0xff] }
 0x15f   : > { %6690 = vmatprep.subr.bf16.mxu0 %v9030_v7  ;;  %6854 = vmatprep.subr.bf16.mxu1 %v9032_v8  ;;  %v8122_v7 = vcombine.high %v265_v0, %v273_v1  ;;  %v8124_v8 = vcombine.high %v266_v3, %v274_v4  ;;  %v369_v56 = vld [vmem:[%s9743_s10 + $0x350] sm:$0xff] }
 0x162   : > { %6691 = vmatpush1.bf16.msra.mxu0 %v9029_v14  ;;  %6855 = vmatpush1.bf16.msra.mxu1 %v9031_v15  ;;  %v290_v14 = vld [vmem:[%s9743_s10 + $0xd8] sm:$0xff]  ;;  %v8121_v15 = vcombine.low %v265_v0, %v273_v1  ;;  %v377_v1 = vld [vmem:[%s9743_s10 + $0x390] sm:$0xff] }
 0x163   : > { %6692 = vmatprep.subr.bf16.mxu0 %v9046_v16  ;;  %6856 = vmatprep.subr.bf16.mxu1 %v9048_v17  ;;  %v8123_v16 = vcombine.low %v266_v3, %v274_v4  ;;  %v8138_v17 = vcombine.high %v281_v10, %v289_v11  ;;  %v8140_v18 = vcombine.high %v282_v13, %v290_v14  ;;  %v385_v3 = vld [vmem:[%s9743_s10 + $0x3d0] sm:$0xff]  ;;  %v378_v4 = vld [vmem:[%s9743_s10 + $0x398] sm:$0xff] }
 0x166   : > { %6693 = vmatpush1.bf16.msra.mxu0 %v9045_v22  ;;  %6857 = vmatpush1.bf16.msra.mxu1 %v9047_v23  ;;  %v306_v22 = vld [vmem:[%s9743_s10 + $0x158] sm:$0xff]  ;;  %v8137_v23 = vcombine.low %v281_v10, %v289_v11  ;;  %v393_v11 = vld [vmem:[%s9743_s10 + $0x410] sm:$0xff] }
 0x167   : > { %6694 = vmatprep.subr.bf16.mxu0 %v9062_v24  ;;  %6858 = vmatprep.subr.bf16.mxu1 %v9064_v26  ;;  %v8139_v24 = vcombine.low %v282_v13, %v290_v14  ;;  %v8154_v26 = vcombine.high %v297_v19, %v305_v20  ;;  %v8156_v27 = vcombine.high %v298_v21, %v306_v22  ;;  %v401_v13 = vld [vmem:[%s9743_s10 + $0x450] sm:$0xff]  ;;  %v394_v14 = vld [vmem:[%s9743_s10 + $0x418] sm:$0xff] }
 0x16a   : > { %6695 = vmatpush1.bf16.msra.mxu0 %v9061_v30  ;;  %6859 = vmatpush1.bf16.msra.mxu1 %v9063_v31  ;;  %v322_v30 = vld [vmem:[%s9743_s10 + $0x1d8] sm:$0xff]  ;;  %v8153_v31 = vcombine.low %v297_v19, %v305_v20  ;;  %v409_v20 = vld [vmem:[%s9743_s10 + $0x490] sm:$0xff] }
 0x16b   : > { %6696 = vmatprep.subr.bf16.mxu0 %v9078_v32  ;;  %6860 = vmatprep.subr.bf16.mxu1 %v9080_v33  ;;  %v8155_v32 = vcombine.low %v298_v21, %v306_v22  ;;  %v8170_v33 = vcombine.high %v313_v59, %v321_v28  ;;  %v8172_v36 = vcombine.high %v314_v29, %v322_v30  ;;  %v417_v21 = vld [vmem:[%s9743_s10 + $0x4d0] sm:$0xff]  ;;  %v410_v22 = vld [vmem:[%s9743_s10 + $0x498] sm:$0xff] }
 0x16e   : > { %6697 = vmatpush1.bf16.msra.mxu0 %v9077_v41  ;;  %6861 = vmatpush1.bf16.msra.mxu1 %v9079_v53  ;;  %v338_v41 = vld [vmem:[%s9743_s10 + $0x258] sm:$0xff]  ;;  %v8169_v53 = vcombine.low %v313_v59, %v321_v28  ;;  %v425_v28 = vld [vmem:[%s9743_s10 + $0x510] sm:$0xff] }
 0x16f   : > { %6698 = vmatprep.subr.bf16.mxu0 %v9094_v42  ;;  %6862 = vmatprep.subr.bf16.mxu1 %v9096_v44  ;;  %v8171_v42 = vcombine.low %v314_v29, %v322_v30  ;;  %v8186_v44 = vcombine.high %v329_v37, %v337_v38  ;;  %v8188_v45 = vcombine.high %v330_v39, %v338_v41  ;;  %v433_v29 = vld [vmem:[%s9743_s10 + $0x550] sm:$0xff]  ;;  %v426_v30 = vld [vmem:[%s9743_s10 + $0x518] sm:$0xff] }
 0x172   : > { %6699 = vmatpush1.bf16.msra.mxu0 %v9093_v49  ;;  %6863 = vmatpush1.bf16.msra.mxu1 %v9095_v50  ;;  %v354_v49 = vld [vmem:[%s9743_s10 + $0x2d8] sm:$0xff]  ;;  %v8185_v50 = vcombine.low %v329_v37, %v337_v38  ;;  %v441_v38 = vld [vmem:[%s9743_s10 + $0x590] sm:$0xff] }
 0x173   : > { %6700 = vmatprep.subr.bf16.mxu0 %v9110_v51  ;;  %6864 = vmatprep.subr.bf16.mxu1 %v9112_v52  ;;  %v8187_v51 = vcombine.low %v330_v39, %v338_v41  ;;  %v8202_v52 = vcombine.high %v345_v46, %v353_v47  ;;  %v8204_v54 = vcombine.high %v346_v48, %v354_v49  ;;  %v449_v39 = vld [vmem:[%s9743_s10 + $0x5d0] sm:$0xff]  ;;  %v442_v41 = vld [vmem:[%s9743_s10 + $0x598] sm:$0xff] }
 0x176   : > { %6701 = vmatpush1.bf16.msra.mxu0 %v9109_v58  ;;  %6865 = vmatpush1.bf16.msra.mxu1 %v9111_v60  ;;  %v370_v58 = vld [vmem:[%s9743_s10 + $0x358] sm:$0xff]  ;;  %v8201_v60 = vcombine.low %v345_v46, %v353_v47  ;;  %v457_v47 = vld [vmem:[%s9743_s10 + $0x610] sm:$0xff] }
 0x177   : > { %6702 = vmatprep.subr.bf16.mxu0 %v9126_v61  ;;  %6866 = vmatprep.subr.bf16.mxu1 %v9128_v62  ;;  %v8203_v61 = vcombine.low %v346_v48, %v354_v49  ;;  %v8218_v62 = vcombine.high %v361_v55, %v369_v56  ;;  %v8220_v0 = vcombine.high %v362_v57, %v370_v58  ;;  %v465_v48 = vld [vmem:[%s9743_s10 + $0x650] sm:$0xff]  ;;  %v458_v49 = vld [vmem:[%s9743_s10 + $0x618] sm:$0xff] }
 0x17a   : > { %6703 = vmatpush1.bf16.msra.mxu0 %v9125_v5  ;;  %6867 = vmatpush1.bf16.msra.mxu1 %v9127_v6  ;;  %v386_v5 = vld [vmem:[%s9743_s10 + $0x3d8] sm:$0xff]  ;;  %v8217_v6 = vcombine.low %v361_v55, %v369_v56  ;;  %v473_v56 = vld [vmem:[%s9743_s10 + $0x690] sm:$0xff] }
 0x17b   : > { %6877 = vmatprep.subr.bf16.mxu0 %v8122_v7  ;;  %7041 = vmatprep.subr.bf16.mxu1 %v8124_v8  ;;  %v8219_v7 = vcombine.low %v362_v57, %v370_v58  ;;  %v8234_v8 = vcombine.high %v377_v1, %v385_v3  ;;  %v8236_v10 = vcombine.high %v378_v4, %v386_v5  ;;  %v481_v57 = vld [vmem:[%s9743_s10 + $0x6d0] sm:$0xff]  ;;  %v474_v58 = vld [vmem:[%s9743_s10 + $0x698] sm:$0xff] }
 0x17d   : > { %6705 = vmatmul.mubr.bf16.vlgmr.msra.gmra.mrb[0].mxu0 %v10068_v12  ;;  %6869 = vmatmul.mubr.bf16.vlgmr.msra.gmra.mrb[0].mxu1 %v10068_v12 }
 0x17e   : > { %6878 = vmatpush1.bf16.msra.mxu0 %v8121_v15  ;;  %7042 = vmatpush1.bf16.msra.mxu1 %v8123_v16  ;;  %v402_v15 = vld [vmem:[%s9743_s10 + $0x458] sm:$0xff]  ;;  %v8233_v16 = vcombine.low %v377_v1, %v385_v3  ;;  %v489_v3 = vld [vmem:[%s9743_s10 + $0x710] sm:$0xff] }
 0x17f   : > { %6879 = vmatprep.subr.bf16.mxu0 %v8138_v17  ;;  %7043 = vmatprep.subr.bf16.mxu1 %v8140_v18  ;;  %v8235_v17 = vcombine.low %v378_v4, %v386_v5  ;;  %v8250_v18 = vcombine.high %v393_v11, %v401_v13  ;;  %v8252_v19 = vcombine.high %v394_v14, %v402_v15  ;;  %v497_v4 = vld [vmem:[%s9743_s10 + $0x750] sm:$0xff]  ;;  %v490_v5 = vld [vmem:[%s9743_s10 + $0x718] sm:$0xff] }
 0x180   : > { %6909 = vmatprep.mubr.bf16.mxu0 %v9797_v9  ;;  %7073 = vmatprep.mubr.bf16.mxu1 %v9797_v9 }
 0x182   : > { %6880 = vmatpush1.bf16.msra.mxu0 %v8137_v23  ;;  %7044 = vmatpush1.bf16.msra.mxu1 %v8139_v24  ;;  %v418_v23 = vld [vmem:[%s9743_s10 + $0x4d8] sm:$0xff]  ;;  %v8249_v24 = vcombine.low %v393_v11, %v401_v13  ;;  %v505_v13 = vld [vmem:[%s9743_s10 + $0x790] sm:$0xff] }
 0x183   : > { %6881 = vmatprep.subr.bf16.mxu0 %v8154_v26  ;;  %7045 = vmatprep.subr.bf16.mxu1 %v8156_v27  ;;  %v8251_v26 = vcombine.low %v394_v14, %v402_v15  ;;  %v8266_v27 = vcombine.high %v409_v20, %v417_v21  ;;  %v8268_v59 = vcombine.high %v410_v22, %v418_v23  ;;  %v513_v14 = vld [vmem:[%s9743_s10 + $0x7d0] sm:$0xff]  ;;  %v506_v15 = vld [vmem:[%s9743_s10 + $0x798] sm:$0xff] }
 0x186   : > { %6882 = vmatpush1.bf16.msra.mxu0 %v8153_v31  ;;  %7046 = vmatpush1.bf16.msra.mxu1 %v8155_v32  ;;  %v434_v31 = vld [vmem:[%s9743_s10 + $0x558] sm:$0xff]  ;;  %v8265_v32 = vcombine.low %v409_v20, %v417_v21  ;;  %v521_v21 = vld [vmem:[%s9743_s10 + $0x810] sm:$0xff] }
 0x187   : > { %6883 = vmatprep.subr.bf16.mxu0 %v8170_v33  ;;  %7047 = vmatprep.subr.bf16.mxu1 %v8172_v36  ;;  %v8267_v33 = vcombine.low %v410_v22, %v418_v23  ;;  %v8282_v36 = vcombine.high %v425_v28, %v433_v29  ;;  %v8284_v37 = vcombine.high %v426_v30, %v434_v31  ;;  %v529_v22 = vld [vmem:[%s9743_s10 + $0x850] sm:$0xff]  ;;  %v522_v23 = vld [vmem:[%s9743_s10 + $0x818] sm:$0xff] }
 0x18a   : > { %6884 = vmatpush1.bf16.msra.mxu0 %v8169_v53  ;;  %7048 = vmatpush1.bf16.msra.mxu1 %v8171_v42  ;;  %v450_v53 = vld [vmem:[%s9743_s10 + $0x5d8] sm:$0xff]  ;;  %v8281_v42 = vcombine.low %v425_v28, %v433_v29  ;;  %v537_v29 = vld [vmem:[%s9743_s10 + $0x890] sm:$0xff] }
 0x18b   : > { %6885 = vmatprep.subr.bf16.mxu0 %v8186_v44  ;;  %7049 = vmatprep.subr.bf16.mxu1 %v8188_v45  ;;  %v8283_v44 = vcombine.low %v426_v30, %v434_v31  ;;  %v8298_v45 = vcombine.high %v441_v38, %v449_v39  ;;  %v8300_v46 = vcombine.high %v442_v41, %v450_v53  ;;  %v545_v30 = vld [vmem:[%s9743_s10 + $0x8d0] sm:$0xff]  ;;  %v538_v31 = vld [vmem:[%s9743_s10 + $0x898] sm:$0xff] }
 0x18e   : > { %6886 = vmatpush1.bf16.msra.mxu0 %v8185_v50  ;;  %7050 = vmatpush1.bf16.msra.mxu1 %v8187_v51  ;;  %v466_v50 = vld [vmem:[%s9743_s10 + $0x658] sm:$0xff]  ;;  %v8297_v51 = vcombine.low %v441_v38, %v449_v39  ;;  %v553_v39 = vld [vmem:[%s9743_s10 + $0x910] sm:$0xff] }
 0x18f   : > { %6887 = vmatprep.subr.bf16.mxu0 %v8202_v52  ;;  %7051 = vmatprep.subr.bf16.mxu1 %v8204_v54  ;;  %v8299_v52 = vcombine.low %v442_v41, %v450_v53  ;;  %v8314_v54 = vcombine.high %v457_v47, %v465_v48  ;;  %v8316_v55 = vcombine.high %v458_v49, %v466_v50  ;;  %v561_v41 = vld [vmem:[%s9743_s10 + $0x950] sm:$0xff]  ;;  %v554_v53 = vld [vmem:[%s9743_s10 + $0x918] sm:$0xff] }
 0x192   : > { %6888 = vmatpush1.bf16.msra.mxu0 %v8201_v60  ;;  %7052 = vmatpush1.bf16.msra.mxu1 %v8203_v61  ;;  %v482_v60 = vld [vmem:[%s9743_s10 + $0x6d8] sm:$0xff]  ;;  %v8313_v61 = vcombine.low %v457_v47, %v465_v48  ;;  %v569_v48 = vld [vmem:[%s9743_s10 + $0x990] sm:$0xff] }
 0x193   : > { %6889 = vmatprep.subr.bf16.mxu0 %v8218_v62  ;;  %7053 = vmatprep.subr.bf16.mxu1 %v8220_v0  ;;  %v8315_v62 = vcombine.low %v458_v49, %v466_v50  ;;  %v8330_v0 = vcombine.high %v473_v56, %v481_v57  ;;  %v8332_v1 = vcombine.high %v474_v58, %v482_v60  ;;  %v577_v49 = vld [vmem:[%s9743_s10 + $0x9d0] sm:$0xff]  ;;  %v570_v50 = vld [vmem:[%s9743_s10 + $0x998] sm:$0xff] }
 0x196   : > { %6890 = vmatpush1.bf16.msra.mxu0 %v8217_v6  ;;  %7054 = vmatpush1.bf16.msra.mxu1 %v8219_v7  ;;  %v498_v6 = vld [vmem:[%s9743_s10 + $0x758] sm:$0xff]  ;;  %v8329_v7 = vcombine.low %v473_v56, %v481_v57  ;;  %v585_v57 = vld [vmem:[%s9743_s10 + $0xa10] sm:$0xff] }
 0x197   : > { %6891 = vmatprep.subr.bf16.mxu0 %v8234_v8  ;;  %7055 = vmatprep.subr.bf16.mxu1 %v8236_v10  ;;  %v8331_v8 = vcombine.low %v474_v58, %v482_v60  ;;  %v8346_v10 = vcombine.high %v489_v3, %v497_v4  ;;  %v8348_v11 = vcombine.high %v490_v5, %v498_v6  ;;  %v593_v58 = vld [vmem:[%s9743_s10 + $0xa50] sm:$0xff]  ;;  %v586_v60 = vld [vmem:[%s9743_s10 + $0xa18] sm:$0xff] }
 0x19a   : > { %6892 = vmatpush1.bf16.msra.mxu0 %v8233_v16  ;;  %7056 = vmatpush1.bf16.msra.mxu1 %v8235_v17  ;;  %v514_v16 = vld [vmem:[%s9743_s10 + $0x7d8] sm:$0xff]  ;;  %v8345_v17 = vcombine.low %v489_v3, %v497_v4  ;;  %v601_v4 = vld [vmem:[%s9743_s10 + $0xa90] sm:$0xff] }
 0x19b   : > { %6893 = vmatprep.subr.bf16.mxu0 %v8250_v18  ;;  %7057 = vmatprep.subr.bf16.mxu1 %v8252_v19  ;;  %v8347_v18 = vcombine.low %v490_v5, %v498_v6  ;;  %v8362_v19 = vcombine.high %v505_v13, %v513_v14  ;;  %v8364_v20 = vcombine.high %v506_v15, %v514_v16  ;;  %v609_v5 = vld [vmem:[%s9743_s10 + $0xad0] sm:$0xff]  ;;  %v602_v6 = vld [vmem:[%s9743_s10 + $0xa98] sm:$0xff] }
 0x19e   : > { %6894 = vmatpush1.bf16.msra.mxu0 %v8249_v24  ;;  %7058 = vmatpush1.bf16.msra.mxu1 %v8251_v26  ;;  %v530_v24 = vld [vmem:[%s9743_s10 + $0x858] sm:$0xff]  ;;  %v8361_v26 = vcombine.low %v505_v13, %v513_v14  ;;  %v617_v14 = vld [vmem:[%s9743_s10 + $0xb10] sm:$0xff] }
 0x19f   : > { %6895 = vmatprep.subr.bf16.mxu0 %v8266_v27  ;;  %7059 = vmatprep.subr.bf16.mxu1 %v8268_v59  ;;  %v8363_v27 = vcombine.low %v506_v15, %v514_v16  ;;  %v8378_v59 = vcombine.high %v521_v21, %v529_v22  ;;  %v8380_v28 = vcombine.high %v522_v23, %v530_v24  ;;  %v625_v15 = vld [vmem:[%s9743_s10 + $0xb50] sm:$0xff]  ;;  %v618_v16 = vld [vmem:[%s9743_s10 + $0xb18] sm:$0xff] }
 0x1a2   : > { %6896 = vmatpush1.bf16.msra.mxu0 %v8265_v32  ;;  %7060 = vmatpush1.bf16.msra.mxu1 %v8267_v33  ;;  %v546_v32 = vld [vmem:[%s9743_s10 + $0x8d8] sm:$0xff]  ;;  %v8377_v33 = vcombine.low %v521_v21, %v529_v22  ;;  %v633_v22 = vld [vmem:[%s9743_s10 + $0xb90] sm:$0xff] }
 0x1a3   : > { %6897 = vmatprep.subr.bf16.mxu0 %v8282_v36  ;;  %7061 = vmatprep.subr.bf16.mxu1 %v8284_v37  ;;  %v8379_v36 = vcombine.low %v522_v23, %v530_v24  ;;  %v8394_v37 = vcombine.high %v537_v29, %v545_v30  ;;  %v8396_v38 = vcombine.high %v538_v31, %v546_v32  ;;  %v641_v23 = vld [vmem:[%s9743_s10 + $0xbd0] sm:$0xff]  ;;  %v634_v24 = vld [vmem:[%s9743_s10 + $0xb98] sm:$0xff] }
 0x1a6   : > { %6898 = vmatpush1.bf16.msra.mxu0 %v8281_v42  ;;  %7062 = vmatpush1.bf16.msra.mxu1 %v8283_v44  ;;  %v562_v42 = vld [vmem:[%s9743_s10 + $0x958] sm:$0xff]  ;;  %v8393_v44 = vcombine.low %v537_v29, %v545_v30  ;;  %v649_v30 = vld [vmem:[%s9743_s10 + $0xc10] sm:$0xff] }
 0x1a7   : > { %6899 = vmatprep.subr.bf16.mxu0 %v8298_v45  ;;  %7063 = vmatprep.subr.bf16.mxu1 %v8300_v46  ;;  %v8395_v45 = vcombine.low %v538_v31, %v546_v32  ;;  %v8410_v46 = vcombine.high %v553_v39, %v561_v41  ;;  %v8412_v47 = vcombine.high %v554_v53, %v562_v42  ;;  %v657_v31 = vld [vmem:[%s9743_s10 + $0xc50] sm:$0xff]  ;;  %v650_v32 = vld [vmem:[%s9743_s10 + $0xc18] sm:$0xff] }
 0x1aa   : > { %6900 = vmatpush1.bf16.msra.mxu0 %v8297_v51  ;;  %7064 = vmatpush1.bf16.msra.mxu1 %v8299_v52  ;;  %v578_v51 = vld [vmem:[%s9743_s10 + $0x9d8] sm:$0xff]  ;;  %v8409_v52 = vcombine.low %v553_v39, %v561_v41  ;;  %v665_v41 = vld [vmem:[%s9743_s10 + $0xc90] sm:$0xff] }
 0x1ab   : > { %6901 = vmatprep.subr.bf16.mxu0 %v8314_v54  ;;  %7065 = vmatprep.subr.bf16.mxu1 %v8316_v55  ;;  %v8411_v54 = vcombine.low %v554_v53, %v562_v42  ;;  %v8426_v55 = vcombine.high %v569_v48, %v577_v49  ;;  %v8428_v56 = vcombine.high %v570_v50, %v578_v51  ;;  %v673_v53 = vld [vmem:[%s9743_s10 + $0xcd0] sm:$0xff]  ;;  %v666_v42 = vld [vmem:[%s9743_s10 + $0xc98] sm:$0xff] }
 0x1ae   : > { %6902 = vmatpush1.bf16.msra.mxu0 %v8313_v61  ;;  %7066 = vmatpush1.bf16.msra.mxu1 %v8315_v62  ;;  %v594_v61 = vld [vmem:[%s9743_s10 + $0xa58] sm:$0xff]  ;;  %v8425_v62 = vcombine.low %v569_v48, %v577_v49  ;;  %v681_v49 = vld [vmem:[%s9743_s10 + $0xd10] sm:$0xff] }
 0x1af   : > { %6903 = vmatprep.subr.bf16.mxu0 %v8330_v0  ;;  %7067 = vmatprep.subr.bf16.mxu1 %v8332_v1  ;;  %v8427_v0 = vcombine.low %v570_v50, %v578_v51  ;;  %v8442_v1 = vcombine.high %v585_v57, %v593_v58  ;;  %v8444_v3 = vcombine.high %v586_v60, %v594_v61  ;;  %v689_v50 = vld [vmem:[%s9743_s10 + $0xd50] sm:$0xff]  ;;  %v682_v51 = vld [vmem:[%s9743_s10 + $0xd18] sm:$0xff] }
 0x1b2   : > { %6904 = vmatpush1.bf16.msra.mxu0 %v8329_v7  ;;  %7068 = vmatpush1.bf16.msra.mxu1 %v8331_v8  ;;  %v610_v7 = vld [vmem:[%s9743_s10 + $0xad8] sm:$0xff]  ;;  %v8441_v8 = vcombine.low %v585_v57, %v593_v58  ;;  %v697_v58 = vld [vmem:[%s9743_s10 + $0xd90] sm:$0xff] }
 0x1b3   : > { %6905 = vmatprep.subr.bf16.mxu0 %v8346_v10  ;;  %7069 = vmatprep.subr.bf16.mxu1 %v8348_v11  ;;  %v8443_v10 = vcombine.low %v586_v60, %v594_v61  ;;  %v8458_v11 = vcombine.high %v601_v4, %v609_v5  ;;  %v8460_v13 = vcombine.high %v602_v6, %v610_v7  ;;  %v705_v60 = vld [vmem:[%s9743_s10 + $0xdd0] sm:$0xff]  ;;  %v698_v61 = vld [vmem:[%s9743_s10 + $0xd98] sm:$0xff] }
 0x1b6   : > { %6906 = vmatpush1.bf16.msra.mxu0 %v8345_v17  ;;  %7070 = vmatpush1.bf16.msra.mxu1 %v8347_v18  ;;  %v626_v17 = vld [vmem:[%s9743_s10 + $0xb58] sm:$0xff]  ;;  %v8457_v18 = vcombine.low %v601_v4, %v609_v5  ;;  %v713_v5 = vld [vmem:[%s9743_s10 + $0xe10] sm:$0xff] }
 0x1b7   : > { %6907 = vmatprep.subr.bf16.mxu0 %v8362_v19  ;;  %7071 = vmatprep.subr.bf16.mxu1 %v8364_v20  ;;  %v8459_v19 = vcombine.low %v602_v6, %v610_v7  ;;  %v8474_v20 = vcombine.high %v617_v14, %v625_v15  ;;  %v8476_v21 = vcombine.high %v618_v16, %v626_v17  ;;  %v721_v6 = vld [vmem:[%s9743_s10 + $0xe50] sm:$0xff]  ;;  %v714_v7 = vld [vmem:[%s9743_s10 + $0xe18] sm:$0xff] }
 0x1ba   : > { %6908 = vmatpush1.bf16.msra.mxu0 %v8361_v26  ;;  %7072 = vmatpush1.bf16.msra.mxu1 %v8363_v27  ;;  %v642_v26 = vld [vmem:[%s9743_s10 + $0xbd8] sm:$0xff]  ;;  %v8473_v27 = vcombine.low %v617_v14, %v625_v15  ;;  %v729_v15 = vld [vmem:[%s9743_s10 + $0xe90] sm:$0xff] }
 0x1bb   : > { %6918 = vmatprep.subr.bf16.mxu0 %v8378_v59  ;;  %7082 = vmatprep.subr.bf16.mxu1 %v8380_v28  ;;  %v8475_v59 = vcombine.low %v618_v16, %v626_v17  ;;  %v8490_v28 = vcombine.high %v633_v22, %v641_v23  ;;  %v8492_v29 = vcombine.high %v634_v24, %v642_v26  ;;  %v737_v16 = vld [vmem:[%s9743_s10 + $0xed0] sm:$0xff]  ;;  %v730_v17 = vld [vmem:[%s9743_s10 + $0xe98] sm:$0xff] }
 0x1bd   : > { %6910 = vmatmul.mubr.bf16.vlgmr.msra.gmra.mrb[4].mxu0 %v9842_v25  ;;  %7074 = vmatmul.mubr.bf16.vlgmr.msra.gmra.mrb[4].mxu1 %v9842_v25 }
 0x1be   : > { %6919 = vmatpush1.bf16.msra.mxu0 %v8377_v33  ;;  %7083 = vmatpush1.bf16.msra.mxu1 %v8379_v36  ;;  %v658_v33 = vld [vmem:[%s9743_s10 + $0xc58] sm:$0xff]  ;;  %v8489_v36 = vcombine.low %v633_v22, %v641_v23  ;;  %v745_v23 = vld [vmem:[%s9743_s10 + $0xf10] sm:$0xff] }
 0x1bf   : > { %6920 = vmatprep.subr.bf16.mxu0 %v8394_v37  ;;  %7084 = vmatprep.subr.bf16.mxu1 %v8396_v38  ;;  %v8491_v37 = vcombine.low %v634_v24, %v642_v26  ;;  %v8506_v38 = vcombine.high %v649_v30, %v657_v31  ;;  %v8508_v39 = vcombine.high %v650_v32, %v658_v33  ;;  %v753_v24 = vld [vmem:[%s9743_s10 + $0xf50] sm:$0xff]  ;;  %v746_v26 = vld [vmem:[%s9743_s10 + $0xf18] sm:$0xff] }
 0x1c0   : > { %6950 = vmatprep.mubr.bf16.mxu0 %v9850_v63  ;;  %7114 = vmatprep.mubr.bf16.mxu1 %v9850_v63 }
 0x1c2   : > { %6921 = vmatpush1.bf16.msra.mxu0 %v8393_v44  ;;  %7085 = vmatpush1.bf16.msra.mxu1 %v8395_v45  ;;  %v674_v44 = vld [vmem:[%s9743_s10 + $0xcd8] sm:$0xff]  ;;  %v8505_v45 = vcombine.low %v649_v30, %v657_v31  ;;  %v761_v31 = vld [vmem:[%s9743_s10 + $0xf90] sm:$0xff] }
 0x1c3   : > { %6922 = vmatprep.subr.bf16.mxu0 %v8410_v46  ;;  %7086 = vmatprep.subr.bf16.mxu1 %v8412_v47  ;;  %v8507_v46 = vcombine.low %v650_v32, %v658_v33  ;;  %v8522_v47 = vcombine.high %v665_v41, %v673_v53  ;;  %v8524_v48 = vcombine.high %v666_v42, %v674_v44  ;;  %v769_v32 = vld [vmem:[%s9743_s10 + $0xfd0] sm:$0xff]  ;;  %v762_v33 = vld [vmem:[%s9743_s10 + $0xf98] sm:$0xff] }
 0x1c6   : > { %6923 = vmatpush1.bf16.msra.mxu0 %v8409_v52  ;;  %7087 = vmatpush1.bf16.msra.mxu1 %v8411_v54  ;;  %v690_v52 = vld [vmem:[%s9743_s10 + $0xd58] sm:$0xff]  ;;  %v8521_v54 = vcombine.low %v665_v41, %v673_v53  ;;  %v777_v53 = vld [vmem:[%s9743_s10 + $0x1010] sm:$0xff] }
 0x1c7   : > { %6924 = vmatprep.subr.bf16.mxu0 %v8426_v55  ;;  %7088 = vmatprep.subr.bf16.mxu1 %v8428_v56  ;;  %v8523_v55 = vcombine.low %v666_v42, %v674_v44  ;;  %v8538_v56 = vcombine.high %v681_v49, %v689_v50  ;;  %v8540_v57 = vcombine.high %v682_v51, %v690_v52  ;;  %v785_v42 = vld [vmem:[%s9743_s10 + $0x1050] sm:$0xff]  ;;  %v778_v44 = vld [vmem:[%s9743_s10 + $0x1018] sm:$0xff] }
 0x1ca   : > { %6925 = vmatpush1.bf16.msra.mxu0 %v8425_v62  ;;  %7089 = vmatpush1.bf16.msra.mxu1 %v8427_v0  ;;  %v706_v62 = vld [vmem:[%s9743_s10 + $0xdd8] sm:$0xff]  ;;  %v8537_v0 = vcombine.low %v681_v49, %v689_v50  ;;  %v793_v50 = vld [vmem:[%s9743_s10 + $0x1090] sm:$0xff] }
 0x1cb   : > { %6926 = vmatprep.subr.bf16.mxu0 %v8442_v1  ;;  %7090 = vmatprep.subr.bf16.mxu1 %v8444_v3  ;;  %v8539_v1 = vcombine.low %v682_v51, %v690_v52  ;;  %v8554_v3 = vcombine.high %v697_v58, %v705_v60  ;;  %v8556_v4 = vcombine.high %v698_v61, %v706_v62  ;;  %v801_v51 = vld [vmem:[%s9743_s10 + $0x10d0] sm:$0xff]  ;;  %v794_v52 = vld [vmem:[%s9743_s10 + $0x1098] sm:$0xff] }
 0x1ce   : > { %6927 = vmatpush1.bf16.msra.mxu0 %v8441_v8  ;;  %7091 = vmatpush1.bf16.msra.mxu1 %v8443_v10  ;;  %v722_v8 = vld [vmem:[%s9743_s10 + $0xe58] sm:$0xff]  ;;  %v8553_v10 = vcombine.low %v697_v58, %v705_v60  ;;  %v809_v60 = vld [vmem:[%s9743_s10 + $0x1110] sm:$0xff] }
 0x1cf   : > { %6928 = vmatprep.subr.bf16.mxu0 %v8458_v11  ;;  %7092 = vmatprep.subr.bf16.mxu1 %v8460_v13  ;;  %v8555_v11 = vcombine.low %v698_v61, %v706_v62  ;;  %v8570_v13 = vcombine.high %v713_v5, %v721_v6  ;;  %v8572_v14 = vcombine.high %v714_v7, %v722_v8  ;;  %v817_v61 = vld [vmem:[%s9743_s10 + $0x1150] sm:$0xff]  ;;  %v810_v62 = vld [vmem:[%s9743_s10 + $0x1118] sm:$0xff] }
 0x1d2   : > { %6929 = vmatpush1.bf16.msra.mxu0 %v8457_v18  ;;  %7093 = vmatpush1.bf16.msra.mxu1 %v8459_v19  ;;  %v738_v18 = vld [vmem:[%s9743_s10 + $0xed8] sm:$0xff]  ;;  %v8569_v19 = vcombine.low %v713_v5, %v721_v6  ;;  %v825_v6 = vld [vmem:[%s9743_s10 + $0x1190] sm:$0xff] }
 0x1d3   : > { %6930 = vmatprep.subr.bf16.mxu0 %v8474_v20  ;;  %7094 = vmatprep.subr.bf16.mxu1 %v8476_v21  ;;  %v8571_v20 = vcombine.low %v714_v7, %v722_v8  ;;  %v8586_v21 = vcombine.high %v729_v15, %v737_v16  ;;  %v8588_v22 = vcombine.high %v730_v17, %v738_v18  ;;  %v833_v7 = vld [vmem:[%s9743_s10 + $0x11d0] sm:$0xff]  ;;  %v826_v8 = vld [vmem:[%s9743_s10 + $0x1198] sm:$0xff] }
 0x1d6   : > { %6931 = vmatpush1.bf16.msra.mxu0 %v8473_v27  ;;  %7095 = vmatpush1.bf16.msra.mxu1 %v8475_v59  ;;  %v754_v27 = vld [vmem:[%s9743_s10 + $0xf58] sm:$0xff]  ;;  %v8585_v59 = vcombine.low %v729_v15, %v737_v16  ;;  %v841_v16 = vld [vmem:[%s9743_s10 + $0x1210] sm:$0xff] }
 0x1d7   : > { %6932 = vmatprep.subr.bf16.mxu0 %v8490_v28  ;;  %7096 = vmatprep.subr.bf16.mxu1 %v8492_v29  ;;  %v8587_v28 = vcombine.low %v730_v17, %v738_v18  ;;  %v8602_v29 = vcombine.high %v745_v23, %v753_v24  ;;  %v8604_v30 = vcombine.high %v746_v26, %v754_v27  ;;  %v849_v17 = vld [vmem:[%s9743_s10 + $0x1250] sm:$0xff]  ;;  %v842_v18 = vld [vmem:[%s9743_s10 + $0x1218] sm:$0xff] }
 0x1da   : > { %6933 = vmatpush1.bf16.msra.mxu0 %v8489_v36  ;;  %7097 = vmatpush1.bf16.msra.mxu1 %v8491_v37  ;;  %v770_v36 = vld [vmem:[%s9743_s10 + $0xfd8] sm:$0xff]  ;;  %v8601_v37 = vcombine.low %v745_v23, %v753_v24  ;;  %v857_v24 = vld [vmem:[%s9743_s10 + $0x1290] sm:$0xff] }
 0x1db   : > { %6934 = vmatprep.subr.bf16.mxu0 %v8506_v38  ;;  %7098 = vmatprep.subr.bf16.mxu1 %v8508_v39  ;;  %v8603_v38 = vcombine.low %v746_v26, %v754_v27  ;;  %v8618_v39 = vcombine.high %v761_v31, %v769_v32  ;;  %v8620_v41 = vcombine.high %v762_v33, %v770_v36  ;;  %v865_v26 = vld [vmem:[%s9743_s10 + $0x12d0] sm:$0xff]  ;;  %v858_v27 = vld [vmem:[%s9743_s10 + $0x1298] sm:$0xff] }
 0x1de   : > { %6935 = vmatpush1.bf16.msra.mxu0 %v8505_v45  ;;  %7099 = vmatpush1.bf16.msra.mxu1 %v8507_v46  ;;  %v786_v45 = vld [vmem:[%s9743_s10 + $0x1058] sm:$0xff]  ;;  %v8617_v46 = vcombine.low %v761_v31, %v769_v32  ;;  %v873_v32 = vld [vmem:[%s9743_s10 + $0x1310] sm:$0xff] }
 0x1df   : > { %6936 = vmatprep.subr.bf16.mxu0 %v8522_v47  ;;  %7100 = vmatprep.subr.bf16.mxu1 %v8524_v48  ;;  %v8619_v47 = vcombine.low %v762_v33, %v770_v36  ;;  %v8634_v48 = vcombine.high %v777_v53, %v785_v42  ;;  %v8636_v49 = vcombine.high %v778_v44, %v786_v45  ;;  %v881_v33 = vld [vmem:[%s9743_s10 + $0x1350] sm:$0xff]  ;;  %v874_v36 = vld [vmem:[%s9743_s10 + $0x1318] sm:$0xff] }
 0x1e2   : > { %6937 = vmatpush1.bf16.msra.mxu0 %v8521_v54  ;;  %7101 = vmatpush1.bf16.msra.mxu1 %v8523_v55  ;;  %v802_v54 = vld [vmem:[%s9743_s10 + $0x10d8] sm:$0xff]  ;;  %v8633_v55 = vcombine.low %v777_v53, %v785_v42  ;;  %v889_v42 = vld [vmem:[%s9743_s10 + $0x1390] sm:$0xff] }
 0x1e3   : > { %6938 = vmatprep.subr.bf16.mxu0 %v8538_v56  ;;  %7102 = vmatprep.subr.bf16.mxu1 %v8540_v57  ;;  %v8635_v56 = vcombine.low %v778_v44, %v786_v45  ;;  %v8650_v57 = vcombine.high %v793_v50, %v801_v51  ;;  %v8652_v58 = vcombine.high %v794_v52, %v802_v54  ;;  %v897_v44 = vld [vmem:[%s9743_s10 + $0x13d0] sm:$0xff]  ;;  %v890_v45 = vld [vmem:[%s9743_s10 + $0x1398] sm:$0xff] }
 0x1e6   : > { %6939 = vmatpush1.bf16.msra.mxu0 %v8537_v0  ;;  %7103 = vmatpush1.bf16.msra.mxu1 %v8539_v1  ;;  %v818_v0 = vld [vmem:[%s9743_s10 + $0x1158] sm:$0xff]  ;;  %v8649_v1 = vcombine.low %v793_v50, %v801_v51  ;;  %v905_v51 = vld [vmem:[%s9743_s10 + $0x1410] sm:$0xff] }
 0x1e7   : > { %6940 = vmatprep.subr.bf16.mxu0 %v8554_v3  ;;  %7104 = vmatprep.subr.bf16.mxu1 %v8556_v4  ;;  %v8651_v3 = vcombine.low %v794_v52, %v802_v54  ;;  %v8666_v4 = vcombine.high %v809_v60, %v817_v61  ;;  %v8668_v5 = vcombine.high %v810_v62, %v818_v0  ;;  %v913_v52 = vld [vmem:[%s9743_s10 + $0x1450] sm:$0xff]  ;;  %v906_v54 = vld [vmem:[%s9743_s10 + $0x1418] sm:$0xff] }
 0x1ea   : > { %6941 = vmatpush1.bf16.msra.mxu0 %v8553_v10  ;;  %7105 = vmatpush1.bf16.msra.mxu1 %v8555_v11  ;;  %v834_v10 = vld [vmem:[%s9743_s10 + $0x11d8] sm:$0xff]  ;;  %v8665_v11 = vcombine.low %v809_v60, %v817_v61  ;;  %v921_v61 = vld [vmem:[%s9743_s10 + $0x1490] sm:$0xff] }
 0x1eb   : > { %6942 = vmatprep.subr.bf16.mxu0 %v8570_v13  ;;  %7106 = vmatprep.subr.bf16.mxu1 %v8572_v14  ;;  %v8667_v13 = vcombine.low %v810_v62, %v818_v0  ;;  %v8682_v14 = vcombine.high %v825_v6, %v833_v7  ;;  %v8684_v15 = vcombine.high %v826_v8, %v834_v10  ;;  %v929_v62 = vld [vmem:[%s9743_s10 + $0x14d0] sm:$0xff]  ;;  %v922_v0 = vld [vmem:[%s9743_s10 + $0x1498] sm:$0xff] }
 0x1ee   : > { %6943 = vmatpush1.bf16.msra.mxu0 %v8569_v19  ;;  %7107 = vmatpush1.bf16.msra.mxu1 %v8571_v20  ;;  %v850_v19 = vld [vmem:[%s9743_s10 + $0x1258] sm:$0xff]  ;;  %v8681_v20 = vcombine.low %v825_v6, %v833_v7  ;;  %v937_v7 = vld [vmem:[%s9743_s10 + $0x1510] sm:$0xff] }
 0x1ef   : > { %6944 = vmatprep.subr.bf16.mxu0 %v8586_v21  ;;  %7108 = vmatprep.subr.bf16.mxu1 %v8588_v22  ;;  %v8683_v21 = vcombine.low %v826_v8, %v834_v10  ;;  %v8698_v22 = vcombine.high %v841_v16, %v849_v17  ;;  %v8700_v23 = vcombine.high %v842_v18, %v850_v19  ;;  %v945_v8 = vld [vmem:[%s9743_s10 + $0x1550] sm:$0xff]  ;;  %v938_v10 = vld [vmem:[%s9743_s10 + $0x1518] sm:$0xff] }
 0x1f2   : > { %6945 = vmatpush1.bf16.msra.mxu0 %v8585_v59  ;;  %7109 = vmatpush1.bf16.msra.mxu1 %v8587_v28  ;;  %v866_v59 = vld [vmem:[%s9743_s10 + $0x12d8] sm:$0xff]  ;;  %v8697_v28 = vcombine.low %v841_v16, %v849_v17  ;;  %v953_v17 = vld [vmem:[%s9743_s10 + $0x1590] sm:$0xff] }
 0x1f3   : > { %6946 = vmatprep.subr.bf16.mxu0 %v8602_v29  ;;  %7110 = vmatprep.subr.bf16.mxu1 %v8604_v30  ;;  %v8699_v29 = vcombine.low %v842_v18, %v850_v19  ;;  %v8714_v30 = vcombine.high %v857_v24, %v865_v26  ;;  %v8716_v31 = vcombine.high %v858_v27, %v866_v59  ;;  %v961_v18 = vld [vmem:[%s9743_s10 + $0x15d0] sm:$0xff]  ;;  %v954_v19 = vld [vmem:[%s9743_s10 + $0x1598] sm:$0xff] }
 0x1f6   : > { %6947 = vmatpush1.bf16.msra.mxu0 %v8601_v37  ;;  %7111 = vmatpush1.bf16.msra.mxu1 %v8603_v38  ;;  %v882_v37 = vld [vmem:[%s9743_s10 + $0x1358] sm:$0xff]  ;;  %v8713_v38 = vcombine.low %v857_v24, %v865_v26  ;;  %v969_v26 = vld [vmem:[%s9743_s10 + $0x1610] sm:$0xff] }
 0x1f7   : > { %6948 = vmatprep.subr.bf16.mxu0 %v8618_v39  ;;  %7112 = vmatprep.subr.bf16.mxu1 %v8620_v41  ;;  %v8715_v39 = vcombine.low %v858_v27, %v866_v59  ;;  %v8730_v41 = vcombine.high %v873_v32, %v881_v33  ;;  %v8732_v53 = vcombine.high %v874_v36, %v882_v37  ;;  %v977_v27 = vld [vmem:[%s9743_s10 + $0x1650] sm:$0xff]  ;;  %v970_v59 = vld [vmem:[%s9743_s10 + $0x1618] sm:$0xff] }
 0x1fa   : > { %6949 = vmatpush1.bf16.msra.mxu0 %v8617_v46  ;;  %7113 = vmatpush1.bf16.msra.mxu1 %v8619_v47  ;;  %v898_v46 = vld [vmem:[%s9743_s10 + $0x13d8] sm:$0xff]  ;;  %v8729_v47 = vcombine.low %v873_v32, %v881_v33  ;;  %v985_v33 = vld [vmem:[%s9743_s10 + $0x1690] sm:$0xff] }
 0x1fb   : > { %6959 = vmatprep.subr.bf16.mxu0 %v8634_v48  ;;  %7123 = vmatprep.subr.bf16.mxu1 %v8636_v49  ;;  %v8731_v48 = vcombine.low %v874_v36, %v882_v37  ;;  %v8746_v49 = vcombine.high %v889_v42, %v897_v44  ;;  %v8748_v50 = vcombine.high %v890_v45, %v898_v46  ;;  %v993_v36 = vld [vmem:[%s9743_s10 + $0x16d0] sm:$0xff]  ;;  %v986_v37 = vld [vmem:[%s9743_s10 + $0x1698] sm:$0xff] }
 0x1fd   : > { %6951 = vmatmul.mubr.bf16.vlgmr.msra.gmra.mrb[4].mxu0 %v9924_v40  ;;  %7115 = vmatmul.mubr.bf16.vlgmr.msra.gmra.mrb[4].mxu1 %v9924_v40 }
 0x1fe   : > { %6960 = vmatpush1.bf16.msra.mxu0 %v8633_v55  ;;  %7124 = vmatpush1.bf16.msra.mxu1 %v8635_v56  ;;  %v914_v55 = vld [vmem:[%s9743_s10 + $0x1458] sm:$0xff]  ;;  %v8745_v56 = vcombine.low %v889_v42, %v897_v44  ;;  %v1001_v44 = vld [vmem:[%s9743_s10 + $0x1710] sm:$0xff] }
 0x1ff   : > { %6961 = vmatprep.subr.bf16.mxu0 %v8650_v57  ;;  %7125 = vmatprep.subr.bf16.mxu1 %v8652_v58  ;;  %v8747_v57 = vcombine.low %v890_v45, %v898_v46  ;;  %v8762_v58 = vcombine.high %v905_v51, %v913_v52  ;;  %v8764_v60 = vcombine.high %v906_v54, %v914_v55  ;;  %v1009_v45 = vld [vmem:[%s9743_s10 + $0x1750] sm:$0xff]  ;;  %v1002_v46 = vld [vmem:[%s9743_s10 + $0x1718] sm:$0xff] }
 0x200   : > { %6991 = vmatprep.mubr.bf16.mxu0 %v9853_v34  ;;  %7155 = vmatprep.mubr.bf16.mxu1 %v9853_v34 }
 0x202   : > { %6962 = vmatpush1.bf16.msra.mxu0 %v8649_v1  ;;  %7126 = vmatpush1.bf16.msra.mxu1 %v8651_v3  ;;  %v930_v1 = vld [vmem:[%s9743_s10 + $0x14d8] sm:$0xff]  ;;  %v8761_v3 = vcombine.low %v905_v51, %v913_v52  ;;  %v1017_v52 = vld [vmem:[%s9743_s10 + $0x1790] sm:$0xff] }
 0x203   : > { %6963 = vmatprep.subr.bf16.mxu0 %v8666_v4  ;;  %7127 = vmatprep.subr.bf16.mxu1 %v8668_v5  ;;  %v8763_v4 = vcombine.low %v906_v54, %v914_v55  ;;  %v8778_v5 = vcombine.high %v921_v61, %v929_v62  ;;  %v8780_v6 = vcombine.high %v922_v0, %v930_v1  ;;  %v1025_v54 = vld [vmem:[%s9743_s10 + $0x17d0] sm:$0xff]  ;;  %v1018_v55 = vld [vmem:[%s9743_s10 + $0x1798] sm:$0xff] }
 0x206   : > { %6964 = vmatpush1.bf16.msra.mxu0 %v8665_v11  ;;  %7128 = vmatpush1.bf16.msra.mxu1 %v8667_v13  ;;  %v946_v11 = vld [vmem:[%s9743_s10 + $0x1558] sm:$0xff]  ;;  %v8777_v13 = vcombine.low %v921_v61, %v929_v62  ;;  %v1033_v62 = vld [vmem:[%s9743_s10 + $0x1810] sm:$0xff] }
 0x207   : > { %6965 = vmatprep.subr.bf16.mxu0 %v8682_v14  ;;  %7129 = vmatprep.subr.bf16.mxu1 %v8684_v15  ;;  %v8779_v14 = vcombine.low %v922_v0, %v930_v1  ;;  %v8794_v15 = vcombine.high %v937_v7, %v945_v8  ;;  %v8796_v16 = vcombine.high %v938_v10, %v946_v11  ;;  %v1041_v0 = vld [vmem:[%s9743_s10 + $0x1850] sm:$0xff]  ;;  %v1034_v1 = vld [vmem:[%s9743_s10 + $0x1818] sm:$0xff] }
 0x20a   : > { %6966 = vmatpush1.bf16.msra.mxu0 %v8681_v20  ;;  %7130 = vmatpush1.bf16.msra.mxu1 %v8683_v21  ;;  %v962_v20 = vld [vmem:[%s9743_s10 + $0x15d8] sm:$0xff]  ;;  %v8793_v21 = vcombine.low %v937_v7, %v945_v8  ;;  %v1049_v8 = vld [vmem:[%s9743_s10 + $0x1890] sm:$0xff] }
 0x20b   : > { %6967 = vmatprep.subr.bf16.mxu0 %v8698_v22  ;;  %7131 = vmatprep.subr.bf16.mxu1 %v8700_v23  ;;  %v8795_v22 = vcombine.low %v938_v10, %v946_v11  ;;  %v8810_v23 = vcombine.high %v953_v17, %v961_v18  ;;  %v8812_v24 = vcombine.high %v954_v19, %v962_v20  ;;  %v1057_v10 = vld [vmem:[%s9743_s10 + $0x18d0] sm:$0xff]  ;;  %v1050_v11 = vld [vmem:[%s9743_s10 + $0x1898] sm:$0xff] }
 0x20e   : > { %6968 = vmatpush1.bf16.msra.mxu0 %v8697_v28  ;;  %7132 = vmatpush1.bf16.msra.mxu1 %v8699_v29  ;;  %v978_v28 = vld [vmem:[%s9743_s10 + $0x1658] sm:$0xff]  ;;  %v8809_v29 = vcombine.low %v953_v17, %v961_v18  ;;  %v1065_v18 = vld [vmem:[%s9743_s10 + $0x1910] sm:$0xff] }
 0x20f   : > { %6969 = vmatprep.subr.bf16.mxu0 %v8714_v30  ;;  %7133 = vmatprep.subr.bf16.mxu1 %v8716_v31  ;;  %v8811_v30 = vcombine.low %v954_v19, %v962_v20  ;;  %v8826_v31 = vcombine.high %v969_v26, %v977_v27  ;;  %v8828_v32 = vcombine.high %v970_v59, %v978_v28  ;;  %v1073_v19 = vld [vmem:[%s9743_s10 + $0x1950] sm:$0xff]  ;;  %v1066_v20 = vld [vmem:[%s9743_s10 + $0x1918] sm:$0xff] }
 0x212   : > { %6970 = vmatpush1.bf16.msra.mxu0 %v8713_v38  ;;  %7134 = vmatpush1.bf16.msra.mxu1 %v8715_v39  ;;  %v994_v38 = vld [vmem:[%s9743_s10 + $0x16d8] sm:$0xff]  ;;  %v8825_v39 = vcombine.low %v969_v26, %v977_v27  ;;  %v1081_v27 = vld [vmem:[%s9743_s10 + $0x1990] sm:$0xff] }
 0x213   : > { %6971 = vmatprep.subr.bf16.mxu0 %v8730_v41  ;;  %7135 = vmatprep.subr.bf16.mxu1 %v8732_v53  ;;  %v8827_v41 = vcombine.low %v970_v59, %v978_v28  ;;  %v8842_v53 = vcombine.high %v985_v33, %v993_v36  ;;  %v8844_v42 = vcombine.high %v986_v37, %v994_v38  ;;  %v1089_v59 = vld [vmem:[%s9743_s10 + $0x19d0] sm:$0xff]  ;;  %v1082_v28 = vld [vmem:[%s9743_s10 + $0x1998] sm:$0xff] }
 0x216   : > { %6972 = vmatpush1.bf16.msra.mxu0 %v8729_v47  ;;  %7136 = vmatpush1.bf16.msra.mxu1 %v8731_v48  ;;  %v1010_v47 = vld [vmem:[%s9743_s10 + $0x1758] sm:$0xff]  ;;  %v8841_v48 = vcombine.low %v985_v33, %v993_v36  ;;  %v1097_v36 = vld [vmem:[%s9743_s10 + $0x1a10] sm:$0xff] }
 0x217   : > { %6973 = vmatprep.subr.bf16.mxu0 %v8746_v49  ;;  %7137 = vmatprep.subr.bf16.mxu1 %v8748_v50  ;;  %v8843_v49 = vcombine.low %v986_v37, %v994_v38  ;;  %v8858_v50 = vcombine.high %v1001_v44, %v1009_v45  ;;  %v8860_v51 = vcombine.high %v1002_v46, %v1010_v47  ;;  %v1105_v37 = vld [vmem:[%s9743_s10 + $0x1a50] sm:$0xff]  ;;  %v1098_v38 = vld [vmem:[%s9743_s10 + $0x1a18] sm:$0xff] }
 0x21a   : > { %6974 = vmatpush1.bf16.msra.mxu0 %v8745_v56  ;;  %7138 = vmatpush1.bf16.msra.mxu1 %v8747_v57  ;;  %v1026_v56 = vld [vmem:[%s9743_s10 + $0x17d8] sm:$0xff]  ;;  %v8857_v57 = vcombine.low %v1001_v44, %v1009_v45  ;;  %v1113_v45 = vld [vmem:[%s9743_s10 + $0x1a90] sm:$0xff] }
 0x21b   : > { %6975 = vmatprep.subr.bf16.mxu0 %v8762_v58  ;;  %7139 = vmatprep.subr.bf16.mxu1 %v8764_v60  ;;  %v8859_v58 = vcombine.low %v1002_v46, %v1010_v47  ;;  %v8874_v60 = vcombine.high %v1017_v52, %v1025_v54  ;;  %v8876_v61 = vcombine.high %v1018_v55, %v1026_v56  ;;  %v1121_v46 = vld [vmem:[%s9743_s10 + $0x1ad0] sm:$0xff]  ;;  %v1293_v47 = vsub.s32 0, %v9771_v43 }
 0x21e   : > { %6976 = vmatpush1.bf16.msra.mxu0 %v8761_v3  ;;  %7140 = vmatpush1.bf16.msra.mxu1 %v8763_v4  ;;  %v1042_v3 = vld [vmem:[%s9743_s10 + $0x1858] sm:$0xff]  ;;  %v8873_v4 = vcombine.low %v1017_v52, %v1025_v54  ;;  %v1301_v52 = vsub.s32 2, %v9771_v43  ;;  %v1297_v54 = vsub.s32 1, %v9771_v43 }
 0x21f   : > { %6977 = vmatprep.subr.bf16.mxu0 %v8778_v5  ;;  %7141 = vmatprep.subr.bf16.mxu1 %v8780_v6  ;;  %v8875_v5 = vcombine.low %v1018_v55, %v1026_v56  ;;  %v8890_v6 = vcombine.high %v1033_v62, %v1041_v0  ;;  %v8892_v7 = vcombine.high %v1034_v1, %v1042_v3  ;;  %v1305_v56 = vsub.s32 3, %v9771_v43 }
 0x222   : > { %6978 = vmatpush1.bf16.msra.mxu0 %v8777_v13  ;;  %7142 = vmatpush1.bf16.msra.mxu1 %v8779_v14  ;;  %v1058_v13 = vld [vmem:[%s9743_s10 + $0x18d8] sm:$0xff]  ;;  %v8889_v14 = vcombine.low %v1033_v62, %v1041_v0  ;;  %v1129_v62 = vld [vmem:[%s9743_s10 + $0x1b10] sm:$0xff] }
 0x223   : > { %6979 = vmatprep.subr.bf16.mxu0 %v8794_v15  ;;  %7143 = vmatprep.subr.bf16.mxu1 %v8796_v16  ;;  %v8891_v15 = vcombine.low %v1034_v1, %v1042_v3  ;;  %v8906_v16 = vcombine.high %v1049_v8, %v1057_v10  ;;  %v8908_v17 = vcombine.high %v1050_v11, %v1058_v13  ;;  %v1137_v0 = vld [vmem:[%s9743_s10 + $0x1b50] sm:$0xff]  ;;  %v1130_v3 = vld [vmem:[%s9743_s10 + $0x1b18] sm:$0xff] }
 0x226   : > { %6980 = vmatpush1.bf16.msra.mxu0 %v8793_v21  ;;  %7144 = vmatpush1.bf16.msra.mxu1 %v8795_v22  ;;  %v1074_v21 = vld [vmem:[%s9743_s10 + $0x1958] sm:$0xff]  ;;  %v8905_v22 = vcombine.low %v1049_v8, %v1057_v10 }
 0x227   : > { %6981 = vmatprep.subr.bf16.mxu0 %v8810_v23  ;;  %7145 = vmatprep.subr.bf16.mxu1 %v8812_v24  ;;  %v8907_v23 = vcombine.low %v1050_v11, %v1058_v13  ;;  %v8922_v24 = vcombine.high %v1065_v18, %v1073_v19  ;;  %v8924_v26 = vcombine.high %v1066_v20, %v1074_v21 }
 0x228   : > { %v8986_v11 = vcombine.high %v1129_v62, %v1137_v0 }
 0x22a   : > { %6982 = vmatpush1.bf16.msra.mxu0 %v8809_v29  ;;  %7146 = vmatpush1.bf16.msra.mxu1 %v8811_v30  ;;  %v1090_v29 = vld [vmem:[%s9743_s10 + $0x19d8] sm:$0xff]  ;;  %v8921_v30 = vcombine.low %v1065_v18, %v1073_v19 }
 0x22b   : > { %6983 = vmatprep.subr.bf16.mxu0 %v8826_v31  ;;  %7147 = vmatprep.subr.bf16.mxu1 %v8828_v32  ;;  %v8923_v31 = vcombine.low %v1066_v20, %v1074_v21  ;;  %v8938_v32 = vcombine.high %v1081_v27, %v1089_v59  ;;  %v8940_v33 = vcombine.high %v1082_v28, %v1090_v29  ;;  %v1146_v21 = vld [vmem:[%s9743_s10 + $0x1b98] sm:$0xff] }
 0x22e   : > { %6984 = vmatpush1.bf16.msra.mxu0 %v8825_v39  ;;  %7148 = vmatpush1.bf16.msra.mxu1 %v8827_v41  ;;  %v1106_v39 = vld [vmem:[%s9743_s10 + $0x1a58] sm:$0xff]  ;;  %v8937_v41 = vcombine.low %v1081_v27, %v1089_v59  ;;  %v8985_v59 = vcombine.low %v1129_v62, %v1137_v0 }
 0x22f   : > { %6985 = vmatprep.subr.bf16.mxu0 %v8842_v53  ;;  %7149 = vmatprep.subr.bf16.mxu1 %v8844_v42  ;;  %v8939_v53 = vcombine.low %v1082_v28, %v1090_v29  ;;  %v8954_v42 = vcombine.high %v1097_v36, %v1105_v37  ;;  %v8956_v44 = vcombine.high %v1098_v38, %v1106_v39  ;;  %v1178_v0 = vld [vmem:[%s9743_s10 + $0x1c98] sm:$0xff] }
 0x230   : > { %v8955_v55 = vcombine.low %v1098_v38, %v1106_v39 }
 0x232   : > { %6986 = vmatpush1.bf16.msra.mxu0 %v8841_v48  ;;  %7150 = vmatpush1.bf16.msra.mxu1 %v8843_v49  ;;  %v1114_v48 = vld [vmem:[%s9743_s10 + $0x1a98] sm:$0xff] }
 0x233   : > { %6987 = vmatprep.subr.bf16.mxu0 %v8858_v50  ;;  %7151 = vmatprep.subr.bf16.mxu1 %v8860_v51  ;;  %v1122_v49 = vld [vmem:[%s9743_s10 + $0x1ad8] sm:$0xff]  ;;  %v8953_v50 = vcombine.low %v1097_v36, %v1105_v37  ;;  %v1287_v51 = vld [vmem:[%s10298_s7] sm:$0xff] }
 0x234   : > { %v1294_v1 = vrot.slane %v1287_v51, %v1293_v47  ;;  %v1306_v8 = vrot.slane %v1287_v51, %v1305_v56  ;;  %v8971_v10 = vcombine.low %v1114_v48, %v1122_v49 }
 0x236   : > { %6988 = vmatpush1.bf16.msra.mxu0 %v8857_v57  ;;  %7152 = vmatpush1.bf16.msra.mxu1 %v8859_v58  ;;  %v8970_v57 = vcombine.high %v1113_v45, %v1121_v46  ;;  %v9529_v58 = vmov 1983009808  }
 0x237   : > { %6989 = vmatprep.subr.bf16.mxu0 %v8874_v60  ;;  %7153 = vmatprep.subr.bf16.mxu1 %v8876_v61  ;;  %v7896_v60 = vunpack.c.l.s4 %v9529_v58  ;;  %v8972_v61 = vcombine.high %v1114_v48, %v1122_v49 }
 0x23a   : > { %6990 = vmatpush1.bf16.msra.mxu0 %v8873_v4  ;;  %7154 = vmatpush1.bf16.msra.mxu1 %v8875_v5  ;;  %v1138_v4 = vld [vmem:[%s9743_s10 + $0x1b58] sm:$0xff]  ;;  %v1302_v5 = vrot.slane %v1287_v51, %v1301_v52 }
 0x23b   : > { %7000 = vmatprep.subr.bf16.mxu0 %v8890_v6  ;;  %7164 = vmatprep.subr.bf16.mxu1 %v8892_v7  ;;  %v1298_v6 = vrot.slane %v1287_v51, %v1297_v54  ;;  %v8969_v7 = vcombine.low %v1113_v45, %v1121_v46  ;;  %v1162_v45 = vld [vmem:[%s9743_s10 + $0x1c18] sm:$0xff] }
 0x23c   : > { %v1170_v46 = vld [vmem:[%s9743_s10 + $0x1c58] sm:$0xff] }
 0x23d   : > { %6992 = vmatmul.mubr.bf16.vlgmr.msra.gmra.mrb[4].mxu0 %v9856_v35  ;;  %7156 = vmatmul.mubr.bf16.vlgmr.msra.gmra.mrb[4].mxu1 %v9856_v35  ;;  %v9020_v58 = vcombine.high %v1162_v45, %v1170_v46 }
 0x23e   : > { %7001 = vmatpush1.bf16.msra.mxu0 %v8889_v14  ;;  %7165 = vmatpush1.bf16.msra.mxu1 %v8891_v15  ;;  %v7897_v14 = vunpack.c.0.s8 %v7896_v60  ;;  %v8988_v15 = vcombine.high %v1130_v3, %v1138_v4  ;;  %v1177_v60 = vld [vmem:[%s9743_s10 + $0x1c90] sm:$0xff] }
 0x23f   : > { %7002 = vmatprep.subr.bf16.mxu0 %v8906_v16  ;;  %7166 = vmatprep.subr.bf16.mxu1 %v8908_v17  ;;  %v1145_v16 = vld [vmem:[%s9743_s10 + $0x1b90] sm:$0xff] }
 0x240   : > { %7032 = vmatprep.mubr.bf16.mxu0 %v10000_v2  ;;  %7196 = vmatprep.mubr.bf16.mxu1 %v10000_v2  ;;  %v1153_v17 = vld [vmem:[%s9743_s10 + $0x1bd0] sm:$0xff]  ;;  %v10321_v38 = vsub.s32 %v7897_v14, %v9771_v43 }
 0x241   : > { %v9001_v49 = vcombine.low %v1145_v16, %v1153_v17 }
 0x242   : > { %7003 = vmatpush1.bf16.msra.mxu0 %v8905_v22  ;;  %7167 = vmatpush1.bf16.msra.mxu1 %v8907_v23  ;;  %v1154_v22 = vld [vmem:[%s9743_s10 + $0x1bd8] sm:$0xff] }
 0x243   : > { %7004 = vmatprep.subr.bf16.mxu0 %v8922_v24  ;;  %7168 = vmatprep.subr.bf16.mxu1 %v8924_v26  ;;  %v9003_v51 = vcombine.low %v1146_v21, %v1154_v22 }
 0x246   : > { %7005 = vmatpush1.bf16.msra.mxu0 %v8921_v30  ;;  %7169 = vmatpush1.bf16.msra.mxu1 %v8923_v31 }
 0x247   : > { %7006 = vmatprep.subr.bf16.mxu0 %v8938_v32  ;;  %7170 = vmatprep.subr.bf16.mxu1 %v8940_v33  ;;  %v8987_v32 = vcombine.low %v1130_v3, %v1138_v4  ;;  %v9002_v33 = vcombine.high %v1145_v16, %v1153_v17 }
 0x24a   : > { %7007 = vmatpush1.bf16.msra.mxu0 %v8937_v41  ;;  %7171 = vmatpush1.bf16.msra.mxu1 %v8939_v53  ;;  %v9004_v41 = vcombine.high %v1146_v21, %v1154_v22  ;;  %v1161_v53 = vld [vmem:[%s9743_s10 + $0x1c10] sm:$0xff]  ;;  %v1218_v21 = vld [vmem:[%s9743_s10 + $0x1dd8] sm:$0xff] }
 0x24b   : > { %7008 = vmatprep.subr.bf16.mxu0 %v8954_v42  ;;  %7172 = vmatprep.subr.bf16.mxu1 %v8956_v44  ;;  %v1169_v42 = vld [vmem:[%s9743_s10 + $0x1c50] sm:$0xff] }
 0x24c   : > { %v9017_v3 = vcombine.low %v1161_v53, %v1169_v42 }
 0x24e   : > { %7009 = vmatpush1.bf16.msra.mxu0 %v8953_v50  ;;  %7173 = vmatpush1.bf16.msra.mxu1 %v8955_v55  ;;  %v9018_v55 = vcombine.high %v1161_v53, %v1169_v42 }
 0x24f   : > { %7010 = vmatprep.subr.bf16.mxu0 %v8970_v57  ;;  %7174 = vmatprep.subr.bf16.mxu1 %v8972_v61  ;;  %v1185_v61 = vld [vmem:[%s9743_s10 + $0x1cd0] sm:$0xff] }
 0x250   : > { %v6706_v13 = vpop.f32.mrb[0].mxu0  ;;  %v6870_v19 = vpop.f32.mrb[0].mxu1  ;;  %v9033_v14 = vcombine.low %v1177_v60, %v1185_v61 }
 0x251   : > { %v9149_v18 = vadd.f32 %v6706_v13, %v1294_v1  ;;  %v6708_v20 = vpop.f32.mrb[1].mxu0  ;;  %v9151_v23 = vadd.f32 %v6870_v19, %v1302_v5  ;;  %v6872_v26 = vpop.f32.mrb[1].mxu1  ;;  %v1186_v1 = vld [vmem:[%s9743_s10 + $0x1cd8] sm:$0xff]  ;;  %v9019_v5 = vcombine.low %v1162_v45, %v1170_v46  ;;  %v1217_v19 = vld [vmem:[%s9743_s10 + $0x1dd0] sm:$0xff] }
 0x252   : > { %v9150_v24 = vadd.f32 %v6708_v20, %v1298_v6  ;;  %v6710_v27 = vpop.f32.mrb[2].mxu0  ;;  %7011 = vmatpush1.bf16.msra.mxu0 %v8969_v7  ;;  %v9152_v29 = vadd.f32 %v6872_v26, %v1306_v8  ;;  %v6874_v30 = vpop.f32.mrb[2].mxu1  ;;  %7175 = vmatpush1.bf16.msra.mxu1 %v8971_v10  ;;  %v9034_v6 = vcombine.high %v1177_v60, %v1185_v61  ;;  %v1193_v8 = vld [vmem:[%s9743_s10 + $0x1d10] sm:$0xff]  ;;  %v1202_v13 = vld [vmem:[%s9743_s10 + $0x1d58] sm:$0xff] }
 0x253   : > { %v7861_v28 = vmax.f32 %v9149_v18, 0.0  ;;  %v6711_v31 = vpop.f32.mrb[3].mxu0  ;;  %7012 = vmatprep.subr.bf16.mxu0 %v8986_v11  ;;  %v7863_v36 = vmax.f32 %v9151_v23, 0.0  ;;  %v6875_v39 = vpop.f32.mrb[3].mxu1  ;;  %7176 = vmatprep.subr.bf16.mxu1 %v8988_v15  ;;  %v9036_v7 = vcombine.high %v1178_v0, %v1186_v1  ;;  %v1201_v10 = vld [vmem:[%s9743_s10 + $0x1d50] sm:$0xff]  ;;  %v1194_v11 = vld [vmem:[%s9743_s10 + $0x1d18] sm:$0xff]  ;;  %v9035_v15 = vcombine.low %v1178_v0, %v1186_v1 }
 0x254   : > { %v7862_v37 = vmax.f32 %v9150_v24, 0.0  ;;  %v7864_v44 = vmax.f32 %v9152_v29, 0.0  ;;  %v9050_v16 = vcombine.high %v1193_v8, %v1201_v10  ;;  %v9052_v17 = vcombine.high %v1194_v11, %v1202_v13  ;;  %v1209_v18 = vld [vmem:[%s9743_s10 + $0x1d90] sm:$0xff]  ;;  %v1210_v20 = vld [vmem:[%s9743_s10 + $0x1d98] sm:$0xff] }
 0x255   : > { %v9049_v22 = vcombine.low %v1193_v8, %v1201_v10  ;;  %v9051_v23 = vcombine.low %v1194_v11, %v1202_v13  ;;  %v9066_v24 = vcombine.high %v1209_v18, %v1217_v19  ;;  %v9068_v26 = vcombine.high %v1210_v20, %v1218_v21  ;;  %v1225_v27 = vld [vmem:[%s9743_s10 + $0x1e10] sm:$0xff]  ;;  %v1234_v29 = vld [vmem:[%s9743_s10 + $0x1e58] sm:$0xff]  ;;  %v268_v8 = vld [vmem:[%s9743_s10 + $0x28] sm:$0xff] }
 0x256   : > { %v7893_v48 = vcombine.low %v7861_v28, %v7862_v37  ;;  %7013 = vmatpush1.bf16.msra.mxu0 %v8985_v59  ;;  %v7894_v50 = vcombine.low %v7863_v36, %v7864_v44  ;;  %7177 = vmatpush1.bf16.msra.mxu1 %v8987_v32  ;;  %v1233_v59 = vld [vmem:[%s9743_s10 + $0x1e50] sm:$0xff]  ;;  %v1226_v28 = vld [vmem:[%s9743_s10 + $0x1e18] sm:$0xff]  ;;  %v9065_v30 = vcombine.low %v1209_v18, %v1217_v19  ;;  %v276_v10 = vld [vmem:[%s9743_s10 + $0x68] sm:$0xff] }
 0x257   : > { %7014 = vmatprep.subr.bf16.mxu0 %v9002_v33  ;;  %7178 = vmatprep.subr.bf16.mxu1 %v9004_v41  ;;  %v9067_v31 = vcombine.low %v1210_v20, %v1218_v21  ;;  %v9082_v32 = vcombine.high %v1225_v27, %v1233_v59  ;;  %v9084_v33 = vcombine.high %v1226_v28, %v1234_v29  ;;  %v1241_v36 = vld [vmem:[%s9743_s10 + $0x1e90] sm:$0xff]  ;;  %v1242_v39 = vld [vmem:[%s9743_s10 + $0x1e98] sm:$0xff]  ;;  %v284_v18 = vld [vmem:[%s9743_s10 + $0xa8] sm:$0xff] }
 0x258   : > { %v7901_v57 = vrot.slane %v7893_v48, %v10321_v38  ;;  %v7908_v62 = vrot.slane %v7894_v50, %v10321_v38  ;;  %v1249_v37 = vld [vmem:[%s9743_s10 + $0x1ed0] sm:$0xff]  ;;  %v1250_v41 = vld [vmem:[%s9743_s10 + $0x1ed8] sm:$0xff]  ;;  %v9081_v53 = vcombine.low %v1225_v27, %v1233_v59  ;;  %v9083_v42 = vcombine.low %v1226_v28, %v1234_v29  ;;  %v292_v19 = vld [vmem:[%s9743_s10 + $0xe8] sm:$0xff] }
 0x259   : > { %v9098_v44 = vcombine.high %v1241_v36, %v1249_v37  ;;  %v9100_v45 = vcombine.high %v1242_v39, %v1250_v41  ;;  %v1257_v46 = vld [vmem:[%s9743_s10 + $0x1f10] sm:$0xff]  ;;  %v1266_v50 = vld [vmem:[%s9743_s10 + $0x1f58] sm:$0xff]  ;;  %v8127_v21 = vcombine.low %v268_v8, %v276_v10  ;;  %v300_v27 = vld [vmem:[%s9743_s10 + $0x128] sm:$0xff]  ;;  %v8143_v29 = vcombine.low %v284_v18, %v292_v19 }
 0x25a   : > { %7015 = vmatpush1.bf16.msra.mxu0 %v9001_v49  ;;  %v7909_v4 = vcombine.low %v7901_v57, %v7908_v62  ;;  %7179 = vmatpush1.bf16.msra.mxu1 %v9003_v51  ;;  %v1265_v48 = vld [vmem:[%s9743_s10 + $0x1f50] sm:$0xff]  ;;  %v1258_v49 = vld [vmem:[%s9743_s10 + $0x1f18] sm:$0xff]  ;;  %v9097_v51 = vcombine.low %v1241_v36, %v1249_v37  ;;  %v308_v59 = vld [vmem:[%s9743_s10 + $0x168] sm:$0xff] }
 0x25b   : > { %7016 = vmatprep.subr.bf16.mxu0 %v9018_v55  ;;  %7180 = vmatprep.subr.bf16.mxu1 %v9020_v58  ;;  %v9099_v55 = vcombine.low %v1242_v39, %v1250_v41  ;;  %v9114_v57 = vcombine.high %v1257_v46, %v1265_v48  ;;  %v9116_v58 = vcombine.high %v1258_v49, %v1266_v50  ;;  %v1273_v60 = vld [vmem:[%s9743_s10 + $0x1f90] sm:$0xff]  ;;  %v1274_v62 = vld [vmem:[%s9743_s10 + $0x1f98] sm:$0xff]  ;;  %v316_v36 = vld [vmem:[%s9743_s10 + $0x1a8] sm:$0xff] }
 0x25c   : > { %7965 = vst [vmem:[%s10336_s11] sm:$0xff] %v7909_v4  ;;  %v1281_v61 = vld [vmem:[%s9743_s10 + $0x1fd0] sm:$0xff]  ;;  %v1282_v0 = vld [vmem:[%s9743_s10 + $0x1fd8] sm:$0xff]  ;;  %v9113_v1 = vcombine.low %v1257_v46, %v1265_v48  ;;  %v324_v37 = vld [vmem:[%s9743_s10 + $0x1e8] sm:$0xff]  ;;  %v8159_v41 = vcombine.low %v300_v27, %v308_v59 }
 0x25d   : > { %v9130_v4 = vcombine.high %v1273_v60, %v1281_v61  ;;  %v9129_v11 = vcombine.low %v1273_v60, %v1281_v61  ;;  %v9131_v13 = vcombine.low %v1274_v62, %v1282_v0  ;;  %v332_v46 = vld [vmem:[%s9743_s10 + $0x228] sm:$0xff] }
 0x25e   : > { %7017 = vmatpush1.bf16.msra.mxu0 %v9017_v3  ;;  %7181 = vmatpush1.bf16.msra.mxu1 %v9019_v5  ;;  %v9115_v3 = vcombine.low %v1258_v49, %v1266_v50  ;;  %v9132_v5 = vcombine.high %v1274_v62, %v1282_v0  ;;  %v340_v48 = vld [vmem:[%s9743_s10 + $0x268] sm:$0xff]  ;;  %v8175_v50 = vcombine.low %v316_v36, %v324_v37 }
 0x25f   : > { %7018 = vmatprep.subr.bf16.mxu0 %v9034_v6  ;;  %7182 = vmatprep.subr.bf16.mxu1 %v9036_v7  ;;  %v267_v6 = vld [vmem:[%s9743_s10 + $0x20] sm:$0xff]  ;;  %v348_v60 = vld [vmem:[%s9743_s10 + $0x2a8] sm:$0xff]  ;;  %v8191_v0 = vcombine.low %v332_v46, %v340_v48 }
 0x260   : > { %v275_v7 = vld [vmem:[%s9743_s10 + $0x60] sm:$0xff]  ;;  %v356_v61 = vld [vmem:[%s9743_s10 + $0x2e8] sm:$0xff] }
 0x261   : > { %v8125_v20 = vcombine.low %v267_v6, %v275_v7 }
 0x262   : > { %7019 = vmatpush1.bf16.msra.mxu0 %v9033_v14  ;;  %7183 = vmatpush1.bf16.msra.mxu1 %v9035_v15  ;;  %v8126_v14 = vcombine.high %v267_v6, %v275_v7  ;;  %v8128_v15 = vcombine.high %v268_v8, %v276_v10  ;;  %v364_v6 = vld [vmem:[%s9743_s10 + $0x328] sm:$0xff]  ;;  %v8207_v10 = vcombine.low %v348_v60, %v356_v61 }
 0x263   : > { %7020 = vmatprep.subr.bf16.mxu0 %v9050_v16  ;;  %7184 = vmatprep.subr.bf16.mxu1 %v9052_v17  ;;  %v283_v16 = vld [vmem:[%s9743_s10 + $0xa0] sm:$0xff]  ;;  %v372_v7 = vld [vmem:[%s9743_s10 + $0x368] sm:$0xff] }
 0x264   : > { %v291_v17 = vld [vmem:[%s9743_s10 + $0xe0] sm:$0xff] }
 0x265   : > { %v8141_v28 = vcombine.low %v283_v16, %v291_v17 }
 0x266   : > { %7021 = vmatpush1.bf16.msra.mxu0 %v9049_v22  ;;  %7185 = vmatpush1.bf16.msra.mxu1 %v9051_v23  ;;  %v8142_v22 = vcombine.high %v283_v16, %v291_v17  ;;  %v8144_v23 = vcombine.high %v284_v18, %v292_v19  ;;  %v380_v16 = vld [vmem:[%s9743_s10 + $0x3a8] sm:$0xff]  ;;  %v8223_v19 = vcombine.low %v364_v6, %v372_v7 }
 0x267   : > { %7022 = vmatprep.subr.bf16.mxu0 %v9066_v24  ;;  %7186 = vmatprep.subr.bf16.mxu1 %v9068_v26  ;;  %v299_v24 = vld [vmem:[%s9743_s10 + $0x120] sm:$0xff]  ;;  %v388_v17 = vld [vmem:[%s9743_s10 + $0x3e8] sm:$0xff] }
 0x268   : > { %v307_v26 = vld [vmem:[%s9743_s10 + $0x160] sm:$0xff] }
 0x269   : > { %v8157_v39 = vcombine.low %v299_v24, %v307_v26 }
 0x26a   : > { %7023 = vmatpush1.bf16.msra.mxu0 %v9065_v30  ;;  %7187 = vmatpush1.bf16.msra.mxu1 %v9067_v31  ;;  %v8158_v30 = vcombine.high %v299_v24, %v307_v26  ;;  %v8160_v31 = vcombine.high %v300_v27, %v308_v59  ;;  %v396_v24 = vld [vmem:[%s9743_s10 + $0x428] sm:$0xff]  ;;  %v8239_v59 = vcombine.low %v380_v16, %v388_v17 }
 0x26b   : > { %7024 = vmatprep.subr.bf16.mxu0 %v9082_v32  ;;  %7188 = vmatprep.subr.bf16.mxu1 %v9084_v33  ;;  %v315_v32 = vld [vmem:[%s9743_s10 + $0x1a0] sm:$0xff]  ;;  %v404_v26 = vld [vmem:[%s9743_s10 + $0x468] sm:$0xff] }
 0x26c   : > { %v323_v33 = vld [vmem:[%s9743_s10 + $0x1e0] sm:$0xff] }
 0x26d   : > { %v8173_v49 = vcombine.low %v315_v32, %v323_v33 }
 0x26e   : > { %7025 = vmatpush1.bf16.msra.mxu0 %v9081_v53  ;;  %7189 = vmatpush1.bf16.msra.mxu1 %v9083_v42  ;;  %v8174_v53 = vcombine.high %v315_v32, %v323_v33  ;;  %v8176_v42 = vcombine.high %v316_v36, %v324_v37  ;;  %v412_v32 = vld [vmem:[%s9743_s10 + $0x4a8] sm:$0xff]  ;;  %v8255_v37 = vcombine.low %v396_v24, %v404_v26 }
 0x26f   : > { %7026 = vmatprep.subr.bf16.mxu0 %v9098_v44  ;;  %7190 = vmatprep.subr.bf16.mxu1 %v9100_v45  ;;  %v331_v44 = vld [vmem:[%s9743_s10 + $0x220] sm:$0xff]  ;;  %v420_v33 = vld [vmem:[%s9743_s10 + $0x4e8] sm:$0xff] }
 0x270   : > { %v339_v45 = vld [vmem:[%s9743_s10 + $0x260] sm:$0xff] }
 0x271   : > { %v8189_v62 = vcombine.low %v331_v44, %v339_v45 }
 0x272   : > { %7027 = vmatpush1.bf16.msra.mxu0 %v9097_v51  ;;  %7191 = vmatpush1.bf16.msra.mxu1 %v9099_v55  ;;  %v8190_v51 = vcombine.high %v331_v44, %v339_v45  ;;  %v8192_v55 = vcombine.high %v332_v46, %v340_v48  ;;  %v428_v44 = vld [vmem:[%s9743_s10 + $0x528] sm:$0xff]  ;;  %v8271_v48 = vcombine.low %v412_v32, %v420_v33 }
 0x273   : > { %7028 = vmatprep.subr.bf16.mxu0 %v9114_v57  ;;  %7192 = vmatprep.subr.bf16.mxu1 %v9116_v58  ;;  %v347_v57 = vld [vmem:[%s9743_s10 + $0x2a0] sm:$0xff]  ;;  %v436_v45 = vld [vmem:[%s9743_s10 + $0x568] sm:$0xff] }
 0x274   : > { %v355_v58 = vld [vmem:[%s9743_s10 + $0x2e0] sm:$0xff] }
 0x275   : > { %v8205_v8 = vcombine.low %v347_v57, %v355_v58 }
 0x276   : > { %7029 = vmatpush1.bf16.msra.mxu0 %v9113_v1  ;;  %7193 = vmatpush1.bf16.msra.mxu1 %v9115_v3  ;;  %v8206_v1 = vcombine.high %v347_v57, %v355_v58  ;;  %v8208_v3 = vcombine.high %v348_v60, %v356_v61  ;;  %v444_v57 = vld [vmem:[%s9743_s10 + $0x5a8] sm:$0xff]  ;;  %v8287_v61 = vcombine.low %v428_v44, %v436_v45 }
 0x277   : > { %7030 = vmatprep.subr.bf16.mxu0 %v9130_v4  ;;  %7194 = vmatprep.subr.bf16.mxu1 %v9132_v5  ;;  %v363_v4 = vld [vmem:[%s9743_s10 + $0x320] sm:$0xff]  ;;  %v452_v58 = vld [vmem:[%s9743_s10 + $0x5e8] sm:$0xff] }
 0x278   : > { %v371_v5 = vld [vmem:[%s9743_s10 + $0x360] sm:$0xff] }
 0x279   : > { %v8221_v18 = vcombine.low %v363_v4, %v371_v5 }
 0x27a   : > { %7031 = vmatpush1.bf16.msra.mxu0 %v9129_v11  ;;  %7195 = vmatpush1.bf16.msra.mxu1 %v9131_v13  ;;  %v8222_v11 = vcombine.high %v363_v4, %v371_v5  ;;  %v8224_v13 = vcombine.high %v364_v6, %v372_v7  ;;  %v460_v4 = vld [vmem:[%s9743_s10 + $0x628] sm:$0xff]  ;;  %v8303_v7 = vcombine.low %v444_v57, %v452_v58 }
 0x27b   : > { %7205 = vmatprep.subr.bf16.mxu0 %v8126_v14  ;;  %7369 = vmatprep.subr.bf16.mxu1 %v8128_v15  ;;  %v379_v14 = vld [vmem:[%s9743_s10 + $0x3a0] sm:$0xff]  ;;  %v468_v5 = vld [vmem:[%s9743_s10 + $0x668] sm:$0xff] }
 0x27c   : > { %v387_v15 = vld [vmem:[%s9743_s10 + $0x3e0] sm:$0xff] }
 0x27d   : > { %7033 = vmatmul.mubr.bf16.vlgmr.msra.gmra.mrb[4].mxu0 %v10068_v12  ;;  %7197 = vmatmul.mubr.bf16.vlgmr.msra.gmra.mrb[4].mxu1 %v10068_v12  ;;  %v8237_v27 = vcombine.low %v379_v14, %v387_v15 }
 0x27e   : > { %7206 = vmatpush1.bf16.msra.mxu0 %v8125_v20  ;;  %7370 = vmatpush1.bf16.msra.mxu1 %v8127_v21  ;;  %v8238_v20 = vcombine.high %v379_v14, %v387_v15  ;;  %v8240_v21 = vcombine.high %v380_v16, %v388_v17  ;;  %v476_v14 = vld [vmem:[%s9743_s10 + $0x6a8] sm:$0xff]  ;;  %v8319_v17 = vcombine.low %v460_v4, %v468_v5 }
 0x27f   : > { %7207 = vmatprep.subr.bf16.mxu0 %v8142_v22  ;;  %7371 = vmatprep.subr.bf16.mxu1 %v8144_v23  ;;  %v395_v22 = vld [vmem:[%s9743_s10 + $0x420] sm:$0xff]  ;;  %v484_v15 = vld [vmem:[%s9743_s10 + $0x6e8] sm:$0xff] }
 0x280   : > { %7237 = vmatprep.mubr.bf16.mxu0 %v9797_v9  ;;  %7401 = vmatprep.mubr.bf16.mxu1 %v9797_v9  ;;  %v403_v23 = vld [vmem:[%s9743_s10 + $0x460] sm:$0xff] }
 0x281   : > { %v8253_v36 = vcombine.low %v395_v22, %v403_v23 }
 0x282   : > { %7208 = vmatpush1.bf16.msra.mxu0 %v8141_v28  ;;  %7372 = vmatpush1.bf16.msra.mxu1 %v8143_v29  ;;  %v8254_v28 = vcombine.high %v395_v22, %v403_v23  ;;  %v8256_v29 = vcombine.high %v396_v24, %v404_v26  ;;  %v492_v22 = vld [vmem:[%s9743_s10 + $0x728] sm:$0xff]  ;;  %v8335_v26 = vcombine.low %v476_v14, %v484_v15 }
 0x283   : > { %7209 = vmatprep.subr.bf16.mxu0 %v8158_v30  ;;  %7373 = vmatprep.subr.bf16.mxu1 %v8160_v31  ;;  %v411_v30 = vld [vmem:[%s9743_s10 + $0x4a0] sm:$0xff]  ;;  %v500_v23 = vld [vmem:[%s9743_s10 + $0x768] sm:$0xff] }
 0x284   : > { %v419_v31 = vld [vmem:[%s9743_s10 + $0x4e0] sm:$0xff] }
 0x285   : > { %v8269_v46 = vcombine.low %v411_v30, %v419_v31 }
 0x286   : > { %7210 = vmatpush1.bf16.msra.mxu0 %v8157_v39  ;;  %7374 = vmatpush1.bf16.msra.mxu1 %v8159_v41  ;;  %v8270_v39 = vcombine.high %v411_v30, %v419_v31  ;;  %v8272_v41 = vcombine.high %v412_v32, %v420_v33  ;;  %v508_v30 = vld [vmem:[%s9743_s10 + $0x7a8] sm:$0xff]  ;;  %v8351_v33 = vcombine.low %v492_v22, %v500_v23 }
 0x287   : > { %7211 = vmatprep.subr.bf16.mxu0 %v8174_v53  ;;  %7375 = vmatprep.subr.bf16.mxu1 %v8176_v42  ;;  %v427_v53 = vld [vmem:[%s9743_s10 + $0x520] sm:$0xff]  ;;  %v516_v31 = vld [vmem:[%s9743_s10 + $0x7e8] sm:$0xff] }
 0x288   : > { %v435_v42 = vld [vmem:[%s9743_s10 + $0x560] sm:$0xff] }
 0x289   : > { %v8285_v60 = vcombine.low %v427_v53, %v435_v42 }
 0x28a   : > { %7212 = vmatpush1.bf16.msra.mxu0 %v8173_v49  ;;  %7376 = vmatpush1.bf16.msra.mxu1 %v8175_v50  ;;  %v8286_v49 = vcombine.high %v427_v53, %v435_v42  ;;  %v8288_v50 = vcombine.high %v428_v44, %v436_v45  ;;  %v524_v53 = vld [vmem:[%s9743_s10 + $0x828] sm:$0xff]  ;;  %v8367_v45 = vcombine.low %v508_v30, %v516_v31 }
 0x28b   : > { %7213 = vmatprep.subr.bf16.mxu0 %v8190_v51  ;;  %7377 = vmatprep.subr.bf16.mxu1 %v8192_v55  ;;  %v443_v51 = vld [vmem:[%s9743_s10 + $0x5a0] sm:$0xff]  ;;  %v532_v42 = vld [vmem:[%s9743_s10 + $0x868] sm:$0xff] }
 0x28c   : > { %v451_v55 = vld [vmem:[%s9743_s10 + $0x5e0] sm:$0xff] }
 0x28d   : > { %v8301_v6 = vcombine.low %v443_v51, %v451_v55 }
 0x28e   : > { %7214 = vmatpush1.bf16.msra.mxu0 %v8189_v62  ;;  %7378 = vmatpush1.bf16.msra.mxu1 %v8191_v0  ;;  %v8302_v62 = vcombine.high %v443_v51, %v451_v55  ;;  %v8304_v0 = vcombine.high %v444_v57, %v452_v58  ;;  %v540_v51 = vld [vmem:[%s9743_s10 + $0x8a8] sm:$0xff]  ;;  %v8383_v58 = vcombine.low %v524_v53, %v532_v42 }
 0x28f   : > { %7215 = vmatprep.subr.bf16.mxu0 %v8206_v1  ;;  %7379 = vmatprep.subr.bf16.mxu1 %v8208_v3  ;;  %v459_v1 = vld [vmem:[%s9743_s10 + $0x620] sm:$0xff]  ;;  %v548_v55 = vld [vmem:[%s9743_s10 + $0x8e8] sm:$0xff] }
 0x290   : > { %v467_v3 = vld [vmem:[%s9743_s10 + $0x660] sm:$0xff] }
 0x291   : > { %v8317_v16 = vcombine.low %v459_v1, %v467_v3 }
 0x292   : > { %7216 = vmatpush1.bf16.msra.mxu0 %v8205_v8  ;;  %7380 = vmatpush1.bf16.msra.mxu1 %v8207_v10  ;;  %v8318_v8 = vcombine.high %v459_v1, %v467_v3  ;;  %v8320_v10 = vcombine.high %v460_v4, %v468_v5  ;;  %v556_v1 = vld [vmem:[%s9743_s10 + $0x928] sm:$0xff]  ;;  %v8399_v5 = vcombine.low %v540_v51, %v548_v55 }
 0x293   : > { %7217 = vmatprep.subr.bf16.mxu0 %v8222_v11  ;;  %7381 = vmatprep.subr.bf16.mxu1 %v8224_v13  ;;  %v475_v11 = vld [vmem:[%s9743_s10 + $0x6a0] sm:$0xff]  ;;  %v564_v3 = vld [vmem:[%s9743_s10 + $0x968] sm:$0xff] }
 0x294   : > { %v483_v13 = vld [vmem:[%s9743_s10 + $0x6e0] sm:$0xff] }
 0x295   : > { %v8333_v24 = vcombine.low %v475_v11, %v483_v13 }
 0x296   : > { %7218 = vmatpush1.bf16.msra.mxu0 %v8221_v18  ;;  %7382 = vmatpush1.bf16.msra.mxu1 %v8223_v19  ;;  %v8334_v18 = vcombine.high %v475_v11, %v483_v13  ;;  %v8336_v19 = vcombine.high %v476_v14, %v484_v15  ;;  %v572_v11 = vld [vmem:[%s9743_s10 + $0x9a8] sm:$0xff]  ;;  %v8415_v15 = vcombine.low %v556_v1, %v564_v3 }
 0x297   : > { %7219 = vmatprep.subr.bf16.mxu0 %v8238_v20  ;;  %7383 = vmatprep.subr.bf16.mxu1 %v8240_v21  ;;  %v491_v20 = vld [vmem:[%s9743_s10 + $0x720] sm:$0xff]  ;;  %v580_v13 = vld [vmem:[%s9743_s10 + $0x9e8] sm:$0xff] }
 0x298   : > { %v499_v21 = vld [vmem:[%s9743_s10 + $0x760] sm:$0xff] }
 0x299   : > { %v8349_v32 = vcombine.low %v491_v20, %v499_v21 }
 0x29a   : > { %7220 = vmatpush1.bf16.msra.mxu0 %v8237_v27  ;;  %7384 = vmatpush1.bf16.msra.mxu1 %v8239_v59  ;;  %v8350_v27 = vcombine.high %v491_v20, %v499_v21  ;;  %v8352_v59 = vcombine.high %v492_v22, %v500_v23  ;;  %v588_v20 = vld [vmem:[%s9743_s10 + $0xa28] sm:$0xff]  ;;  %v8431_v23 = vcombine.low %v572_v11, %v580_v13 }
 0x29b   : > { %7221 = vmatprep.subr.bf16.mxu0 %v8254_v28  ;;  %7385 = vmatprep.subr.bf16.mxu1 %v8256_v29  ;;  %v507_v28 = vld [vmem:[%s9743_s10 + $0x7a0] sm:$0xff]  ;;  %v596_v21 = vld [vmem:[%s9743_s10 + $0xa68] sm:$0xff] }
 0x29c   : > { %v515_v29 = vld [vmem:[%s9743_s10 + $0x7e0] sm:$0xff] }
 0x29d   : > { %v8365_v44 = vcombine.low %v507_v28, %v515_v29 }
 0x29e   : > { %7222 = vmatpush1.bf16.msra.mxu0 %v8253_v36  ;;  %7386 = vmatpush1.bf16.msra.mxu1 %v8255_v37  ;;  %v8366_v36 = vcombine.high %v507_v28, %v515_v29  ;;  %v8368_v37 = vcombine.high %v508_v30, %v516_v31  ;;  %v604_v28 = vld [vmem:[%s9743_s10 + $0xaa8] sm:$0xff]  ;;  %v8447_v31 = vcombine.low %v588_v20, %v596_v21 }
 0x29f   : > { %7223 = vmatprep.subr.bf16.mxu0 %v8270_v39  ;;  %7387 = vmatprep.subr.bf16.mxu1 %v8272_v41  ;;  %v523_v39 = vld [vmem:[%s9743_s10 + $0x820] sm:$0xff]  ;;  %v612_v29 = vld [vmem:[%s9743_s10 + $0xae8] sm:$0xff] }
 0x2a0   : > { %v531_v41 = vld [vmem:[%s9743_s10 + $0x860] sm:$0xff] }
 0x2a1   : > { %v8381_v57 = vcombine.low %v523_v39, %v531_v41 }
 0x2a2   : > { %7224 = vmatpush1.bf16.msra.mxu0 %v8269_v46  ;;  %7388 = vmatpush1.bf16.msra.mxu1 %v8271_v48  ;;  %v8382_v46 = vcombine.high %v523_v39, %v531_v41  ;;  %v8384_v48 = vcombine.high %v524_v53, %v532_v42  ;;  %v620_v39 = vld [vmem:[%s9743_s10 + $0xb28] sm:$0xff]  ;;  %v8463_v42 = vcombine.low %v604_v28, %v612_v29 }
 0x2a3   : > { %7225 = vmatprep.subr.bf16.mxu0 %v8286_v49  ;;  %7389 = vmatprep.subr.bf16.mxu1 %v8288_v50  ;;  %v539_v49 = vld [vmem:[%s9743_s10 + $0x8a0] sm:$0xff]  ;;  %v628_v41 = vld [vmem:[%s9743_s10 + $0xb68] sm:$0xff] }
 0x2a4   : > { %v547_v50 = vld [vmem:[%s9743_s10 + $0x8e0] sm:$0xff] }
 0x2a5   : > { %v8397_v4 = vcombine.low %v539_v49, %v547_v50 }
 0x2a6   : > { %7226 = vmatpush1.bf16.msra.mxu0 %v8285_v60  ;;  %7390 = vmatpush1.bf16.msra.mxu1 %v8287_v61  ;;  %v8398_v60 = vcombine.high %v539_v49, %v547_v50  ;;  %v8400_v61 = vcombine.high %v540_v51, %v548_v55  ;;  %v636_v49 = vld [vmem:[%s9743_s10 + $0xba8] sm:$0xff]  ;;  %v8479_v55 = vcombine.low %v620_v39, %v628_v41 }
 0x2a7   : > { %7227 = vmatprep.subr.bf16.mxu0 %v8302_v62  ;;  %7391 = vmatprep.subr.bf16.mxu1 %v8304_v0  ;;  %v555_v62 = vld [vmem:[%s9743_s10 + $0x920] sm:$0xff]  ;;  %v644_v50 = vld [vmem:[%s9743_s10 + $0xbe8] sm:$0xff] }
 0x2a8   : > { %v563_v0 = vld [vmem:[%s9743_s10 + $0x960] sm:$0xff] }
 0x2a9   : > { %v8413_v14 = vcombine.low %v555_v62, %v563_v0 }
 0x2aa   : > { %7228 = vmatpush1.bf16.msra.mxu0 %v8301_v6  ;;  %7392 = vmatpush1.bf16.msra.mxu1 %v8303_v7  ;;  %v8414_v6 = vcombine.high %v555_v62, %v563_v0  ;;  %v8416_v7 = vcombine.high %v556_v1, %v564_v3  ;;  %v652_v62 = vld [vmem:[%s9743_s10 + $0xc28] sm:$0xff]  ;;  %v8495_v3 = vcombine.low %v636_v49, %v644_v50 }
 0x2ab   : > { %7229 = vmatprep.subr.bf16.mxu0 %v8318_v8  ;;  %7393 = vmatprep.subr.bf16.mxu1 %v8320_v10  ;;  %v571_v8 = vld [vmem:[%s9743_s10 + $0x9a0] sm:$0xff]  ;;  %v660_v0 = vld [vmem:[%s9743_s10 + $0xc68] sm:$0xff] }
 0x2ac   : > { %v579_v10 = vld [vmem:[%s9743_s10 + $0x9e0] sm:$0xff] }
 0x2ad   : > { %v8429_v22 = vcombine.low %v571_v8, %v579_v10 }
 0x2ae   : > { %7230 = vmatpush1.bf16.msra.mxu0 %v8317_v16  ;;  %7394 = vmatpush1.bf16.msra.mxu1 %v8319_v17  ;;  %v8430_v16 = vcombine.high %v571_v8, %v579_v10  ;;  %v8432_v17 = vcombine.high %v572_v11, %v580_v13  ;;  %v668_v8 = vld [vmem:[%s9743_s10 + $0xca8] sm:$0xff]  ;;  %v8511_v13 = vcombine.low %v652_v62, %v660_v0 }
 0x2af   : > { %7231 = vmatprep.subr.bf16.mxu0 %v8334_v18  ;;  %7395 = vmatprep.subr.bf16.mxu1 %v8336_v19  ;;  %v587_v18 = vld [vmem:[%s9743_s10 + $0xa20] sm:$0xff]  ;;  %v676_v10 = vld [vmem:[%s9743_s10 + $0xce8] sm:$0xff] }
 0x2b0   : > { %v595_v19 = vld [vmem:[%s9743_s10 + $0xa60] sm:$0xff] }
 0x2b1   : > { %v8445_v30 = vcombine.low %v587_v18, %v595_v19 }
 0x2b2   : > { %7232 = vmatpush1.bf16.msra.mxu0 %v8333_v24  ;;  %7396 = vmatpush1.bf16.msra.mxu1 %v8335_v26  ;;  %v8446_v24 = vcombine.high %v587_v18, %v595_v19  ;;  %v8448_v26 = vcombine.high %v588_v20, %v596_v21  ;;  %v684_v18 = vld [vmem:[%s9743_s10 + $0xd28] sm:$0xff]  ;;  %v8527_v21 = vcombine.low %v668_v8, %v676_v10 }
 0x2b3   : > { %7233 = vmatprep.subr.bf16.mxu0 %v8350_v27  ;;  %7397 = vmatprep.subr.bf16.mxu1 %v8352_v59  ;;  %v603_v27 = vld [vmem:[%s9743_s10 + $0xaa0] sm:$0xff]  ;;  %v692_v19 = vld [vmem:[%s9743_s10 + $0xd68] sm:$0xff] }
 0x2b4   : > { %v611_v59 = vld [vmem:[%s9743_s10 + $0xae0] sm:$0xff] }
 0x2b5   : > { %v8461_v53 = vcombine.low %v603_v27, %v611_v59 }
 0x2b6   : > { %7234 = vmatpush1.bf16.msra.mxu0 %v8349_v32  ;;  %7398 = vmatpush1.bf16.msra.mxu1 %v8351_v33  ;;  %v8462_v32 = vcombine.high %v603_v27, %v611_v59  ;;  %v8464_v33 = vcombine.high %v604_v28, %v612_v29  ;;  %v700_v27 = vld [vmem:[%s9743_s10 + $0xda8] sm:$0xff]  ;;  %v8543_v29 = vcombine.low %v684_v18, %v692_v19 }
 0x2b7   : > { %7235 = vmatprep.subr.bf16.mxu0 %v8366_v36  ;;  %7399 = vmatprep.subr.bf16.mxu1 %v8368_v37  ;;  %v619_v36 = vld [vmem:[%s9743_s10 + $0xb20] sm:$0xff]  ;;  %v708_v59 = vld [vmem:[%s9743_s10 + $0xde8] sm:$0xff] }
 0x2b8   : > { %v627_v37 = vld [vmem:[%s9743_s10 + $0xb60] sm:$0xff] }
 0x2b9   : > { %v8477_v51 = vcombine.low %v619_v36, %v627_v37 }
 0x2ba   : > { %7236 = vmatpush1.bf16.msra.mxu0 %v8365_v44  ;;  %7400 = vmatpush1.bf16.msra.mxu1 %v8367_v45  ;;  %v8478_v44 = vcombine.high %v619_v36, %v627_v37  ;;  %v8480_v45 = vcombine.high %v620_v39, %v628_v41  ;;  %v716_v36 = vld [vmem:[%s9743_s10 + $0xe28] sm:$0xff]  ;;  %v8559_v41 = vcombine.low %v700_v27, %v708_v59 }
 0x2bb   : > { %7246 = vmatprep.subr.bf16.mxu0 %v8382_v46  ;;  %7410 = vmatprep.subr.bf16.mxu1 %v8384_v48  ;;  %v635_v46 = vld [vmem:[%s9743_s10 + $0xba0] sm:$0xff]  ;;  %v724_v37 = vld [vmem:[%s9743_s10 + $0xe68] sm:$0xff] }
 0x2bc   : > { %v643_v48 = vld [vmem:[%s9743_s10 + $0xbe0] sm:$0xff] }
 0x2bd   : > { %7238 = vmatmul.mubr.bf16.vlgmr.msra.gmra.mrb[8].mxu0 %v9842_v25  ;;  %7402 = vmatmul.mubr.bf16.vlgmr.msra.gmra.mrb[8].mxu1 %v9842_v25  ;;  %v8493_v1 = vcombine.low %v635_v46, %v643_v48 }
 0x2be   : > { %7247 = vmatpush1.bf16.msra.mxu0 %v8381_v57  ;;  %7411 = vmatpush1.bf16.msra.mxu1 %v8383_v58  ;;  %v8494_v57 = vcombine.high %v635_v46, %v643_v48  ;;  %v8496_v58 = vcombine.high %v636_v49, %v644_v50  ;;  %v732_v46 = vld [vmem:[%s9743_s10 + $0xea8] sm:$0xff]  ;;  %v8575_v50 = vcombine.low %v716_v36, %v724_v37 }
 0x2bf   : > { %7248 = vmatprep.subr.bf16.mxu0 %v8398_v60  ;;  %7412 = vmatprep.subr.bf16.mxu1 %v8400_v61  ;;  %v651_v60 = vld [vmem:[%s9743_s10 + $0xc20] sm:$0xff]  ;;  %v740_v48 = vld [vmem:[%s9743_s10 + $0xee8] sm:$0xff] }
 0x2c0   : > { %7278 = vmatprep.mubr.bf16.mxu0 %v9850_v63  ;;  %7442 = vmatprep.mubr.bf16.mxu1 %v9850_v63  ;;  %v659_v61 = vld [vmem:[%s9743_s10 + $0xc60] sm:$0xff] }
 0x2c1   : > { %v8509_v11 = vcombine.low %v651_v60, %v659_v61 }
 0x2c2   : > { %7249 = vmatpush1.bf16.msra.mxu0 %v8397_v4  ;;  %7413 = vmatpush1.bf16.msra.mxu1 %v8399_v5  ;;  %v8510_v4 = vcombine.high %v651_v60, %v659_v61  ;;  %v8512_v5 = vcombine.high %v652_v62, %v660_v0  ;;  %v748_v60 = vld [vmem:[%s9743_s10 + $0xf28] sm:$0xff]  ;;  %v8591_v0 = vcombine.low %v732_v46, %v740_v48 }
 0x2c3   : > { %7250 = vmatprep.subr.bf16.mxu0 %v8414_v6  ;;  %7414 = vmatprep.subr.bf16.mxu1 %v8416_v7  ;;  %v667_v6 = vld [vmem:[%s9743_s10 + $0xca0] sm:$0xff]  ;;  %v756_v61 = vld [vmem:[%s9743_s10 + $0xf68] sm:$0xff] }
 0x2c4   : > { %v675_v7 = vld [vmem:[%s9743_s10 + $0xce0] sm:$0xff] }
 0x2c5   : > { %v8525_v20 = vcombine.low %v667_v6, %v675_v7 }
 0x2c6   : > { %7251 = vmatpush1.bf16.msra.mxu0 %v8413_v14  ;;  %7415 = vmatpush1.bf16.msra.mxu1 %v8415_v15  ;;  %v8526_v14 = vcombine.high %v667_v6, %v675_v7  ;;  %v8528_v15 = vcombine.high %v668_v8, %v676_v10  ;;  %v764_v6 = vld [vmem:[%s9743_s10 + $0xfa8] sm:$0xff]  ;;  %v8607_v10 = vcombine.low %v748_v60, %v756_v61 }
 0x2c7   : > { %7252 = vmatprep.subr.bf16.mxu0 %v8430_v16  ;;  %7416 = vmatprep.subr.bf16.mxu1 %v8432_v17  ;;  %v683_v16 = vld [vmem:[%s9743_s10 + $0xd20] sm:$0xff]  ;;  %v772_v7 = vld [vmem:[%s9743_s10 + $0xfe8] sm:$0xff] }
 0x2c8   : > { %v691_v17 = vld [vmem:[%s9743_s10 + $0xd60] sm:$0xff] }
 0x2c9   : > { %v8541_v28 = vcombine.low %v683_v16, %v691_v17 }
 0x2ca   : > { %7253 = vmatpush1.bf16.msra.mxu0 %v8429_v22  ;;  %7417 = vmatpush1.bf16.msra.mxu1 %v8431_v23  ;;  %v8542_v22 = vcombine.high %v683_v16, %v691_v17  ;;  %v8544_v23 = vcombine.high %v684_v18, %v692_v19  ;;  %v780_v16 = vld [vmem:[%s9743_s10 + $0x1028] sm:$0xff]  ;;  %v8623_v19 = vcombine.low %v764_v6, %v772_v7 }
 0x2cb   : > { %7254 = vmatprep.subr.bf16.mxu0 %v8446_v24  ;;  %7418 = vmatprep.subr.bf16.mxu1 %v8448_v26  ;;  %v699_v24 = vld [vmem:[%s9743_s10 + $0xda0] sm:$0xff]  ;;  %v788_v17 = vld [vmem:[%s9743_s10 + $0x1068] sm:$0xff] }
 0x2cc   : > { %v707_v26 = vld [vmem:[%s9743_s10 + $0xde0] sm:$0xff] }
 0x2cd   : > { %v8557_v39 = vcombine.low %v699_v24, %v707_v26 }
 0x2ce   : > { %7255 = vmatpush1.bf16.msra.mxu0 %v8445_v30  ;;  %7419 = vmatpush1.bf16.msra.mxu1 %v8447_v31  ;;  %v8558_v30 = vcombine.high %v699_v24, %v707_v26  ;;  %v8560_v31 = vcombine.high %v700_v27, %v708_v59  ;;  %v796_v24 = vld [vmem:[%s9743_s10 + $0x10a8] sm:$0xff]  ;;  %v8639_v59 = vcombine.low %v780_v16, %v788_v17 }
 0x2cf   : > { %7256 = vmatprep.subr.bf16.mxu0 %v8462_v32  ;;  %7420 = vmatprep.subr.bf16.mxu1 %v8464_v33  ;;  %v715_v32 = vld [vmem:[%s9743_s10 + $0xe20] sm:$0xff]  ;;  %v804_v26 = vld [vmem:[%s9743_s10 + $0x10e8] sm:$0xff] }
 0x2d0   : > { %v723_v33 = vld [vmem:[%s9743_s10 + $0xe60] sm:$0xff] }
 0x2d1   : > { %v8573_v49 = vcombine.low %v715_v32, %v723_v33 }
 0x2d2   : > { %7257 = vmatpush1.bf16.msra.mxu0 %v8461_v53  ;;  %7421 = vmatpush1.bf16.msra.mxu1 %v8463_v42  ;;  %v8574_v53 = vcombine.high %v715_v32, %v723_v33  ;;  %v8576_v42 = vcombine.high %v716_v36, %v724_v37  ;;  %v812_v32 = vld [vmem:[%s9743_s10 + $0x1128] sm:$0xff]  ;;  %v8655_v37 = vcombine.low %v796_v24, %v804_v26 }
 0x2d3   : > { %7258 = vmatprep.subr.bf16.mxu0 %v8478_v44  ;;  %7422 = vmatprep.subr.bf16.mxu1 %v8480_v45  ;;  %v731_v44 = vld [vmem:[%s9743_s10 + $0xea0] sm:$0xff]  ;;  %v820_v33 = vld [vmem:[%s9743_s10 + $0x1168] sm:$0xff] }
 0x2d4   : > { %v739_v45 = vld [vmem:[%s9743_s10 + $0xee0] sm:$0xff] }
 0x2d5   : > { %v8589_v62 = vcombine.low %v731_v44, %v739_v45 }
 0x2d6   : > { %7259 = vmatpush1.bf16.msra.mxu0 %v8477_v51  ;;  %7423 = vmatpush1.bf16.msra.mxu1 %v8479_v55  ;;  %v8590_v51 = vcombine.high %v731_v44, %v739_v45  ;;  %v8592_v55 = vcombine.high %v732_v46, %v740_v48  ;;  %v828_v44 = vld [vmem:[%s9743_s10 + $0x11a8] sm:$0xff]  ;;  %v8671_v48 = vcombine.low %v812_v32, %v820_v33 }
 0x2d7   : > { %7260 = vmatprep.subr.bf16.mxu0 %v8494_v57  ;;  %7424 = vmatprep.subr.bf16.mxu1 %v8496_v58  ;;  %v747_v57 = vld [vmem:[%s9743_s10 + $0xf20] sm:$0xff]  ;;  %v836_v45 = vld [vmem:[%s9743_s10 + $0x11e8] sm:$0xff] }
 0x2d8   : > { %v755_v58 = vld [vmem:[%s9743_s10 + $0xf60] sm:$0xff] }
 0x2d9   : > { %v8605_v8 = vcombine.low %v747_v57, %v755_v58 }
 0x2da   : > { %7261 = vmatpush1.bf16.msra.mxu0 %v8493_v1  ;;  %7425 = vmatpush1.bf16.msra.mxu1 %v8495_v3  ;;  %v8606_v1 = vcombine.high %v747_v57, %v755_v58  ;;  %v8608_v3 = vcombine.high %v748_v60, %v756_v61  ;;  %v844_v57 = vld [vmem:[%s9743_s10 + $0x1228] sm:$0xff]  ;;  %v8687_v61 = vcombine.low %v828_v44, %v836_v45 }
 0x2db   : > { %7262 = vmatprep.subr.bf16.mxu0 %v8510_v4  ;;  %7426 = vmatprep.subr.bf16.mxu1 %v8512_v5  ;;  %v763_v4 = vld [vmem:[%s9743_s10 + $0xfa0] sm:$0xff]  ;;  %v852_v58 = vld [vmem:[%s9743_s10 + $0x1268] sm:$0xff] }
 0x2dc   : > { %v771_v5 = vld [vmem:[%s9743_s10 + $0xfe0] sm:$0xff] }
 0x2dd   : > { %v8621_v18 = vcombine.low %v763_v4, %v771_v5 }
 0x2de   : > { %7263 = vmatpush1.bf16.msra.mxu0 %v8509_v11  ;;  %7427 = vmatpush1.bf16.msra.mxu1 %v8511_v13  ;;  %v8622_v11 = vcombine.high %v763_v4, %v771_v5  ;;  %v8624_v13 = vcombine.high %v764_v6, %v772_v7  ;;  %v860_v4 = vld [vmem:[%s9743_s10 + $0x12a8] sm:$0xff]  ;;  %v8703_v7 = vcombine.low %v844_v57, %v852_v58 }
 0x2df   : > { %7264 = vmatprep.subr.bf16.mxu0 %v8526_v14  ;;  %7428 = vmatprep.subr.bf16.mxu1 %v8528_v15  ;;  %v779_v14 = vld [vmem:[%s9743_s10 + $0x1020] sm:$0xff]  ;;  %v868_v5 = vld [vmem:[%s9743_s10 + $0x12e8] sm:$0xff] }
 0x2e0   : > { %v787_v15 = vld [vmem:[%s9743_s10 + $0x1060] sm:$0xff] }
 0x2e1   : > { %v8637_v27 = vcombine.low %v779_v14, %v787_v15 }
 0x2e2   : > { %7265 = vmatpush1.bf16.msra.mxu0 %v8525_v20  ;;  %7429 = vmatpush1.bf16.msra.mxu1 %v8527_v21  ;;  %v8638_v20 = vcombine.high %v779_v14, %v787_v15  ;;  %v8640_v21 = vcombine.high %v780_v16, %v788_v17  ;;  %v876_v14 = vld [vmem:[%s9743_s10 + $0x1328] sm:$0xff]  ;;  %v8719_v17 = vcombine.low %v860_v4, %v868_v5 }
 0x2e3   : > { %7266 = vmatprep.subr.bf16.mxu0 %v8542_v22  ;;  %7430 = vmatprep.subr.bf16.mxu1 %v8544_v23  ;;  %v795_v22 = vld [vmem:[%s9743_s10 + $0x10a0] sm:$0xff]  ;;  %v884_v15 = vld [vmem:[%s9743_s10 + $0x1368] sm:$0xff] }
 0x2e4   : > { %v803_v23 = vld [vmem:[%s9743_s10 + $0x10e0] sm:$0xff] }
 0x2e5   : > { %v8653_v36 = vcombine.low %v795_v22, %v803_v23 }
 0x2e6   : > { %7267 = vmatpush1.bf16.msra.mxu0 %v8541_v28  ;;  %7431 = vmatpush1.bf16.msra.mxu1 %v8543_v29  ;;  %v8654_v28 = vcombine.high %v795_v22, %v803_v23  ;;  %v8656_v29 = vcombine.high %v796_v24, %v804_v26  ;;  %v892_v22 = vld [vmem:[%s9743_s10 + $0x13a8] sm:$0xff]  ;;  %v8735_v26 = vcombine.low %v876_v14, %v884_v15 }
 0x2e7   : > { %7268 = vmatprep.subr.bf16.mxu0 %v8558_v30  ;;  %7432 = vmatprep.subr.bf16.mxu1 %v8560_v31  ;;  %v811_v30 = vld [vmem:[%s9743_s10 + $0x1120] sm:$0xff]  ;;  %v900_v23 = vld [vmem:[%s9743_s10 + $0x13e8] sm:$0xff] }
 0x2e8   : > { %v819_v31 = vld [vmem:[%s9743_s10 + $0x1160] sm:$0xff] }
 0x2e9   : > { %v8669_v46 = vcombine.low %v811_v30, %v819_v31 }
 0x2ea   : > { %7269 = vmatpush1.bf16.msra.mxu0 %v8557_v39  ;;  %7433 = vmatpush1.bf16.msra.mxu1 %v8559_v41  ;;  %v8670_v39 = vcombine.high %v811_v30, %v819_v31  ;;  %v8672_v41 = vcombine.high %v812_v32, %v820_v33  ;;  %v908_v30 = vld [vmem:[%s9743_s10 + $0x1428] sm:$0xff]  ;;  %v8751_v33 = vcombine.low %v892_v22, %v900_v23 }
 0x2eb   : > { %7270 = vmatprep.subr.bf16.mxu0 %v8574_v53  ;;  %7434 = vmatprep.subr.bf16.mxu1 %v8576_v42  ;;  %v827_v53 = vld [vmem:[%s9743_s10 + $0x11a0] sm:$0xff]  ;;  %v916_v31 = vld [vmem:[%s9743_s10 + $0x1468] sm:$0xff] }
 0x2ec   : > { %v835_v42 = vld [vmem:[%s9743_s10 + $0x11e0] sm:$0xff] }
 0x2ed   : > { %v8685_v60 = vcombine.low %v827_v53, %v835_v42 }
 0x2ee   : > { %7271 = vmatpush1.bf16.msra.mxu0 %v8573_v49  ;;  %7435 = vmatpush1.bf16.msra.mxu1 %v8575_v50  ;;  %v8686_v49 = vcombine.high %v827_v53, %v835_v42  ;;  %v8688_v50 = vcombine.high %v828_v44, %v836_v45  ;;  %v924_v53 = vld [vmem:[%s9743_s10 + $0x14a8] sm:$0xff]  ;;  %v8767_v45 = vcombine.low %v908_v30, %v916_v31 }
 0x2ef   : > { %7272 = vmatprep.subr.bf16.mxu0 %v8590_v51  ;;  %7436 = vmatprep.subr.bf16.mxu1 %v8592_v55  ;;  %v843_v51 = vld [vmem:[%s9743_s10 + $0x1220] sm:$0xff]  ;;  %v932_v42 = vld [vmem:[%s9743_s10 + $0x14e8] sm:$0xff] }
 0x2f0   : > { %v851_v55 = vld [vmem:[%s9743_s10 + $0x1260] sm:$0xff] }
 0x2f1   : > { %v8701_v6 = vcombine.low %v843_v51, %v851_v55 }
 0x2f2   : > { %7273 = vmatpush1.bf16.msra.mxu0 %v8589_v62  ;;  %7437 = vmatpush1.bf16.msra.mxu1 %v8591_v0  ;;  %v8702_v62 = vcombine.high %v843_v51, %v851_v55  ;;  %v8704_v0 = vcombine.high %v844_v57, %v852_v58  ;;  %v940_v51 = vld [vmem:[%s9743_s10 + $0x1528] sm:$0xff]  ;;  %v8783_v58 = vcombine.low %v924_v53, %v932_v42 }
 0x2f3   : > { %7274 = vmatprep.subr.bf16.mxu0 %v8606_v1  ;;  %7438 = vmatprep.subr.bf16.mxu1 %v8608_v3  ;;  %v859_v1 = vld [vmem:[%s9743_s10 + $0x12a0] sm:$0xff]  ;;  %v948_v55 = vld [vmem:[%s9743_s10 + $0x1568] sm:$0xff] }
 0x2f4   : > { %v867_v3 = vld [vmem:[%s9743_s10 + $0x12e0] sm:$0xff] }
 0x2f5   : > { %v8717_v16 = vcombine.low %v859_v1, %v867_v3 }
 0x2f6   : > { %7275 = vmatpush1.bf16.msra.mxu0 %v8605_v8  ;;  %7439 = vmatpush1.bf16.msra.mxu1 %v8607_v10  ;;  %v8718_v8 = vcombine.high %v859_v1, %v867_v3  ;;  %v8720_v10 = vcombine.high %v860_v4, %v868_v5  ;;  %v956_v1 = vld [vmem:[%s9743_s10 + $0x15a8] sm:$0xff]  ;;  %v8799_v5 = vcombine.low %v940_v51, %v948_v55 }
 0x2f7   : > { %7276 = vmatprep.subr.bf16.mxu0 %v8622_v11  ;;  %7440 = vmatprep.subr.bf16.mxu1 %v8624_v13  ;;  %v875_v11 = vld [vmem:[%s9743_s10 + $0x1320] sm:$0xff]  ;;  %v964_v3 = vld [vmem:[%s9743_s10 + $0x15e8] sm:$0xff] }
 0x2f8   : > { %v883_v13 = vld [vmem:[%s9743_s10 + $0x1360] sm:$0xff] }
 0x2f9   : > { %v8733_v24 = vcombine.low %v875_v11, %v883_v13 }
 0x2fa   : > { %7277 = vmatpush1.bf16.msra.mxu0 %v8621_v18  ;;  %7441 = vmatpush1.bf16.msra.mxu1 %v8623_v19  ;;  %v8734_v18 = vcombine.high %v875_v11, %v883_v13  ;;  %v8736_v19 = vcombine.high %v876_v14, %v884_v15  ;;  %v972_v11 = vld [vmem:[%s9743_s10 + $0x1628] sm:$0xff]  ;;  %v8815_v15 = vcombine.low %v956_v1, %v964_v3 }
 0x2fb   : > { %7287 = vmatprep.subr.bf16.mxu0 %v8638_v20  ;;  %7451 = vmatprep.subr.bf16.mxu1 %v8640_v21  ;;  %v891_v20 = vld [vmem:[%s9743_s10 + $0x13a0] sm:$0xff]  ;;  %v980_v13 = vld [vmem:[%s9743_s10 + $0x1668] sm:$0xff] }
 0x2fc   : > { %v899_v21 = vld [vmem:[%s9743_s10 + $0x13e0] sm:$0xff] }
 0x2fd   : > { %7279 = vmatmul.mubr.bf16.vlgmr.msra.gmra.mrb[8].mxu0 %v9924_v40  ;;  %7443 = vmatmul.mubr.bf16.vlgmr.msra.gmra.mrb[8].mxu1 %v9924_v40  ;;  %v8749_v32 = vcombine.low %v891_v20, %v899_v21 }
 0x2fe   : > { %7288 = vmatpush1.bf16.msra.mxu0 %v8637_v27  ;;  %7452 = vmatpush1.bf16.msra.mxu1 %v8639_v59  ;;  %v8750_v27 = vcombine.high %v891_v20, %v899_v21  ;;  %v8752_v59 = vcombine.high %v892_v22, %v900_v23  ;;  %v988_v20 = vld [vmem:[%s9743_s10 + $0x16a8] sm:$0xff]  ;;  %v8831_v23 = vcombine.low %v972_v11, %v980_v13 }
 0x2ff   : > { %7289 = vmatprep.subr.bf16.mxu0 %v8654_v28  ;;  %7453 = vmatprep.subr.bf16.mxu1 %v8656_v29  ;;  %v907_v28 = vld [vmem:[%s9743_s10 + $0x1420] sm:$0xff]  ;;  %v996_v21 = vld [vmem:[%s9743_s10 + $0x16e8] sm:$0xff] }
 0x300   : > { %7319 = vmatprep.mubr.bf16.mxu0 %v9853_v34  ;;  %7483 = vmatprep.mubr.bf16.mxu1 %v9853_v34  ;;  %v915_v29 = vld [vmem:[%s9743_s10 + $0x1460] sm:$0xff] }
 0x301   : > { %v8765_v44 = vcombine.low %v907_v28, %v915_v29 }
 0x302   : > { %7290 = vmatpush1.bf16.msra.mxu0 %v8653_v36  ;;  %7454 = vmatpush1.bf16.msra.mxu1 %v8655_v37  ;;  %v8766_v36 = vcombine.high %v907_v28, %v915_v29  ;;  %v8768_v37 = vcombine.high %v908_v30, %v916_v31  ;;  %v1004_v28 = vld [vmem:[%s9743_s10 + $0x1728] sm:$0xff]  ;;  %v8847_v31 = vcombine.low %v988_v20, %v996_v21 }
 0x303   : > { %7291 = vmatprep.subr.bf16.mxu0 %v8670_v39  ;;  %7455 = vmatprep.subr.bf16.mxu1 %v8672_v41  ;;  %v923_v39 = vld [vmem:[%s9743_s10 + $0x14a0] sm:$0xff]  ;;  %v1012_v29 = vld [vmem:[%s9743_s10 + $0x1768] sm:$0xff] }
 0x304   : > { %v931_v41 = vld [vmem:[%s9743_s10 + $0x14e0] sm:$0xff] }
 0x305   : > { %v8781_v57 = vcombine.low %v923_v39, %v931_v41 }
 0x306   : > { %7292 = vmatpush1.bf16.msra.mxu0 %v8669_v46  ;;  %7456 = vmatpush1.bf16.msra.mxu1 %v8671_v48  ;;  %v8782_v46 = vcombine.high %v923_v39, %v931_v41  ;;  %v8784_v48 = vcombine.high %v924_v53, %v932_v42  ;;  %v1020_v39 = vld [vmem:[%s9743_s10 + $0x17a8] sm:$0xff]  ;;  %v8863_v42 = vcombine.low %v1004_v28, %v1012_v29 }
 0x307   : > { %7293 = vmatprep.subr.bf16.mxu0 %v8686_v49  ;;  %7457 = vmatprep.subr.bf16.mxu1 %v8688_v50  ;;  %v939_v49 = vld [vmem:[%s9743_s10 + $0x1520] sm:$0xff]  ;;  %v1028_v41 = vld [vmem:[%s9743_s10 + $0x17e8] sm:$0xff] }
 0x308   : > { %v947_v50 = vld [vmem:[%s9743_s10 + $0x1560] sm:$0xff] }
 0x309   : > { %v8797_v4 = vcombine.low %v939_v49, %v947_v50 }
 0x30a   : > { %7294 = vmatpush1.bf16.msra.mxu0 %v8685_v60  ;;  %7458 = vmatpush1.bf16.msra.mxu1 %v8687_v61  ;;  %v8798_v60 = vcombine.high %v939_v49, %v947_v50  ;;  %v8800_v61 = vcombine.high %v940_v51, %v948_v55  ;;  %v1036_v49 = vld [vmem:[%s9743_s10 + $0x1828] sm:$0xff]  ;;  %v8879_v55 = vcombine.low %v1020_v39, %v1028_v41 }
 0x30b   : > { %7295 = vmatprep.subr.bf16.mxu0 %v8702_v62  ;;  %7459 = vmatprep.subr.bf16.mxu1 %v8704_v0  ;;  %v955_v62 = vld [vmem:[%s9743_s10 + $0x15a0] sm:$0xff]  ;;  %v1044_v50 = vld [vmem:[%s9743_s10 + $0x1868] sm:$0xff] }
 0x30c   : > { %v963_v0 = vld [vmem:[%s9743_s10 + $0x15e0] sm:$0xff] }
 0x30d   : > { %v8813_v14 = vcombine.low %v955_v62, %v963_v0 }
 0x30e   : > { %7296 = vmatpush1.bf16.msra.mxu0 %v8701_v6  ;;  %7460 = vmatpush1.bf16.msra.mxu1 %v8703_v7  ;;  %v8814_v6 = vcombine.high %v955_v62, %v963_v0  ;;  %v8816_v7 = vcombine.high %v956_v1, %v964_v3  ;;  %v1052_v62 = vld [vmem:[%s9743_s10 + $0x18a8] sm:$0xff]  ;;  %v8895_v3 = vcombine.low %v1036_v49, %v1044_v50 }
 0x30f   : > { %7297 = vmatprep.subr.bf16.mxu0 %v8718_v8  ;;  %7461 = vmatprep.subr.bf16.mxu1 %v8720_v10  ;;  %v971_v8 = vld [vmem:[%s9743_s10 + $0x1620] sm:$0xff]  ;;  %v1060_v0 = vld [vmem:[%s9743_s10 + $0x18e8] sm:$0xff] }
 0x310   : > { %v979_v10 = vld [vmem:[%s9743_s10 + $0x1660] sm:$0xff] }
 0x311   : > { %v8829_v22 = vcombine.low %v971_v8, %v979_v10 }
 0x312   : > { %7298 = vmatpush1.bf16.msra.mxu0 %v8717_v16  ;;  %7462 = vmatpush1.bf16.msra.mxu1 %v8719_v17  ;;  %v8830_v16 = vcombine.high %v971_v8, %v979_v10  ;;  %v8832_v17 = vcombine.high %v972_v11, %v980_v13  ;;  %v1068_v8 = vld [vmem:[%s9743_s10 + $0x1928] sm:$0xff]  ;;  %v8911_v13 = vcombine.low %v1052_v62, %v1060_v0 }
 0x313   : > { %7299 = vmatprep.subr.bf16.mxu0 %v8734_v18  ;;  %7463 = vmatprep.subr.bf16.mxu1 %v8736_v19  ;;  %v987_v18 = vld [vmem:[%s9743_s10 + $0x16a0] sm:$0xff]  ;;  %v1076_v10 = vld [vmem:[%s9743_s10 + $0x1968] sm:$0xff] }
 0x314   : > { %v995_v19 = vld [vmem:[%s9743_s10 + $0x16e0] sm:$0xff] }
 0x315   : > { %v8845_v30 = vcombine.low %v987_v18, %v995_v19 }
 0x316   : > { %7300 = vmatpush1.bf16.msra.mxu0 %v8733_v24  ;;  %7464 = vmatpush1.bf16.msra.mxu1 %v8735_v26  ;;  %v8846_v24 = vcombine.high %v987_v18, %v995_v19  ;;  %v8848_v26 = vcombine.high %v988_v20, %v996_v21  ;;  %v1084_v18 = vld [vmem:[%s9743_s10 + $0x19a8] sm:$0xff]  ;;  %v8927_v21 = vcombine.low %v1068_v8, %v1076_v10 }
 0x317   : > { %7301 = vmatprep.subr.bf16.mxu0 %v8750_v27  ;;  %7465 = vmatprep.subr.bf16.mxu1 %v8752_v59  ;;  %v1003_v27 = vld [vmem:[%s9743_s10 + $0x1720] sm:$0xff]  ;;  %v1092_v19 = vld [vmem:[%s9743_s10 + $0x19e8] sm:$0xff] }
 0x318   : > { %v1011_v59 = vld [vmem:[%s9743_s10 + $0x1760] sm:$0xff] }
 0x319   : > { %v8861_v53 = vcombine.low %v1003_v27, %v1011_v59 }
 0x31a   : > { %7302 = vmatpush1.bf16.msra.mxu0 %v8749_v32  ;;  %7466 = vmatpush1.bf16.msra.mxu1 %v8751_v33  ;;  %v8862_v32 = vcombine.high %v1003_v27, %v1011_v59  ;;  %v8864_v33 = vcombine.high %v1004_v28, %v1012_v29  ;;  %v1100_v27 = vld [vmem:[%s9743_s10 + $0x1a28] sm:$0xff]  ;;  %v8943_v29 = vcombine.low %v1084_v18, %v1092_v19 }
 0x31b   : > { %7303 = vmatprep.subr.bf16.mxu0 %v8766_v36  ;;  %7467 = vmatprep.subr.bf16.mxu1 %v8768_v37  ;;  %v1019_v36 = vld [vmem:[%s9743_s10 + $0x17a0] sm:$0xff]  ;;  %v1108_v59 = vld [vmem:[%s9743_s10 + $0x1a68] sm:$0xff] }
 0x31c   : > { %v1027_v37 = vld [vmem:[%s9743_s10 + $0x17e0] sm:$0xff] }
 0x31d   : > { %v8877_v51 = vcombine.low %v1019_v36, %v1027_v37 }
 0x31e   : > { %7304 = vmatpush1.bf16.msra.mxu0 %v8765_v44  ;;  %7468 = vmatpush1.bf16.msra.mxu1 %v8767_v45  ;;  %v8878_v44 = vcombine.high %v1019_v36, %v1027_v37  ;;  %v8880_v45 = vcombine.high %v1020_v39, %v1028_v41  ;;  %v1309_v36 = vsub.s32 4, %v9771_v43  ;;  %v1116_v37 = vld [vmem:[%s9743_s10 + $0x1aa8] sm:$0xff] }
 0x31f   : > { %7305 = vmatprep.subr.bf16.mxu0 %v8782_v46  ;;  %7469 = vmatprep.subr.bf16.mxu1 %v8784_v48  ;;  %v1035_v46 = vld [vmem:[%s9743_s10 + $0x1820] sm:$0xff]  ;;  %v1124_v39 = vld [vmem:[%s9743_s10 + $0x1ae8] sm:$0xff] }
 0x320   : > { %v1043_v48 = vld [vmem:[%s9743_s10 + $0x1860] sm:$0xff] }
 0x321   : > { %v8893_v1 = vcombine.low %v1035_v46, %v1043_v48 }
 0x322   : > { %7306 = vmatpush1.bf16.msra.mxu0 %v8781_v57  ;;  %7470 = vmatpush1.bf16.msra.mxu1 %v8783_v58  ;;  %v8894_v57 = vcombine.high %v1035_v46, %v1043_v48  ;;  %v8896_v58 = vcombine.high %v1036_v49, %v1044_v50  ;;  %v8976_v48 = vcombine.high %v1116_v37, %v1124_v39  ;;  %v1131_v49 = vld [vmem:[%s9743_s10 + $0x1b20] sm:$0xff] }
 0x323   : > { %7307 = vmatprep.subr.bf16.mxu0 %v8798_v60  ;;  %7471 = vmatprep.subr.bf16.mxu1 %v8800_v61  ;;  %v1051_v60 = vld [vmem:[%s9743_s10 + $0x18a0] sm:$0xff] }
 0x324   : > { %v1059_v61 = vld [vmem:[%s9743_s10 + $0x18e0] sm:$0xff] }
 0x325   : > { %v8909_v11 = vcombine.low %v1051_v60, %v1059_v61  ;;  %v1139_v50 = vld [vmem:[%s9743_s10 + $0x1b60] sm:$0xff] }
 0x326   : > { %7308 = vmatpush1.bf16.msra.mxu0 %v8797_v4  ;;  %7472 = vmatpush1.bf16.msra.mxu1 %v8799_v5  ;;  %v8910_v4 = vcombine.high %v1051_v60, %v1059_v61  ;;  %v8912_v5 = vcombine.high %v1052_v62, %v1060_v0 }
 0x327   : > { %7309 = vmatprep.subr.bf16.mxu0 %v8814_v6  ;;  %7473 = vmatprep.subr.bf16.mxu1 %v8816_v7  ;;  %v1067_v6 = vld [vmem:[%s9743_s10 + $0x1920] sm:$0xff] }
 0x328   : > { %v1075_v7 = vld [vmem:[%s9743_s10 + $0x1960] sm:$0xff] }
 0x329   : > { %v8925_v20 = vcombine.low %v1067_v6, %v1075_v7 }
 0x32a   : > { %7310 = vmatpush1.bf16.msra.mxu0 %v8813_v14  ;;  %7474 = vmatpush1.bf16.msra.mxu1 %v8815_v15  ;;  %v8926_v14 = vcombine.high %v1067_v6, %v1075_v7  ;;  %v8928_v15 = vcombine.high %v1068_v8, %v1076_v10  ;;  %v1147_v6 = vld [vmem:[%s9743_s10 + $0x1ba0] sm:$0xff] }
 0x32b   : > { %7311 = vmatprep.subr.bf16.mxu0 %v8830_v16  ;;  %7475 = vmatprep.subr.bf16.mxu1 %v8832_v17  ;;  %v1083_v16 = vld [vmem:[%s9743_s10 + $0x19a0] sm:$0xff] }
 0x32c   : > { %v1091_v17 = vld [vmem:[%s9743_s10 + $0x19e0] sm:$0xff] }
 0x32d   : > { %v8941_v28 = vcombine.low %v1083_v16, %v1091_v17  ;;  %v1155_v7 = vld [vmem:[%s9743_s10 + $0x1be0] sm:$0xff] }
 0x32e   : > { %7312 = vmatpush1.bf16.msra.mxu0 %v8829_v22  ;;  %7476 = vmatpush1.bf16.msra.mxu1 %v8831_v23  ;;  %v8942_v22 = vcombine.high %v1083_v16, %v1091_v17  ;;  %v8944_v23 = vcombine.high %v1084_v18, %v1092_v19  ;;  %v8989_v19 = vcombine.low %v1131_v49, %v1139_v50 }
 0x32f   : > { %7313 = vmatprep.subr.bf16.mxu0 %v8846_v24  ;;  %7477 = vmatprep.subr.bf16.mxu1 %v8848_v26  ;;  %v1099_v24 = vld [vmem:[%s9743_s10 + $0x1a20] sm:$0xff] }
 0x330   : > { %v1107_v26 = vld [vmem:[%s9743_s10 + $0x1a60] sm:$0xff] }
 0x331   : > { %v8957_v41 = vcombine.low %v1099_v24, %v1107_v26 }
 0x332   : > { %7314 = vmatpush1.bf16.msra.mxu0 %v8845_v30  ;;  %7478 = vmatpush1.bf16.msra.mxu1 %v8847_v31  ;;  %v8958_v30 = vcombine.high %v1099_v24, %v1107_v26  ;;  %v8960_v31 = vcombine.high %v1100_v27, %v1108_v59  ;;  %v9006_v26 = vcombine.high %v1147_v6, %v1155_v7 }
 0x333   : > { %7315 = vmatprep.subr.bf16.mxu0 %v8862_v32  ;;  %7479 = vmatprep.subr.bf16.mxu1 %v8864_v33  ;;  %v1115_v32 = vld [vmem:[%s9743_s10 + $0x1aa0] sm:$0xff] }
 0x334   : > { %v1123_v33 = vld [vmem:[%s9743_s10 + $0x1ae0] sm:$0xff] }
 0x335   : > { %v8974_v46 = vcombine.high %v1115_v32, %v1123_v33  ;;  %v8973_v62 = vcombine.low %v1115_v32, %v1123_v33  ;;  %v1164_v33 = vld [vmem:[%s9743_s10 + $0x1c28] sm:$0xff] }
 0x336   : > { %7316 = vmatpush1.bf16.msra.mxu0 %v8861_v53  ;;  %7480 = vmatpush1.bf16.msra.mxu1 %v8863_v42  ;;  %v1317_v53 = vsub.s32 6, %v9771_v43  ;;  %v1313_v42 = vsub.s32 5, %v9771_v43 }
 0x337   : > { %7317 = vmatprep.subr.bf16.mxu0 %v8878_v44  ;;  %7481 = vmatprep.subr.bf16.mxu1 %v8880_v45  ;;  %v8959_v44 = vcombine.low %v1100_v27, %v1108_v59  ;;  %v1321_v45 = vsub.s32 7, %v9771_v43 }
 0x33a   : > { %7318 = vmatpush1.bf16.msra.mxu0 %v8877_v51  ;;  %7482 = vmatpush1.bf16.msra.mxu1 %v8879_v55  ;;  %v9345_v51 = vld [vmem:[%s10298_s7] sm:$0xff] }
 0x33b   : > { %7328 = vmatprep.subr.bf16.mxu0 %v8894_v57  ;;  %7492 = vmatprep.subr.bf16.mxu1 %v8896_v58  ;;  %v1310_v55 = vrot.slane %v9345_v51, %v1309_v36  ;;  %v1132_v57 = vld [vmem:[%s9743_s10 + $0x1b28] sm:$0xff]  ;;  %v1318_v60 = vrot.slane %v9345_v51, %v1317_v53  ;;  %v1314_v61 = vrot.slane %v9345_v51, %v1313_v42 }
 0x33c   : > { %v1140_v58 = vld [vmem:[%s9743_s10 + $0x1b68] sm:$0xff]  ;;  %v1322_v0 = vrot.slane %v9345_v51, %v1321_v45  ;;  %v1179_v51 = vld [vmem:[%s9743_s10 + $0x1ca0] sm:$0xff] }
 0x33d   : > { %7320 = vmatmul.mubr.bf16.vlgmr.msra.gmra.mrb[8].mxu0 %v9856_v35  ;;  %7484 = vmatmul.mubr.bf16.vlgmr.msra.gmra.mrb[8].mxu1 %v9856_v35  ;;  %v8991_v24 = vcombine.low %v1132_v57, %v1140_v58 }
 0x33e   : > { %7329 = vmatpush1.bf16.msra.mxu0 %v8893_v1  ;;  %7493 = vmatpush1.bf16.msra.mxu1 %v8895_v3  ;;  %v8975_v1 = vcombine.low %v1116_v37, %v1124_v39  ;;  %v8990_v3 = vcombine.high %v1131_v49, %v1139_v50  ;;  %v1172_v37 = vld [vmem:[%s9743_s10 + $0x1c68] sm:$0xff] }
 0x33f   : > { %7330 = vmatprep.subr.bf16.mxu0 %v8910_v4  ;;  %7494 = vmatprep.subr.bf16.mxu1 %v8912_v5  ;;  %v8992_v5 = vcombine.high %v1132_v57, %v1140_v58  ;;  %v9024_v50 = vcombine.high %v1164_v33, %v1172_v37  ;;  %v1180_v58 = vld [vmem:[%s9743_s10 + $0x1ca8] sm:$0xff] }
 0x340   : > { %7360 = vmatprep.mubr.bf16.mxu0 %v10000_v2  ;;  %7524 = vmatprep.mubr.bf16.mxu1 %v10000_v2 }
 0x342   : > { %7331 = vmatpush1.bf16.msra.mxu0 %v8909_v11  ;;  %7495 = vmatpush1.bf16.msra.mxu1 %v8911_v13  ;;  %v1148_v13 = vld [vmem:[%s9743_s10 + $0x1ba8] sm:$0xff] }
 0x343   : > { %7332 = vmatprep.subr.bf16.mxu0 %v8926_v14  ;;  %7496 = vmatprep.subr.bf16.mxu1 %v8928_v15  ;;  %v1156_v14 = vld [vmem:[%s9743_s10 + $0x1be8] sm:$0xff] }
 0x346   : > { %7333 = vmatpush1.bf16.msra.mxu0 %v8925_v20  ;;  %7497 = vmatpush1.bf16.msra.mxu1 %v8927_v21 }
 0x347   : > { %7334 = vmatprep.subr.bf16.mxu0 %v8942_v22  ;;  %7498 = vmatprep.subr.bf16.mxu1 %v8944_v23 }
 0x34a   : > { %7335 = vmatpush1.bf16.msra.mxu0 %v8941_v28  ;;  %7499 = vmatpush1.bf16.msra.mxu1 %v8943_v29  ;;  %v9008_v29 = vcombine.high %v1148_v13, %v1156_v14 }
 0x34b   : > { %7336 = vmatprep.subr.bf16.mxu0 %v8958_v30  ;;  %7500 = vmatprep.subr.bf16.mxu1 %v8960_v31  ;;  %v1163_v30 = vld [vmem:[%s9743_s10 + $0x1c20] sm:$0xff] }
 0x34c   : > { %v1171_v31 = vld [vmem:[%s9743_s10 + $0x1c60] sm:$0xff] }
 0x34e   : > { %7337 = vmatpush1.bf16.msra.mxu0 %v8957_v41  ;;  %7501 = vmatpush1.bf16.msra.mxu1 %v8959_v44  ;;  %v9005_v41 = vcombine.low %v1147_v6, %v1155_v7  ;;  %v1196_v6 = vld [vmem:[%s9743_s10 + $0x1d28] sm:$0xff] }
 0x34f   : > { %7338 = vmatprep.subr.bf16.mxu0 %v8974_v46  ;;  %7502 = vmatprep.subr.bf16.mxu1 %v8976_v48  ;;  %v9007_v46 = vcombine.low %v1148_v13, %v1156_v14  ;;  %v9022_v48 = vcombine.high %v1163_v30, %v1171_v31  ;;  %v1204_v7 = vld [vmem:[%s9743_s10 + $0x1d68] sm:$0xff]  ;;  %v1211_v14 = vld [vmem:[%s9743_s10 + $0x1da0] sm:$0xff] }
 0x350   : > { %v7034_v4 = vpop.f32.mrb[4].mxu0  ;;  %v7198_v10 = vpop.f32.mrb[4].mxu1  ;;  %v9056_v13 = vcombine.high %v1196_v6, %v1204_v7 }
 0x351   : > { %v9153_v8 = vadd.f32 %v7034_v4, %v1310_v55  ;;  %v7036_v11 = vpop.f32.mrb[5].mxu0  ;;  %v9155_v15 = vadd.f32 %v7198_v10, %v1318_v60  ;;  %v7200_v17 = vpop.f32.mrb[5].mxu1  ;;  %v1187_v55 = vld [vmem:[%s9743_s10 + $0x1ce0] sm:$0xff]  ;;  %v1188_v60 = vld [vmem:[%s9743_s10 + $0x1ce8] sm:$0xff] }
 0x352   : > { %v9154_v16 = vadd.f32 %v7036_v11, %v1314_v61  ;;  %v7038_v18 = vpop.f32.mrb[6].mxu0  ;;  %7339 = vmatpush1.bf16.msra.mxu0 %v8973_v62  ;;  %v9156_v21 = vadd.f32 %v7200_v17, %v1322_v0  ;;  %v7202_v22 = vpop.f32.mrb[6].mxu1  ;;  %7503 = vmatpush1.bf16.msra.mxu1 %v8975_v1  ;;  %v9021_v61 = vcombine.low %v1163_v30, %v1171_v31  ;;  %v1195_v4 = vld [vmem:[%s9743_s10 + $0x1d20] sm:$0xff]  ;;  %v1220_v17 = vld [vmem:[%s9743_s10 + $0x1de8] sm:$0xff] }
 0x353   : > { %v7865_v20 = vmax.f32 %v9153_v8, 0.0  ;;  %v7039_v23 = vpop.f32.mrb[7].mxu0  ;;  %7340 = vmatprep.subr.bf16.mxu0 %v8990_v3  ;;  %v7867_v27 = vmax.f32 %v9155_v15, 0.0  ;;  %v7203_v28 = vpop.f32.mrb[7].mxu1  ;;  %7504 = vmatprep.subr.bf16.mxu1 %v8992_v5  ;;  %v9023_v0 = vcombine.low %v1164_v33, %v1172_v37  ;;  %v9038_v1 = vcombine.high %v1179_v51, %v1187_v55  ;;  %v1203_v5 = vld [vmem:[%s9743_s10 + $0x1d60] sm:$0xff]  ;;  %v1252_v33 = vld [vmem:[%s9743_s10 + $0x1ee8] sm:$0xff] }
 0x354   : > { %v7866_v59 = vmax.f32 %v9154_v16, 0.0  ;;  %v7868_v32 = vmax.f32 %v9156_v21, 0.0  ;;  %v9040_v3 = vcombine.high %v1180_v58, %v1188_v60  ;;  %v9037_v8 = vcombine.low %v1179_v51, %v1187_v55  ;;  %v1219_v15 = vld [vmem:[%s9743_s10 + $0x1de0] sm:$0xff]  ;;  %v1212_v16 = vld [vmem:[%s9743_s10 + $0x1da8] sm:$0xff] }
 0x355   : > { %v9039_v10 = vcombine.low %v1180_v58, %v1188_v60  ;;  %v9054_v11 = vcombine.high %v1195_v4, %v1203_v5  ;;  %v9053_v18 = vcombine.low %v1195_v4, %v1203_v5  ;;  %v9072_v21 = vcombine.high %v1212_v16, %v1220_v17  ;;  %v1227_v22 = vld [vmem:[%s9743_s10 + $0x1e20] sm:$0xff] }
 0x356   : > { %v7910_v39 = vcombine.low %v7865_v20, %v7866_v59  ;;  %7341 = vmatpush1.bf16.msra.mxu0 %v8989_v19  ;;  %v7911_v44 = vcombine.low %v7867_v27, %v7868_v32  ;;  %7505 = vmatpush1.bf16.msra.mxu1 %v8991_v24  ;;  %v9055_v19 = vcombine.low %v1196_v6, %v1204_v7  ;;  %v1235_v23 = vld [vmem:[%s9743_s10 + $0x1e60] sm:$0xff]  ;;  %v1228_v24 = vld [vmem:[%s9743_s10 + $0x1e28] sm:$0xff]  ;;  %v269_v6 = vld [vmem:[%s9743_s10 + $0x30] sm:$0xff] }
 0x357   : > { %7342 = vmatprep.subr.bf16.mxu0 %v9006_v26  ;;  %7506 = vmatprep.subr.bf16.mxu1 %v9008_v29  ;;  %v9070_v20 = vcombine.high %v1211_v14, %v1219_v15  ;;  %v1236_v26 = vld [vmem:[%s9743_s10 + $0x1e68] sm:$0xff]  ;;  %v9069_v27 = vcombine.low %v1211_v14, %v1219_v15  ;;  %v9071_v59 = vcombine.low %v1212_v16, %v1220_v17  ;;  %v1243_v30 = vld [vmem:[%s9743_s10 + $0x1ea0] sm:$0xff]  ;;  %v277_v7 = vld [vmem:[%s9743_s10 + $0x70] sm:$0xff] }
 0x358   : > { %v7918_v49 = vrot.slane %v7910_v39, %v10321_v38  ;;  %v7925_v57 = vrot.slane %v7911_v44, %v10321_v38  ;;  %v9086_v28 = vcombine.high %v1227_v22, %v1235_v23  ;;  %v9088_v29 = vcombine.high %v1228_v24, %v1236_v26  ;;  %v1251_v31 = vld [vmem:[%s9743_s10 + $0x1ee0] sm:$0xff]  ;;  %v1244_v32 = vld [vmem:[%s9743_s10 + $0x1ea8] sm:$0xff]  ;;  %v285_v16 = vld [vmem:[%s9743_s10 + $0xb0] sm:$0xff] }
 0x359   : > { %v9085_v37 = vcombine.low %v1227_v22, %v1235_v23  ;;  %v9087_v39 = vcombine.low %v1228_v24, %v1236_v26  ;;  %v9104_v44 = vcombine.high %v1244_v32, %v1252_v33  ;;  %v9101_v51 = vcombine.low %v1243_v30, %v1251_v31  ;;  %v1275_v60 = vld [vmem:[%s9743_s10 + $0x1fa0] sm:$0xff]  ;;  %v293_v17 = vld [vmem:[%s9743_s10 + $0xf0] sm:$0xff] }
 0x35a   : > { %7343 = vmatpush1.bf16.msra.mxu0 %v9005_v41  ;;  %v7926_v62 = vcombine.low %v7918_v49, %v7925_v57  ;;  %7507 = vmatpush1.bf16.msra.mxu1 %v9007_v46  ;;  %v9102_v41 = vcombine.high %v1243_v30, %v1251_v31  ;;  %v1259_v46 = vld [vmem:[%s9743_s10 + $0x1f20] sm:$0xff]  ;;  %v1260_v49 = vld [vmem:[%s9743_s10 + $0x1f28] sm:$0xff]  ;;  %v9103_v55 = vcombine.low %v1244_v32, %v1252_v33  ;;  %v301_v24 = vld [vmem:[%s9743_s10 + $0x130] sm:$0xff] }
 0x35b   : > { %7344 = vmatprep.subr.bf16.mxu0 %v9022_v48  ;;  %7508 = vmatprep.subr.bf16.mxu1 %v9024_v50  ;;  %v1267_v48 = vld [vmem:[%s9743_s10 + $0x1f60] sm:$0xff]  ;;  %v1268_v50 = vld [vmem:[%s9743_s10 + $0x1f68] sm:$0xff]  ;;  %v8130_v14 = vcombine.high %v269_v6, %v277_v7  ;;  %v8146_v22 = vcombine.high %v285_v16, %v293_v17  ;;  %v309_v26 = vld [vmem:[%s9743_s10 + $0x170] sm:$0xff] }
 0x35c   : > { %7966 = vst [vmem:[%s10336_s11 + $0x8] sm:$0xff] %v7926_v62  ;;  %v9118_v57 = vcombine.high %v1259_v46, %v1267_v48  ;;  %v9120_v58 = vcombine.high %v1260_v49, %v1268_v50  ;;  %v1276_v62 = vld [vmem:[%s9743_s10 + $0x1fa8] sm:$0xff]  ;;  %v8162_v30 = vcombine.high %v301_v24, %v309_v26  ;;  %v317_v32 = vld [vmem:[%s9743_s10 + $0x1b0] sm:$0xff] }
 0x35d   : > { %v325_v33 = vld [vmem:[%s9743_s10 + $0x1f0] sm:$0xff] }
 0x35e   : > { %7345 = vmatpush1.bf16.msra.mxu0 %v9021_v61  ;;  %7509 = vmatpush1.bf16.msra.mxu1 %v9023_v0  ;;  %v1283_v61 = vld [vmem:[%s9743_s10 + $0x1fe0] sm:$0xff]  ;;  %v1284_v0 = vld [vmem:[%s9743_s10 + $0x1fe8] sm:$0xff] }
 0x35f   : > { %7346 = vmatprep.subr.bf16.mxu0 %v9038_v1  ;;  %7510 = vmatprep.subr.bf16.mxu1 %v9040_v3  ;;  %v9117_v1 = vcombine.low %v1259_v46, %v1267_v48  ;;  %v9119_v3 = vcombine.low %v1260_v49, %v1268_v50  ;;  %v9134_v4 = vcombine.high %v1275_v60, %v1283_v61  ;;  %v333_v49 = vld [vmem:[%s9743_s10 + $0x230] sm:$0xff] }
 0x360   : > { %v9136_v5 = vcombine.high %v1276_v62, %v1284_v0  ;;  %v8178_v46 = vcombine.high %v317_v32, %v325_v33  ;;  %v341_v50 = vld [vmem:[%s9743_s10 + $0x270] sm:$0xff] }
 0x362   : > { %7347 = vmatpush1.bf16.msra.mxu0 %v9037_v8  ;;  %7511 = vmatpush1.bf16.msra.mxu1 %v9039_v10  ;;  %v270_v8 = vld [vmem:[%s9743_s10 + $0x38] sm:$0xff] }
 0x363   : > { %7348 = vmatprep.subr.bf16.mxu0 %v9054_v11  ;;  %7512 = vmatprep.subr.bf16.mxu1 %v9056_v13  ;;  %v278_v10 = vld [vmem:[%s9743_s10 + $0x78] sm:$0xff]  ;;  %v9133_v11 = vcombine.low %v1275_v60, %v1283_v61  ;;  %v9135_v13 = vcombine.low %v1276_v62, %v1284_v0  ;;  %v349_v61 = vld [vmem:[%s9743_s10 + $0x2b0] sm:$0xff] }
 0x364   : > { %v8132_v15 = vcombine.high %v270_v8, %v278_v10  ;;  %v357_v62 = vld [vmem:[%s9743_s10 + $0x2f0] sm:$0xff]  ;;  %v350_v0 = vld [vmem:[%s9743_s10 + $0x2b8] sm:$0xff] }
 0x366   : > { %7349 = vmatpush1.bf16.msra.mxu0 %v9053_v18  ;;  %7513 = vmatpush1.bf16.msra.mxu1 %v9055_v19  ;;  %v286_v18 = vld [vmem:[%s9743_s10 + $0xb8] sm:$0xff] }
 0x367   : > { %7350 = vmatprep.subr.bf16.mxu0 %v9070_v20  ;;  %7514 = vmatprep.subr.bf16.mxu1 %v9072_v21  ;;  %v294_v19 = vld [vmem:[%s9743_s10 + $0xf8] sm:$0xff]  ;;  %v8129_v20 = vcombine.low %v269_v6, %v277_v7  ;;  %v8131_v21 = vcombine.low %v270_v8, %v278_v10  ;;  %v365_v7 = vld [vmem:[%s9743_s10 + $0x330] sm:$0xff] }
 0x368   : > { %v8148_v23 = vcombine.high %v286_v18, %v294_v19  ;;  %v373_v8 = vld [vmem:[%s9743_s10 + $0x370] sm:$0xff]  ;;  %v366_v10 = vld [vmem:[%s9743_s10 + $0x338] sm:$0xff] }
 0x36a   : > { %7351 = vmatpush1.bf16.msra.mxu0 %v9069_v27  ;;  %7515 = vmatpush1.bf16.msra.mxu1 %v9071_v59  ;;  %v302_v27 = vld [vmem:[%s9743_s10 + $0x138] sm:$0xff] }
 0x36b   : > { %7352 = vmatprep.subr.bf16.mxu0 %v9086_v28  ;;  %7516 = vmatprep.subr.bf16.mxu1 %v9088_v29  ;;  %v310_v59 = vld [vmem:[%s9743_s10 + $0x178] sm:$0xff]  ;;  %v8145_v28 = vcombine.low %v285_v16, %v293_v17  ;;  %v8147_v29 = vcombine.low %v286_v18, %v294_v19  ;;  %v381_v17 = vld [vmem:[%s9743_s10 + $0x3b0] sm:$0xff] }
 0x36c   : > { %v8164_v31 = vcombine.high %v302_v27, %v310_v59  ;;  %v389_v18 = vld [vmem:[%s9743_s10 + $0x3f0] sm:$0xff]  ;;  %v382_v19 = vld [vmem:[%s9743_s10 + $0x3b8] sm:$0xff] }
 0x36e   : > { %7353 = vmatpush1.bf16.msra.mxu0 %v9085_v37  ;;  %7517 = vmatpush1.bf16.msra.mxu1 %v9087_v39  ;;  %v318_v37 = vld [vmem:[%s9743_s10 + $0x1b8] sm:$0xff] }
 0x36f   : > { %7354 = vmatprep.subr.bf16.mxu0 %v9102_v41  ;;  %7518 = vmatprep.subr.bf16.mxu1 %v9104_v44  ;;  %v326_v39 = vld [vmem:[%s9743_s10 + $0x1f8] sm:$0xff]  ;;  %v8161_v41 = vcombine.low %v301_v24, %v309_v26  ;;  %v8163_v44 = vcombine.low %v302_v27, %v310_v59  ;;  %v397_v26 = vld [vmem:[%s9743_s10 + $0x430] sm:$0xff] }
 0x370   : > { %v8180_v48 = vcombine.high %v318_v37, %v326_v39  ;;  %v405_v27 = vld [vmem:[%s9743_s10 + $0x470] sm:$0xff]  ;;  %v398_v59 = vld [vmem:[%s9743_s10 + $0x438] sm:$0xff] }
 0x372   : > { %7355 = vmatpush1.bf16.msra.mxu0 %v9101_v51  ;;  %7519 = vmatpush1.bf16.msra.mxu1 %v9103_v55  ;;  %v334_v51 = vld [vmem:[%s9743_s10 + $0x238] sm:$0xff] }
 0x373   : > { %7356 = vmatprep.subr.bf16.mxu0 %v9118_v57  ;;  %7520 = vmatprep.subr.bf16.mxu1 %v9120_v58  ;;  %v342_v55 = vld [vmem:[%s9743_s10 + $0x278] sm:$0xff]  ;;  %v8177_v57 = vcombine.low %v317_v32, %v325_v33  ;;  %v8194_v58 = vcombine.high %v333_v49, %v341_v50  ;;  %v413_v33 = vld [vmem:[%s9743_s10 + $0x4b0] sm:$0xff] }
 0x374   : > { %v8196_v60 = vcombine.high %v334_v51, %v342_v55 }
 0x376   : > { %7357 = vmatpush1.bf16.msra.mxu0 %v9117_v1  ;;  %7521 = vmatpush1.bf16.msra.mxu1 %v9119_v3  ;;  %v358_v1 = vld [vmem:[%s9743_s10 + $0x2f8] sm:$0xff]  ;;  %v8193_v3 = vcombine.low %v333_v49, %v341_v50  ;;  %v429_v50 = vld [vmem:[%s9743_s10 + $0x530] sm:$0xff] }
 0x377   : > { %7358 = vmatprep.subr.bf16.mxu0 %v9134_v4  ;;  %7522 = vmatprep.subr.bf16.mxu1 %v9136_v5  ;;  %v8195_v4 = vcombine.low %v334_v51, %v342_v55  ;;  %v8210_v5 = vcombine.high %v349_v61, %v357_v62  ;;  %v8212_v6 = vcombine.high %v350_v0, %v358_v1  ;;  %v437_v51 = vld [vmem:[%s9743_s10 + $0x570] sm:$0xff]  ;;  %v430_v55 = vld [vmem:[%s9743_s10 + $0x538] sm:$0xff] }
 0x37a   : > { %7359 = vmatpush1.bf16.msra.mxu0 %v9133_v11  ;;  %7523 = vmatpush1.bf16.msra.mxu1 %v9135_v13  ;;  %v374_v11 = vld [vmem:[%s9743_s10 + $0x378] sm:$0xff]  ;;  %v8209_v13 = vcombine.low %v349_v61, %v357_v62  ;;  %v445_v62 = vld [vmem:[%s9743_s10 + $0x5b0] sm:$0xff] }
 0x37b   : > { %7533 = vmatprep.subr.bf16.mxu0 %v8130_v14  ;;  %7697 = vmatprep.subr.bf16.mxu1 %v8132_v15  ;;  %v8211_v14 = vcombine.low %v350_v0, %v358_v1  ;;  %v8226_v15 = vcombine.high %v365_v7, %v373_v8  ;;  %v8228_v16 = vcombine.high %v366_v10, %v374_v11  ;;  %v453_v0 = vld [vmem:[%s9743_s10 + $0x5f0] sm:$0xff]  ;;  %v446_v1 = vld [vmem:[%s9743_s10 + $0x5b8] sm:$0xff] }
 0x37d   : > { %7361 = vmatmul.mubr.bf16.vlgmr.msra.gmra.mrb[8].mxu0 %v10068_v12  ;;  %7525 = vmatmul.mubr.bf16.vlgmr.msra.gmra.mrb[8].mxu1 %v10068_v12 }
 0x37e   : > { %7534 = vmatpush1.bf16.msra.mxu0 %v8129_v20  ;;  %7698 = vmatpush1.bf16.msra.mxu1 %v8131_v21  ;;  %v390_v20 = vld [vmem:[%s9743_s10 + $0x3f8] sm:$0xff]  ;;  %v8225_v21 = vcombine.low %v365_v7, %v373_v8  ;;  %v461_v8 = vld [vmem:[%s9743_s10 + $0x630] sm:$0xff] }
 0x37f   : > { %7535 = vmatprep.subr.bf16.mxu0 %v8146_v22  ;;  %7699 = vmatprep.subr.bf16.mxu1 %v8148_v23  ;;  %v8227_v22 = vcombine.low %v366_v10, %v374_v11  ;;  %v8242_v23 = vcombine.high %v381_v17, %v389_v18  ;;  %v8244_v24 = vcombine.high %v382_v19, %v390_v20  ;;  %v469_v10 = vld [vmem:[%s9743_s10 + $0x670] sm:$0xff]  ;;  %v462_v11 = vld [vmem:[%s9743_s10 + $0x638] sm:$0xff] }
 0x380   : > { %7565 = vmatprep.mubr.bf16.mxu0 %v9797_v9  ;;  %7729 = vmatprep.mubr.bf16.mxu1 %v9797_v9  ;;  %v8179_v9 = vcombine.low %v318_v37, %v326_v39  ;;  %v421_v37 = vld [vmem:[%s9743_s10 + $0x4f0] sm:$0xff]  ;;  %v414_v39 = vld [vmem:[%s9743_s10 + $0x4b8] sm:$0xff] }
 0x382   : > { %7536 = vmatpush1.bf16.msra.mxu0 %v8145_v28  ;;  %7700 = vmatpush1.bf16.msra.mxu1 %v8147_v29  ;;  %v406_v28 = vld [vmem:[%s9743_s10 + $0x478] sm:$0xff]  ;;  %v8241_v29 = vcombine.low %v381_v17, %v389_v18  ;;  %v477_v18 = vld [vmem:[%s9743_s10 + $0x6b0] sm:$0xff] }
 0x383   : > { %7537 = vmatprep.subr.bf16.mxu0 %v8162_v30  ;;  %7701 = vmatprep.subr.bf16.mxu1 %v8164_v31  ;;  %v8243_v30 = vcombine.low %v382_v19, %v390_v20  ;;  %v8258_v31 = vcombine.high %v397_v26, %v405_v27  ;;  %v8260_v32 = vcombine.high %v398_v59, %v406_v28  ;;  %v485_v19 = vld [vmem:[%s9743_s10 + $0x6f0] sm:$0xff]  ;;  %v478_v20 = vld [vmem:[%s9743_s10 + $0x6b8] sm:$0xff] }
 0x386   : > { %7538 = vmatpush1.bf16.msra.mxu0 %v8161_v41  ;;  %7702 = vmatpush1.bf16.msra.mxu1 %v8163_v44  ;;  %v422_v41 = vld [vmem:[%s9743_s10 + $0x4f8] sm:$0xff]  ;;  %v8257_v44 = vcombine.low %v397_v26, %v405_v27  ;;  %v493_v27 = vld [vmem:[%s9743_s10 + $0x730] sm:$0xff] }
 0x387   : > { %7539 = vmatprep.subr.bf16.mxu0 %v8178_v46  ;;  %7703 = vmatprep.subr.bf16.mxu1 %v8180_v48  ;;  %v8259_v46 = vcombine.low %v398_v59, %v406_v28  ;;  %v8274_v48 = vcombine.high %v413_v33, %v421_v37  ;;  %v8276_v49 = vcombine.high %v414_v39, %v422_v41  ;;  %v501_v59 = vld [vmem:[%s9743_s10 + $0x770] sm:$0xff]  ;;  %v494_v28 = vld [vmem:[%s9743_s10 + $0x738] sm:$0xff] }
 0x38a   : > { %7540 = vmatpush1.bf16.msra.mxu0 %v8177_v57  ;;  %7704 = vmatpush1.bf16.msra.mxu1 %v8179_v9  ;;  %v438_v57 = vld [vmem:[%s9743_s10 + $0x578] sm:$0xff]  ;;  %v8273_v9 = vcombine.low %v413_v33, %v421_v37  ;;  %v509_v37 = vld [vmem:[%s9743_s10 + $0x7b0] sm:$0xff] }
 0x38b   : > { %7541 = vmatprep.subr.bf16.mxu0 %v8194_v58  ;;  %7705 = vmatprep.subr.bf16.mxu1 %v8196_v60  ;;  %v8275_v58 = vcombine.low %v414_v39, %v422_v41  ;;  %v8290_v60 = vcombine.high %v429_v50, %v437_v51  ;;  %v8292_v61 = vcombine.high %v430_v55, %v438_v57  ;;  %v517_v39 = vld [vmem:[%s9743_s10 + $0x7f0] sm:$0xff]  ;;  %v510_v41 = vld [vmem:[%s9743_s10 + $0x7b8] sm:$0xff] }
 0x38e   : > { %7542 = vmatpush1.bf16.msra.mxu0 %v8193_v3  ;;  %7706 = vmatpush1.bf16.msra.mxu1 %v8195_v4  ;;  %v454_v3 = vld [vmem:[%s9743_s10 + $0x5f8] sm:$0xff]  ;;  %v8289_v4 = vcombine.low %v429_v50, %v437_v51  ;;  %v525_v51 = vld [vmem:[%s9743_s10 + $0x830] sm:$0xff] }
 0x38f   : > { %7543 = vmatprep.subr.bf16.mxu0 %v8210_v5  ;;  %7707 = vmatprep.subr.bf16.mxu1 %v8212_v6  ;;  %v8291_v5 = vcombine.low %v430_v55, %v438_v57  ;;  %v8306_v6 = vcombine.high %v445_v62, %v453_v0  ;;  %v8308_v7 = vcombine.high %v446_v1, %v454_v3  ;;  %v533_v55 = vld [vmem:[%s9743_s10 + $0x870] sm:$0xff]  ;;  %v526_v57 = vld [vmem:[%s9743_s10 + $0x838] sm:$0xff] }
 0x392   : > { %7544 = vmatpush1.bf16.msra.mxu0 %v8209_v13  ;;  %7708 = vmatpush1.bf16.msra.mxu1 %v8211_v14  ;;  %v470_v13 = vld [vmem:[%s9743_s10 + $0x678] sm:$0xff]  ;;  %v8305_v14 = vcombine.low %v445_v62, %v453_v0  ;;  %v541_v0 = vld [vmem:[%s9743_s10 + $0x8b0] sm:$0xff] }
 0x393   : > { %7545 = vmatprep.subr.bf16.mxu0 %v8226_v15  ;;  %7709 = vmatprep.subr.bf16.mxu1 %v8228_v16  ;;  %v8307_v15 = vcombine.low %v446_v1, %v454_v3  ;;  %v8322_v16 = vcombine.high %v461_v8, %v469_v10  ;;  %v8324_v17 = vcombine.high %v462_v11, %v470_v13  ;;  %v549_v1 = vld [vmem:[%s9743_s10 + $0x8f0] sm:$0xff]  ;;  %v542_v3 = vld [vmem:[%s9743_s10 + $0x8b8] sm:$0xff] }
 0x396   : > { %7546 = vmatpush1.bf16.msra.mxu0 %v8225_v21  ;;  %7710 = vmatpush1.bf16.msra.mxu1 %v8227_v22  ;;  %v486_v21 = vld [vmem:[%s9743_s10 + $0x6f8] sm:$0xff]  ;;  %v8321_v22 = vcombine.low %v461_v8, %v469_v10  ;;  %v557_v10 = vld [vmem:[%s9743_s10 + $0x930] sm:$0xff] }
 0x397   : > { %7547 = vmatprep.subr.bf16.mxu0 %v8242_v23  ;;  %7711 = vmatprep.subr.bf16.mxu1 %v8244_v24  ;;  %v8323_v23 = vcombine.low %v462_v11, %v470_v13  ;;  %v8338_v24 = vcombine.high %v477_v18, %v485_v19  ;;  %v8340_v26 = vcombine.high %v478_v20, %v486_v21  ;;  %v565_v11 = vld [vmem:[%s9743_s10 + $0x970] sm:$0xff]  ;;  %v558_v13 = vld [vmem:[%s9743_s10 + $0x938] sm:$0xff] }
 0x39a   : > { %7548 = vmatpush1.bf16.msra.mxu0 %v8241_v29  ;;  %7712 = vmatpush1.bf16.msra.mxu1 %v8243_v30  ;;  %v502_v29 = vld [vmem:[%s9743_s10 + $0x778] sm:$0xff]  ;;  %v8337_v30 = vcombine.low %v477_v18, %v485_v19  ;;  %v573_v19 = vld [vmem:[%s9743_s10 + $0x9b0] sm:$0xff] }
 0x39b   : > { %7549 = vmatprep.subr.bf16.mxu0 %v8258_v31  ;;  %7713 = vmatprep.subr.bf16.mxu1 %v8260_v32  ;;  %v8339_v31 = vcombine.low %v478_v20, %v486_v21  ;;  %v8354_v32 = vcombine.high %v493_v27, %v501_v59  ;;  %v8356_v33 = vcombine.high %v494_v28, %v502_v29  ;;  %v581_v20 = vld [vmem:[%s9743_s10 + $0x9f0] sm:$0xff]  ;;  %v574_v21 = vld [vmem:[%s9743_s10 + $0x9b8] sm:$0xff] }
 0x39e   : > { %7550 = vmatpush1.bf16.msra.mxu0 %v8257_v44  ;;  %7714 = vmatpush1.bf16.msra.mxu1 %v8259_v46  ;;  %v518_v44 = vld [vmem:[%s9743_s10 + $0x7f8] sm:$0xff]  ;;  %v8353_v46 = vcombine.low %v493_v27, %v501_v59  ;;  %v589_v27 = vld [vmem:[%s9743_s10 + $0xa30] sm:$0xff] }
 0x39f   : > { %7551 = vmatprep.subr.bf16.mxu0 %v8274_v48  ;;  %7715 = vmatprep.subr.bf16.mxu1 %v8276_v49  ;;  %v8355_v48 = vcombine.low %v494_v28, %v502_v29  ;;  %v8370_v49 = vcombine.high %v509_v37, %v517_v39  ;;  %v8372_v50 = vcombine.high %v510_v41, %v518_v44  ;;  %v597_v59 = vld [vmem:[%s9743_s10 + $0xa70] sm:$0xff]  ;;  %v590_v28 = vld [vmem:[%s9743_s10 + $0xa38] sm:$0xff] }
 0x3a0   : > { %v598_v29 = vld [vmem:[%s9743_s10 + $0xa78] sm:$0xff] }
 0x3a2   : > { %7552 = vmatpush1.bf16.msra.mxu0 %v8273_v9  ;;  %7716 = vmatpush1.bf16.msra.mxu1 %v8275_v58  ;;  %v534_v9 = vld [vmem:[%s9743_s10 + $0x878] sm:$0xff]  ;;  %v8369_v58 = vcombine.low %v509_v37, %v517_v39  ;;  %v613_v37 = vld [vmem:[%s9743_s10 + $0xaf0] sm:$0xff] }
 0x3a3   : > { %7553 = vmatprep.subr.bf16.mxu0 %v8290_v60  ;;  %7717 = vmatprep.subr.bf16.mxu1 %v8292_v61  ;;  %v8371_v60 = vcombine.low %v510_v41, %v518_v44  ;;  %v8386_v61 = vcombine.high %v525_v51, %v533_v55  ;;  %v8388_v62 = vcombine.high %v526_v57, %v534_v9  ;;  %v606_v39 = vld [vmem:[%s9743_s10 + $0xab8] sm:$0xff] }
 0x3a4   : > { %v614_v41 = vld [vmem:[%s9743_s10 + $0xaf8] sm:$0xff]  ;;  %v8449_v44 = vcombine.low %v589_v27, %v597_v59 }
 0x3a6   : > { %7554 = vmatpush1.bf16.msra.mxu0 %v8289_v4  ;;  %7718 = vmatpush1.bf16.msra.mxu1 %v8291_v5  ;;  %v550_v4 = vld [vmem:[%s9743_s10 + $0x8f8] sm:$0xff]  ;;  %v8385_v5 = vcombine.low %v525_v51, %v533_v55  ;;  %v629_v51 = vld [vmem:[%s9743_s10 + $0xb70] sm:$0xff] }
 0x3a7   : > { %7555 = vmatprep.subr.bf16.mxu0 %v8306_v6  ;;  %7719 = vmatprep.subr.bf16.mxu1 %v8308_v7  ;;  %v8387_v6 = vcombine.low %v526_v57, %v534_v9  ;;  %v8402_v7 = vcombine.high %v541_v0, %v549_v1  ;;  %v8404_v8 = vcombine.high %v542_v3, %v550_v4  ;;  %v622_v55 = vld [vmem:[%s9743_s10 + $0xb38] sm:$0xff] }
 0x3a8   : > { %v630_v57 = vld [vmem:[%s9743_s10 + $0xb78] sm:$0xff] }
 0x3aa   : > { %7556 = vmatpush1.bf16.msra.mxu0 %v8305_v14  ;;  %7720 = vmatpush1.bf16.msra.mxu1 %v8307_v15  ;;  %v566_v14 = vld [vmem:[%s9743_s10 + $0x978] sm:$0xff]  ;;  %v8401_v15 = vcombine.low %v541_v0, %v549_v1  ;;  %v645_v0 = vld [vmem:[%s9743_s10 + $0xbf0] sm:$0xff] }
 0x3ab   : > { %7557 = vmatprep.subr.bf16.mxu0 %v8322_v16  ;;  %7721 = vmatprep.subr.bf16.mxu1 %v8324_v17  ;;  %v8403_v16 = vcombine.low %v542_v3, %v550_v4  ;;  %v8418_v17 = vcombine.high %v557_v10, %v565_v11  ;;  %v8420_v18 = vcombine.high %v558_v13, %v566_v14  ;;  %v638_v1 = vld [vmem:[%s9743_s10 + $0xbb8] sm:$0xff] }
 0x3ac   : > { %v646_v3 = vld [vmem:[%s9743_s10 + $0xbf8] sm:$0xff] }
 0x3ae   : > { %7558 = vmatpush1.bf16.msra.mxu0 %v8321_v22  ;;  %7722 = vmatpush1.bf16.msra.mxu1 %v8323_v23  ;;  %v582_v22 = vld [vmem:[%s9743_s10 + $0x9f8] sm:$0xff]  ;;  %v8419_v23 = vcombine.low %v558_v13, %v566_v14 }
 0x3af   : > { %7559 = vmatprep.subr.bf16.mxu0 %v8338_v24  ;;  %7723 = vmatprep.subr.bf16.mxu1 %v8340_v26  ;;  %v8434_v24 = vcombine.high %v573_v19, %v581_v20  ;;  %v8436_v26 = vcombine.high %v574_v21, %v582_v22  ;;  %v662_v13 = vld [vmem:[%s9743_s10 + $0xc78] sm:$0xff] }
 0x3b2   : > { %7560 = vmatpush1.bf16.msra.mxu0 %v8337_v30  ;;  %7724 = vmatpush1.bf16.msra.mxu1 %v8339_v31  ;;  %v8433_v30 = vcombine.low %v573_v19, %v581_v20  ;;  %v8450_v31 = vcombine.high %v589_v27, %v597_v59  ;;  %v677_v19 = vld [vmem:[%s9743_s10 + $0xcf0] sm:$0xff]  ;;  %v670_v20 = vld [vmem:[%s9743_s10 + $0xcb8] sm:$0xff] }
 0x3b3   : > { %7561 = vmatprep.subr.bf16.mxu0 %v8354_v32  ;;  %7725 = vmatprep.subr.bf16.mxu1 %v8356_v33  ;;  %v8452_v32 = vcombine.high %v590_v28, %v598_v29  ;;  %v605_v33 = vld [vmem:[%s9743_s10 + $0xab0] sm:$0xff]  ;;  %v686_v59 = vld [vmem:[%s9743_s10 + $0xd38] sm:$0xff] }
 0x3b4   : > { %v8465_v9 = vcombine.low %v605_v33, %v613_v37  ;;  %v693_v27 = vld [vmem:[%s9743_s10 + $0xd70] sm:$0xff] }
 0x3b6   : > { %7562 = vmatpush1.bf16.msra.mxu0 %v8353_v46  ;;  %7726 = vmatpush1.bf16.msra.mxu1 %v8355_v48  ;;  %v8451_v46 = vcombine.low %v590_v28, %v598_v29  ;;  %v8466_v48 = vcombine.high %v605_v33, %v613_v37  ;;  %v694_v28 = vld [vmem:[%s9743_s10 + $0xd78] sm:$0xff]  ;;  %v709_v33 = vld [vmem:[%s9743_s10 + $0xdf0] sm:$0xff] }
 0x3b7   : > { %7563 = vmatprep.subr.bf16.mxu0 %v8370_v49  ;;  %7727 = vmatprep.subr.bf16.mxu1 %v8372_v50  ;;  %v8468_v49 = vcombine.high %v606_v39, %v614_v41  ;;  %v621_v50 = vld [vmem:[%s9743_s10 + $0xb30] sm:$0xff]  ;;  %v702_v37 = vld [vmem:[%s9743_s10 + $0xdb8] sm:$0xff] }
 0x3b8   : > { %v8481_v4 = vcombine.low %v621_v50, %v629_v51 }
 0x3ba   : > { %7564 = vmatpush1.bf16.msra.mxu0 %v8369_v58  ;;  %7728 = vmatpush1.bf16.msra.mxu1 %v8371_v60  ;;  %v8467_v58 = vcombine.low %v606_v39, %v614_v41  ;;  %v8482_v60 = vcombine.high %v621_v50, %v629_v51  ;;  %v710_v39 = vld [vmem:[%s9743_s10 + $0xdf8] sm:$0xff]  ;;  %v725_v50 = vld [vmem:[%s9743_s10 + $0xe70] sm:$0xff] }
 0x3bb   : > { %7574 = vmatprep.subr.bf16.mxu0 %v8386_v61  ;;  %7738 = vmatprep.subr.bf16.mxu1 %v8388_v62  ;;  %v8484_v61 = vcombine.high %v622_v55, %v630_v57  ;;  %v637_v62 = vld [vmem:[%s9743_s10 + $0xbb0] sm:$0xff]  ;;  %v718_v51 = vld [vmem:[%s9743_s10 + $0xe38] sm:$0xff] }
 0x3bc   : > { %v8497_v14 = vcombine.low %v637_v62, %v645_v0 }
 0x3bd   : > { %7566 = vmatmul.mubr.bf16.vlgmr.msra.gmra.mrb[12].mxu0 %v9842_v25  ;;  %7730 = vmatmul.mubr.bf16.vlgmr.msra.gmra.mrb[12].mxu1 %v9842_v25  ;;  %v8417_v25 = vcombine.low %v557_v10, %v565_v11  ;;  %v661_v10 = vld [vmem:[%s9743_s10 + $0xc70] sm:$0xff]  ;;  %v654_v11 = vld [vmem:[%s9743_s10 + $0xc38] sm:$0xff] }
 0x3be   : > { %7575 = vmatpush1.bf16.msra.mxu0 %v8385_v5  ;;  %7739 = vmatpush1.bf16.msra.mxu1 %v8387_v6  ;;  %v8483_v5 = vcombine.low %v622_v55, %v630_v57  ;;  %v8498_v6 = vcombine.high %v637_v62, %v645_v0  ;;  %v726_v55 = vld [vmem:[%s9743_s10 + $0xe78] sm:$0xff]  ;;  %v741_v62 = vld [vmem:[%s9743_s10 + $0xef0] sm:$0xff] }
 0x3bf   : > { %7576 = vmatprep.subr.bf16.mxu0 %v8402_v7  ;;  %7740 = vmatprep.subr.bf16.mxu1 %v8404_v8  ;;  %v8500_v7 = vcombine.high %v638_v1, %v646_v3  ;;  %v653_v8 = vld [vmem:[%s9743_s10 + $0xc30] sm:$0xff]  ;;  %v734_v0 = vld [vmem:[%s9743_s10 + $0xeb8] sm:$0xff] }
 0x3c0   : > { %7606 = vmatprep.mubr.bf16.mxu0 %v9850_v63  ;;  %7770 = vmatprep.mubr.bf16.mxu1 %v9850_v63  ;;  %v8435_v63 = vcombine.low %v574_v21, %v582_v22  ;;  %v678_v21 = vld [vmem:[%s9743_s10 + $0xcf8] sm:$0xff]  ;;  %v8513_v22 = vcombine.low %v653_v8, %v661_v10 }
 0x3c2   : > { %7577 = vmatpush1.bf16.msra.mxu0 %v8401_v15  ;;  %7741 = vmatpush1.bf16.msra.mxu1 %v8403_v16  ;;  %v8499_v15 = vcombine.low %v638_v1, %v646_v3  ;;  %v8514_v16 = vcombine.high %v653_v8, %v661_v10  ;;  %v742_v1 = vld [vmem:[%s9743_s10 + $0xef8] sm:$0xff]  ;;  %v757_v8 = vld [vmem:[%s9743_s10 + $0xf70] sm:$0xff] }
 0x3c3   : > { %7578 = vmatprep.subr.bf16.mxu0 %v8418_v17  ;;  %7742 = vmatprep.subr.bf16.mxu1 %v8420_v18  ;;  %v8516_v17 = vcombine.high %v654_v11, %v662_v13  ;;  %v669_v18 = vld [vmem:[%s9743_s10 + $0xcb0] sm:$0xff]  ;;  %v750_v10 = vld [vmem:[%s9743_s10 + $0xf38] sm:$0xff] }
 0x3c4   : > { %v8529_v29 = vcombine.low %v669_v18, %v677_v19 }
 0x3c6   : > { %7579 = vmatpush1.bf16.msra.mxu0 %v8417_v25  ;;  %7743 = vmatpush1.bf16.msra.mxu1 %v8419_v23  ;;  %v8515_v25 = vcombine.low %v654_v11, %v662_v13  ;;  %v8530_v23 = vcombine.high %v669_v18, %v677_v19  ;;  %v758_v11 = vld [vmem:[%s9743_s10 + $0xf78] sm:$0xff]  ;;  %v773_v18 = vld [vmem:[%s9743_s10 + $0xff0] sm:$0xff] }
 0x3c7   : > { %7580 = vmatprep.subr.bf16.mxu0 %v8434_v24  ;;  %7744 = vmatprep.subr.bf16.mxu1 %v8436_v26  ;;  %v8532_v24 = vcombine.high %v670_v20, %v678_v21  ;;  %v685_v26 = vld [vmem:[%s9743_s10 + $0xd30] sm:$0xff]  ;;  %v766_v19 = vld [vmem:[%s9743_s10 + $0xfb8] sm:$0xff] }
 0x3c8   : > { %v8545_v41 = vcombine.low %v685_v26, %v693_v27 }
 0x3ca   : > { %7581 = vmatpush1.bf16.msra.mxu0 %v8433_v30  ;;  %7745 = vmatpush1.bf16.msra.mxu1 %v8435_v63  ;;  %v8531_v30 = vcombine.low %v670_v20, %v678_v21  ;;  %v8546_v63 = vcombine.high %v685_v26, %v693_v27  ;;  %v774_v20 = vld [vmem:[%s9743_s10 + $0xff8] sm:$0xff]  ;;  %v789_v26 = vld [vmem:[%s9743_s10 + $0x1070] sm:$0xff] }
 0x3cb   : > { %7582 = vmatprep.subr.bf16.mxu0 %v8450_v31  ;;  %7746 = vmatprep.subr.bf16.mxu1 %v8452_v32  ;;  %v8548_v31 = vcombine.high %v686_v59, %v694_v28  ;;  %v701_v32 = vld [vmem:[%s9743_s10 + $0xdb0] sm:$0xff]  ;;  %v782_v27 = vld [vmem:[%s9743_s10 + $0x1038] sm:$0xff] }
 0x3cc   : > { %v8561_v57 = vcombine.low %v701_v32, %v709_v33 }
 0x3ce   : > { %7583 = vmatpush1.bf16.msra.mxu0 %v8449_v44  ;;  %7747 = vmatpush1.bf16.msra.mxu1 %v8451_v46  ;;  %v8547_v44 = vcombine.low %v686_v59, %v694_v28  ;;  %v8562_v46 = vcombine.high %v701_v32, %v709_v33  ;;  %v790_v59 = vld [vmem:[%s9743_s10 + $0x1078] sm:$0xff]  ;;  %v805_v32 = vld [vmem:[%s9743_s10 + $0x10f0] sm:$0xff] }
 0x3cf   : > { %7584 = vmatprep.subr.bf16.mxu0 %v8466_v48  ;;  %7748 = vmatprep.subr.bf16.mxu1 %v8468_v49  ;;  %v8564_v48 = vcombine.high %v702_v37, %v710_v39  ;;  %v717_v49 = vld [vmem:[%s9743_s10 + $0xe30] sm:$0xff]  ;;  %v798_v33 = vld [vmem:[%s9743_s10 + $0x10b8] sm:$0xff] }
 0x3d0   : > { %v8577_v3 = vcombine.low %v717_v49, %v725_v50 }
 0x3d2   : > { %7585 = vmatpush1.bf16.msra.mxu0 %v8465_v9  ;;  %7749 = vmatpush1.bf16.msra.mxu1 %v8467_v58  ;;  %v8563_v9 = vcombine.low %v702_v37, %v710_v39  ;;  %v8578_v58 = vcombine.high %v717_v49, %v725_v50  ;;  %v806_v37 = vld [vmem:[%s9743_s10 + $0x10f8] sm:$0xff]  ;;  %v821_v49 = vld [vmem:[%s9743_s10 + $0x1170] sm:$0xff] }
 0x3d3   : > { %7586 = vmatprep.subr.bf16.mxu0 %v8482_v60  ;;  %7750 = vmatprep.subr.bf16.mxu1 %v8484_v61  ;;  %v8580_v60 = vcombine.high %v718_v51, %v726_v55  ;;  %v733_v61 = vld [vmem:[%s9743_s10 + $0xeb0] sm:$0xff]  ;;  %v814_v50 = vld [vmem:[%s9743_s10 + $0x1138] sm:$0xff] }
 0x3d4   : > { %v8593_v13 = vcombine.low %v733_v61, %v741_v62 }
 0x3d6   : > { %7587 = vmatpush1.bf16.msra.mxu0 %v8481_v4  ;;  %7751 = vmatpush1.bf16.msra.mxu1 %v8483_v5  ;;  %v8579_v4 = vcombine.low %v718_v51, %v726_v55  ;;  %v8594_v5 = vcombine.high %v733_v61, %v741_v62  ;;  %v822_v51 = vld [vmem:[%s9743_s10 + $0x1178] sm:$0xff]  ;;  %v837_v61 = vld [vmem:[%s9743_s10 + $0x11f0] sm:$0xff] }
 0x3d7   : > { %7588 = vmatprep.subr.bf16.mxu0 %v8498_v6  ;;  %7752 = vmatprep.subr.bf16.mxu1 %v8500_v7  ;;  %v8596_v6 = vcombine.high %v734_v0, %v742_v1  ;;  %v749_v7 = vld [vmem:[%s9743_s10 + $0xf30] sm:$0xff]  ;;  %v830_v62 = vld [vmem:[%s9743_s10 + $0x11b8] sm:$0xff] }
 0x3d8   : > { %v8609_v21 = vcombine.low %v749_v7, %v757_v8 }
 0x3da   : > { %7589 = vmatpush1.bf16.msra.mxu0 %v8497_v14  ;;  %7753 = vmatpush1.bf16.msra.mxu1 %v8499_v15  ;;  %v8595_v14 = vcombine.low %v734_v0, %v742_v1  ;;  %v8610_v15 = vcombine.high %v749_v7, %v757_v8  ;;  %v838_v0 = vld [vmem:[%s9743_s10 + $0x11f8] sm:$0xff]  ;;  %v8675_v1 = vcombine.low %v814_v50, %v822_v51 }
 0x3db   : > { %7590 = vmatprep.subr.bf16.mxu0 %v8514_v16  ;;  %7754 = vmatprep.subr.bf16.mxu1 %v8516_v17  ;;  %v8612_v16 = vcombine.high %v750_v10, %v758_v11  ;;  %v765_v17 = vld [vmem:[%s9743_s10 + $0xfb0] sm:$0xff]  ;;  %v846_v7 = vld [vmem:[%s9743_s10 + $0x1238] sm:$0xff] }
 0x3dc   : > { %v8625_v28 = vcombine.low %v765_v17, %v773_v18  ;;  %v854_v8 = vld [vmem:[%s9743_s10 + $0x1278] sm:$0xff] }
 0x3de   : > { %7591 = vmatpush1.bf16.msra.mxu0 %v8513_v22  ;;  %7755 = vmatpush1.bf16.msra.mxu1 %v8515_v25  ;;  %v8611_v22 = vcombine.low %v750_v10, %v758_v11  ;;  %v8626_v25 = vcombine.high %v765_v17, %v773_v18  ;;  %v870_v17 = vld [vmem:[%s9743_s10 + $0x12f8] sm:$0xff] }
 0x3df   : > { %7592 = vmatprep.subr.bf16.mxu0 %v8530_v23  ;;  %7756 = vmatprep.subr.bf16.mxu1 %v8532_v24  ;;  %v8628_v23 = vcombine.high %v766_v19, %v774_v20  ;;  %v781_v24 = vld [vmem:[%s9743_s10 + $0x1030] sm:$0xff] }
 0x3e0   : > { %v8641_v39 = vcombine.low %v781_v24, %v789_v26 }
 0x3e2   : > { %7593 = vmatpush1.bf16.msra.mxu0 %v8529_v29  ;;  %7757 = vmatpush1.bf16.msra.mxu1 %v8531_v30  ;;  %v8627_v29 = vcombine.low %v766_v19, %v774_v20  ;;  %v8642_v30 = vcombine.high %v781_v24, %v789_v26  ;;  %v8707_v19 = vcombine.low %v846_v7, %v854_v8  ;;  %v886_v24 = vld [vmem:[%s9743_s10 + $0x1378] sm:$0xff] }
 0x3e3   : > { %7594 = vmatprep.subr.bf16.mxu0 %v8546_v63  ;;  %7758 = vmatprep.subr.bf16.mxu1 %v8548_v31  ;;  %v8644_v63 = vcombine.high %v782_v27, %v790_v59  ;;  %v797_v31 = vld [vmem:[%s9743_s10 + $0x10b0] sm:$0xff] }
 0x3e4   : > { %v8657_v55 = vcombine.low %v797_v31, %v805_v32 }
 0x3e6   : > { %7595 = vmatpush1.bf16.msra.mxu0 %v8545_v41  ;;  %7759 = vmatpush1.bf16.msra.mxu1 %v8547_v44  ;;  %v8643_v41 = vcombine.low %v782_v27, %v790_v59  ;;  %v8658_v44 = vcombine.high %v797_v31, %v805_v32  ;;  %v902_v31 = vld [vmem:[%s9743_s10 + $0x13f8] sm:$0xff] }
 0x3e7   : > { %7596 = vmatprep.subr.bf16.mxu0 %v8562_v46  ;;  %7760 = vmatprep.subr.bf16.mxu1 %v8564_v48  ;;  %v8660_v46 = vcombine.high %v798_v33, %v806_v37  ;;  %v813_v48 = vld [vmem:[%s9743_s10 + $0x1130] sm:$0xff] }
 0x3ea   : > { %7597 = vmatpush1.bf16.msra.mxu0 %v8561_v57  ;;  %7761 = vmatpush1.bf16.msra.mxu1 %v8563_v9  ;;  %v8659_v57 = vcombine.low %v798_v33, %v806_v37  ;;  %v8674_v9 = vcombine.high %v813_v48, %v821_v49 }
 0x3eb   : > { %7598 = vmatprep.subr.bf16.mxu0 %v8578_v58  ;;  %7762 = vmatprep.subr.bf16.mxu1 %v8580_v60  ;;  %v8676_v58 = vcombine.high %v814_v50, %v822_v51  ;;  %v829_v60 = vld [vmem:[%s9743_s10 + $0x11b0] sm:$0xff] }
 0x3ec   : > { %v8689_v10 = vcombine.low %v829_v60, %v837_v61 }
 0x3ee   : > { %7599 = vmatpush1.bf16.msra.mxu0 %v8577_v3  ;;  %7763 = vmatpush1.bf16.msra.mxu1 %v8579_v4  ;;  %v8690_v3 = vcombine.high %v829_v60, %v837_v61  ;;  %v8692_v4 = vcombine.high %v830_v62, %v838_v0  ;;  %v934_v60 = vld [vmem:[%s9743_s10 + $0x14f8] sm:$0xff] }
 0x3ef   : > { %7600 = vmatprep.subr.bf16.mxu0 %v8594_v5  ;;  %7764 = vmatprep.subr.bf16.mxu1 %v8596_v6  ;;  %v845_v5 = vld [vmem:[%s9743_s10 + $0x1230] sm:$0xff] }
 0x3f0   : > { %v853_v6 = vld [vmem:[%s9743_s10 + $0x1270] sm:$0xff] }
 0x3f1   : > { %v8706_v11 = vcombine.high %v845_v5, %v853_v6  ;;  %v8705_v18 = vcombine.low %v845_v5, %v853_v6  ;;  %v950_v5 = vld [vmem:[%s9743_s10 + $0x1578] sm:$0xff] }
 0x3f2   : > { %7601 = vmatpush1.bf16.msra.mxu0 %v8593_v13  ;;  %7765 = vmatpush1.bf16.msra.mxu1 %v8595_v14  ;;  %v8708_v13 = vcombine.high %v846_v7, %v854_v8  ;;  %v861_v14 = vld [vmem:[%s9743_s10 + $0x12b0] sm:$0xff] }
 0x3f3   : > { %7602 = vmatprep.subr.bf16.mxu0 %v8610_v15  ;;  %7766 = vmatprep.subr.bf16.mxu1 %v8612_v16  ;;  %v869_v15 = vld [vmem:[%s9743_s10 + $0x12f0] sm:$0xff]  ;;  %v862_v16 = vld [vmem:[%s9743_s10 + $0x12b8] sm:$0xff] }
 0x3f4   : > { %v8722_v20 = vcombine.high %v861_v14, %v869_v15  ;;  %v8721_v26 = vcombine.low %v861_v14, %v869_v15  ;;  %v8723_v27 = vcombine.low %v862_v16, %v870_v17  ;;  %v966_v14 = vld [vmem:[%s9743_s10 + $0x15f8] sm:$0xff] }
 0x3f6   : > { %7603 = vmatpush1.bf16.msra.mxu0 %v8609_v21  ;;  %7767 = vmatpush1.bf16.msra.mxu1 %v8611_v22  ;;  %v8724_v21 = vcombine.high %v862_v16, %v870_v17  ;;  %v877_v22 = vld [vmem:[%s9743_s10 + $0x1330] sm:$0xff] }
 0x3f7   : > { %7604 = vmatprep.subr.bf16.mxu0 %v8626_v25  ;;  %7768 = vmatprep.subr.bf16.mxu1 %v8628_v23  ;;  %v885_v25 = vld [vmem:[%s9743_s10 + $0x1370] sm:$0xff]  ;;  %v878_v23 = vld [vmem:[%s9743_s10 + $0x1338] sm:$0xff] }
 0x3f8   : > { %v8738_v59 = vcombine.high %v877_v22, %v885_v25  ;;  %v8737_v32 = vcombine.low %v877_v22, %v885_v25  ;;  %v8739_v33 = vcombine.low %v878_v23, %v886_v24  ;;  %v982_v22 = vld [vmem:[%s9743_s10 + $0x1678] sm:$0xff] }
 0x3fa   : > { %7605 = vmatpush1.bf16.msra.mxu0 %v8625_v28  ;;  %7769 = vmatpush1.bf16.msra.mxu1 %v8627_v29  ;;  %v8740_v28 = vcombine.high %v878_v23, %v886_v24  ;;  %v893_v29 = vld [vmem:[%s9743_s10 + $0x13b0] sm:$0xff] }
 0x3fb   : > { %7615 = vmatprep.subr.bf16.mxu0 %v8642_v30  ;;  %7779 = vmatprep.subr.bf16.mxu1 %v8644_v63  ;;  %v901_v30 = vld [vmem:[%s9743_s10 + $0x13f0] sm:$0xff]  ;;  %v894_v63 = vld [vmem:[%s9743_s10 + $0x13b8] sm:$0xff] }
 0x3fc   : > { %v8754_v37 = vcombine.high %v893_v29, %v901_v30  ;;  %v8755_v50 = vcombine.low %v894_v63, %v902_v31 }
 0x3fd   : > { %7607 = vmatmul.mubr.bf16.vlgmr.msra.gmra.mrb[12].mxu0 %v9924_v40  ;;  %7771 = vmatmul.mubr.bf16.vlgmr.msra.gmra.mrb[12].mxu1 %v9924_v40  ;;  %v8673_v40 = vcombine.low %v813_v48, %v821_v49  ;;  %v918_v48 = vld [vmem:[%s9743_s10 + $0x1478] sm:$0xff]  ;;  %v8753_v49 = vcombine.low %v893_v29, %v901_v30 }
 0x3fe   : > { %7616 = vmatpush1.bf16.msra.mxu0 %v8641_v39  ;;  %7780 = vmatpush1.bf16.msra.mxu1 %v8643_v41  ;;  %v8756_v39 = vcombine.high %v894_v63, %v902_v31  ;;  %v909_v41 = vld [vmem:[%s9743_s10 + $0x1430] sm:$0xff]  ;;  %v998_v29 = vld [vmem:[%s9743_s10 + $0x16f8] sm:$0xff] }
 0x3ff   : > { %7617 = vmatprep.subr.bf16.mxu0 %v8658_v44  ;;  %7781 = vmatprep.subr.bf16.mxu1 %v8660_v46  ;;  %v917_v44 = vld [vmem:[%s9743_s10 + $0x1470] sm:$0xff]  ;;  %v910_v46 = vld [vmem:[%s9743_s10 + $0x1438] sm:$0xff] }
 0x400   : > { %7647 = vmatprep.mubr.bf16.mxu0 %v9853_v34  ;;  %7811 = vmatprep.mubr.bf16.mxu1 %v9853_v34  ;;  %v8691_v34 = vcombine.low %v830_v62, %v838_v0  ;;  %v8770_v51 = vcombine.high %v909_v41, %v917_v44  ;;  %v8769_v61 = vcombine.low %v909_v41, %v917_v44  ;;  %v1014_v41 = vld [vmem:[%s9743_s10 + $0x1778] sm:$0xff] }
 0x401   : > { %v8771_v62 = vcombine.low %v910_v46, %v918_v48 }
 0x402   : > { %7618 = vmatpush1.bf16.msra.mxu0 %v8657_v55  ;;  %7782 = vmatpush1.bf16.msra.mxu1 %v8659_v57  ;;  %v8772_v55 = vcombine.high %v910_v46, %v918_v48  ;;  %v925_v57 = vld [vmem:[%s9743_s10 + $0x14b0] sm:$0xff] }
 0x403   : > { %7619 = vmatprep.subr.bf16.mxu0 %v8674_v9  ;;  %7783 = vmatprep.subr.bf16.mxu1 %v8676_v58  ;;  %v933_v9 = vld [vmem:[%s9743_s10 + $0x14f0] sm:$0xff]  ;;  %v926_v58 = vld [vmem:[%s9743_s10 + $0x14b8] sm:$0xff] }
 0x404   : > { %v8786_v0 = vcombine.high %v925_v57, %v933_v9  ;;  %v8785_v6 = vcombine.low %v925_v57, %v933_v9  ;;  %v8787_v7 = vcombine.low %v926_v58, %v934_v60  ;;  %v1030_v57 = vld [vmem:[%s9743_s10 + $0x17f8] sm:$0xff] }
 0x406   : > { %7620 = vmatpush1.bf16.msra.mxu0 %v8673_v40  ;;  %7784 = vmatpush1.bf16.msra.mxu1 %v8675_v1  ;;  %v8788_v40 = vcombine.high %v926_v58, %v934_v60  ;;  %v941_v1 = vld [vmem:[%s9743_s10 + $0x1530] sm:$0xff] }
 0x407   : > { %7621 = vmatprep.subr.bf16.mxu0 %v8690_v3  ;;  %7785 = vmatprep.subr.bf16.mxu1 %v8692_v4  ;;  %v949_v3 = vld [vmem:[%s9743_s10 + $0x1570] sm:$0xff]  ;;  %v942_v4 = vld [vmem:[%s9743_s10 + $0x1538] sm:$0xff] }
 0x408   : > { %v8802_v8 = vcombine.high %v941_v1, %v949_v3  ;;  %v8801_v15 = vcombine.low %v941_v1, %v949_v3  ;;  %v8803_v16 = vcombine.low %v942_v4, %v950_v5  ;;  %v1046_v1 = vld [vmem:[%s9743_s10 + $0x1878] sm:$0xff] }
 0x40a   : > { %7622 = vmatpush1.bf16.msra.mxu0 %v8689_v10  ;;  %7786 = vmatpush1.bf16.msra.mxu1 %v8691_v34  ;;  %v8804_v10 = vcombine.high %v942_v4, %v950_v5  ;;  %v957_v34 = vld [vmem:[%s9743_s10 + $0x15b0] sm:$0xff] }
 0x40b   : > { %7623 = vmatprep.subr.bf16.mxu0 %v8706_v11  ;;  %7787 = vmatprep.subr.bf16.mxu1 %v8708_v13  ;;  %v965_v11 = vld [vmem:[%s9743_s10 + $0x15f0] sm:$0xff]  ;;  %v958_v13 = vld [vmem:[%s9743_s10 + $0x15b8] sm:$0xff] }
 0x40c   : > { %v8818_v17 = vcombine.high %v957_v34, %v965_v11  ;;  %v8817_v25 = vcombine.low %v957_v34, %v965_v11  ;;  %v8819_v23 = vcombine.low %v958_v13, %v966_v14  ;;  %v1062_v34 = vld [vmem:[%s9743_s10 + $0x18f8] sm:$0xff] }
 0x40e   : > { %7624 = vmatpush1.bf16.msra.mxu0 %v8705_v18  ;;  %7788 = vmatpush1.bf16.msra.mxu1 %v8707_v19  ;;  %v8820_v18 = vcombine.high %v958_v13, %v966_v14  ;;  %v973_v19 = vld [vmem:[%s9743_s10 + $0x1630] sm:$0xff] }
 0x40f   : > { %7625 = vmatprep.subr.bf16.mxu0 %v8722_v20  ;;  %7789 = vmatprep.subr.bf16.mxu1 %v8724_v21  ;;  %v981_v20 = vld [vmem:[%s9743_s10 + $0x1670] sm:$0xff]  ;;  %v974_v21 = vld [vmem:[%s9743_s10 + $0x1638] sm:$0xff] }
 0x410   : > { %v8834_v24 = vcombine.high %v973_v19, %v981_v20  ;;  %v8833_v30 = vcombine.low %v973_v19, %v981_v20  ;;  %v8835_v63 = vcombine.low %v974_v21, %v982_v22  ;;  %v1078_v19 = vld [vmem:[%s9743_s10 + $0x1978] sm:$0xff] }
 0x412   : > { %7626 = vmatpush1.bf16.msra.mxu0 %v8721_v26  ;;  %7790 = vmatpush1.bf16.msra.mxu1 %v8723_v27  ;;  %v8836_v26 = vcombine.high %v974_v21, %v982_v22  ;;  %v989_v27 = vld [vmem:[%s9743_s10 + $0x16b0] sm:$0xff] }
 0x413   : > { %7627 = vmatprep.subr.bf16.mxu0 %v8738_v59  ;;  %7791 = vmatprep.subr.bf16.mxu1 %v8740_v28  ;;  %v997_v59 = vld [vmem:[%s9743_s10 + $0x16f0] sm:$0xff]  ;;  %v990_v28 = vld [vmem:[%s9743_s10 + $0x16b8] sm:$0xff] }
 0x414   : > { %v8850_v31 = vcombine.high %v989_v27, %v997_v59  ;;  %v8849_v44 = vcombine.low %v989_v27, %v997_v59  ;;  %v8851_v46 = vcombine.low %v990_v28, %v998_v29  ;;  %v1094_v27 = vld [vmem:[%s9743_s10 + $0x19f8] sm:$0xff] }
 0x416   : > { %7628 = vmatpush1.bf16.msra.mxu0 %v8737_v32  ;;  %7792 = vmatpush1.bf16.msra.mxu1 %v8739_v33  ;;  %v8852_v32 = vcombine.high %v990_v28, %v998_v29  ;;  %v1005_v33 = vld [vmem:[%s9743_s10 + $0x1730] sm:$0xff] }
 0x417   : > { %7629 = vmatprep.subr.bf16.mxu0 %v8754_v37  ;;  %7793 = vmatprep.subr.bf16.mxu1 %v8756_v39  ;;  %v1013_v37 = vld [vmem:[%s9743_s10 + $0x1770] sm:$0xff]  ;;  %v1006_v39 = vld [vmem:[%s9743_s10 + $0x1738] sm:$0xff] }
 0x418   : > { %v8866_v48 = vcombine.high %v1005_v33, %v1013_v37  ;;  %v8865_v9 = vcombine.low %v1005_v33, %v1013_v37  ;;  %v8867_v58 = vcombine.low %v1006_v39, %v1014_v41 }
 0x41a   : > { %7630 = vmatpush1.bf16.msra.mxu0 %v8753_v49  ;;  %7794 = vmatpush1.bf16.msra.mxu1 %v8755_v50  ;;  %v8868_v49 = vcombine.high %v1006_v39, %v1014_v41  ;;  %v1021_v50 = vld [vmem:[%s9743_s10 + $0x17b0] sm:$0xff] }
 0x41b   : > { %7631 = vmatprep.subr.bf16.mxu0 %v8770_v51  ;;  %7795 = vmatprep.subr.bf16.mxu1 %v8772_v55  ;;  %v1029_v51 = vld [vmem:[%s9743_s10 + $0x17f0] sm:$0xff]  ;;  %v1022_v55 = vld [vmem:[%s9743_s10 + $0x17b8] sm:$0xff] }
 0x41c   : > { %v8882_v60 = vcombine.high %v1021_v50, %v1029_v51  ;;  %v8881_v3 = vcombine.low %v1021_v50, %v1029_v51  ;;  %v8883_v4 = vcombine.low %v1022_v55, %v1030_v57  ;;  %v1117_v41 = vld [vmem:[%s9743_s10 + $0x1ab0] sm:$0xff]  ;;  %v10882_v50 = vld [vmem:[%s10298_s7 + $0x8] sm:$0xff] }
 0x41e   : > { %7632 = vmatpush1.bf16.msra.mxu0 %v8769_v61  ;;  %7796 = vmatpush1.bf16.msra.mxu1 %v8771_v62  ;;  %v8884_v61 = vcombine.high %v1022_v55, %v1030_v57  ;;  %v1037_v62 = vld [vmem:[%s9743_s10 + $0x1830] sm:$0xff] }
 0x41f   : > { %7633 = vmatprep.subr.bf16.mxu0 %v8786_v0  ;;  %7797 = vmatprep.subr.bf16.mxu1 %v8788_v40  ;;  %v1045_v0 = vld [vmem:[%s9743_s10 + $0x1870] sm:$0xff]  ;;  %v1038_v40 = vld [vmem:[%s9743_s10 + $0x1838] sm:$0xff] }
 0x420   : > { %v8898_v5 = vcombine.high %v1037_v62, %v1045_v0  ;;  %v8897_v11 = vcombine.low %v1037_v62, %v1045_v0  ;;  %v8899_v13 = vcombine.low %v1038_v40, %v1046_v1  ;;  %v1142_v62 = vld [vmem:[%s9743_s10 + $0x1b78] sm:$0xff]  ;;  %v1334_v0 = vrot.slane %v10882_v50, %v1301_v52  ;;  %v1157_v52 = vld [vmem:[%s9743_s10 + $0x1bf0] sm:$0xff] }
 0x422   : > { %7634 = vmatpush1.bf16.msra.mxu0 %v8785_v6  ;;  %7798 = vmatpush1.bf16.msra.mxu1 %v8787_v7  ;;  %v8900_v6 = vcombine.high %v1038_v40, %v1046_v1  ;;  %v1053_v7 = vld [vmem:[%s9743_s10 + $0x18b0] sm:$0xff]  ;;  %v1330_v40 = vrot.slane %v10882_v50, %v1297_v54  ;;  %v1158_v54 = vld [vmem:[%s9743_s10 + $0x1bf8] sm:$0xff] }
 0x423   : > { %7635 = vmatprep.subr.bf16.mxu0 %v8802_v8  ;;  %7799 = vmatprep.subr.bf16.mxu1 %v8804_v10  ;;  %v1061_v8 = vld [vmem:[%s9743_s10 + $0x18f0] sm:$0xff]  ;;  %v1054_v10 = vld [vmem:[%s9743_s10 + $0x18b8] sm:$0xff] }
 0x424   : > { %v8914_v14 = vcombine.high %v1053_v7, %v1061_v8  ;;  %v8913_v20 = vcombine.low %v1053_v7, %v1061_v8  ;;  %v8915_v21 = vcombine.low %v1054_v10, %v1062_v34  ;;  %v1149_v7 = vld [vmem:[%s9743_s10 + $0x1bb0] sm:$0xff] }
 0x426   : > { %7636 = vmatpush1.bf16.msra.mxu0 %v8801_v15  ;;  %7800 = vmatpush1.bf16.msra.mxu1 %v8803_v16  ;;  %v8916_v15 = vcombine.high %v1054_v10, %v1062_v34  ;;  %v1069_v16 = vld [vmem:[%s9743_s10 + $0x1930] sm:$0xff] }
 0x427   : > { %7637 = vmatprep.subr.bf16.mxu0 %v8818_v17  ;;  %7801 = vmatprep.subr.bf16.mxu1 %v8820_v18  ;;  %v1077_v17 = vld [vmem:[%s9743_s10 + $0x1970] sm:$0xff]  ;;  %v1070_v18 = vld [vmem:[%s9743_s10 + $0x1938] sm:$0xff] }
 0x428   : > { %v8930_v22 = vcombine.high %v1069_v16, %v1077_v17  ;;  %v8931_v59 = vcombine.low %v1070_v18, %v1078_v19 }
 0x42a   : > { %7638 = vmatpush1.bf16.msra.mxu0 %v8817_v25  ;;  %7802 = vmatpush1.bf16.msra.mxu1 %v8819_v23  ;;  %v8932_v25 = vcombine.high %v1070_v18, %v1078_v19  ;;  %v1085_v23 = vld [vmem:[%s9743_s10 + $0x19b0] sm:$0xff] }
 0x42b   : > { %7639 = vmatprep.subr.bf16.mxu0 %v8834_v24  ;;  %7803 = vmatprep.subr.bf16.mxu1 %v8836_v26  ;;  %v1093_v24 = vld [vmem:[%s9743_s10 + $0x19f0] sm:$0xff]  ;;  %v1086_v26 = vld [vmem:[%s9743_s10 + $0x19b8] sm:$0xff] }
 0x42c   : > { %v8946_v28 = vcombine.high %v1085_v23, %v1093_v24  ;;  %v8948_v29 = vcombine.high %v1086_v26, %v1094_v27  ;;  %v8945_v33 = vcombine.low %v1085_v23, %v1093_v24 }
 0x42e   : > { %7640 = vmatpush1.bf16.msra.mxu0 %v8833_v30  ;;  %7804 = vmatpush1.bf16.msra.mxu1 %v8835_v63  ;;  %v1101_v30 = vld [vmem:[%s9743_s10 + $0x1a30] sm:$0xff] }
 0x42f   : > { %7641 = vmatprep.subr.bf16.mxu0 %v8850_v31  ;;  %7805 = vmatprep.subr.bf16.mxu1 %v8852_v32  ;;  %v1109_v63 = vld [vmem:[%s9743_s10 + $0x1a70] sm:$0xff]  ;;  %v1102_v31 = vld [vmem:[%s9743_s10 + $0x1a38] sm:$0xff] }
 0x430   : > { %v1110_v32 = vld [vmem:[%s9743_s10 + $0x1a78] sm:$0xff]  ;;  %v8962_v37 = vcombine.high %v1101_v30, %v1109_v63 }
 0x431   : > { %v8964_v39 = vcombine.high %v1102_v31, %v1110_v32  ;;  %v8963_v51 = vcombine.low %v1102_v31, %v1110_v32 }
 0x432   : > { %7642 = vmatpush1.bf16.msra.mxu0 %v8849_v44  ;;  %7806 = vmatpush1.bf16.msra.mxu1 %v8851_v46  ;;  %v1125_v44 = vld [vmem:[%s9743_s10 + $0x1af0] sm:$0xff]  ;;  %v1118_v46 = vld [vmem:[%s9743_s10 + $0x1ab8] sm:$0xff] }
 0x433   : > { %7643 = vmatprep.subr.bf16.mxu0 %v8866_v48  ;;  %7807 = vmatprep.subr.bf16.mxu1 %v8868_v49  ;;  %v1126_v48 = vld [vmem:[%s9743_s10 + $0x1af8] sm:$0xff]  ;;  %v8961_v49 = vcombine.low %v1101_v30, %v1109_v63  ;;  %v8978_v55 = vcombine.high %v1117_v41, %v1125_v44  ;;  %v8977_v1 = vcombine.low %v1117_v41, %v1125_v44  ;;  %v1189_v41 = vld [vmem:[%s9743_s10 + $0x1cf0] sm:$0xff] }
 0x434   : > { %v8980_v57 = vcombine.high %v1118_v46, %v1126_v48  ;;  %v9009_v63 = vcombine.low %v1149_v7, %v1157_v52 }
 0x436   : > { %7644 = vmatpush1.bf16.msra.mxu0 %v8865_v9  ;;  %7808 = vmatpush1.bf16.msra.mxu1 %v8867_v58  ;;  %v1133_v9 = vld [vmem:[%s9743_s10 + $0x1b30] sm:$0xff] }
 0x437   : > { %7645 = vmatprep.subr.bf16.mxu0 %v8882_v60  ;;  %7809 = vmatprep.subr.bf16.mxu1 %v8884_v61  ;;  %v1141_v58 = vld [vmem:[%s9743_s10 + $0x1b70] sm:$0xff]  ;;  %v1326_v60 = vrot.slane %v10882_v50, %v1293_v47  ;;  %v1134_v61 = vld [vmem:[%s9743_s10 + $0x1b38] sm:$0xff]  ;;  %v1338_v47 = vrot.slane %v10882_v50, %v1305_v56 }
 0x438   : > { %v8993_v56 = vcombine.low %v1133_v9, %v1141_v58 }
 0x43a   : > { %7646 = vmatpush1.bf16.msra.mxu0 %v8881_v3  ;;  %7810 = vmatpush1.bf16.msra.mxu1 %v8883_v4  ;;  %v8979_v3 = vcombine.low %v1118_v46, %v1126_v48  ;;  %v8994_v4 = vcombine.high %v1133_v9, %v1141_v58  ;;  %v1182_v46 = vld [vmem:[%s9743_s10 + $0x1cb8] sm:$0xff]  ;;  %v1197_v58 = vld [vmem:[%s9743_s10 + $0x1d30] sm:$0xff] }
 0x43b   : > { %7656 = vmatprep.subr.bf16.mxu0 %v8898_v5  ;;  %7820 = vmatprep.subr.bf16.mxu1 %v8900_v6  ;;  %v8996_v6 = vcombine.high %v1134_v61, %v1142_v62  ;;  %v1190_v48 = vld [vmem:[%s9743_s10 + $0x1cf8] sm:$0xff] }
 0x43c   : > { %v9044_v9 = vcombine.high %v1182_v46, %v1190_v48 }
 0x43d   : > { %7648 = vmatmul.mubr.bf16.vlgmr.msra.gmra.mrb[12].mxu0 %v9856_v35  ;;  %7812 = vmatmul.mubr.bf16.vlgmr.msra.gmra.mrb[12].mxu1 %v9856_v35  ;;  %v8929_v35 = vcombine.low %v1069_v16, %v1077_v17 }
 0x43e   : > { %7657 = vmatpush1.bf16.msra.mxu0 %v8897_v11  ;;  %7821 = vmatpush1.bf16.msra.mxu1 %v8899_v13  ;;  %v1150_v11 = vld [vmem:[%s9743_s10 + $0x1bb8] sm:$0xff] }
 0x43f   : > { %7658 = vmatprep.subr.bf16.mxu0 %v8914_v14  ;;  %7822 = vmatprep.subr.bf16.mxu1 %v8916_v15  ;;  %v9011_v32 = vcombine.low %v1150_v11, %v1158_v54 }
 0x440   : > { %7688 = vmatprep.mubr.bf16.mxu0 %v10000_v2  ;;  %7852 = vmatprep.mubr.bf16.mxu1 %v10000_v2  ;;  %v8947_v2 = vcombine.low %v1086_v26, %v1094_v27  ;;  %v9012_v26 = vcombine.high %v1150_v11, %v1158_v54  ;;  %v1165_v27 = vld [vmem:[%s9743_s10 + $0x1c30] sm:$0xff]  ;;  %v1230_v54 = vld [vmem:[%s9743_s10 + $0x1e38] sm:$0xff] }
 0x441   : > { %v1237_v11 = vld [vmem:[%s9743_s10 + $0x1e70] sm:$0xff] }
 0x442   : > { %7659 = vmatpush1.bf16.msra.mxu0 %v8913_v20  ;;  %7823 = vmatpush1.bf16.msra.mxu1 %v8915_v21  ;;  %v8995_v21 = vcombine.low %v1134_v61, %v1142_v62  ;;  %v1198_v61 = vld [vmem:[%s9743_s10 + $0x1d38] sm:$0xff] }
 0x443   : > { %7660 = vmatprep.subr.bf16.mxu0 %v8930_v22  ;;  %7824 = vmatprep.subr.bf16.mxu1 %v8932_v25  ;;  %v9010_v22 = vcombine.high %v1149_v7, %v1157_v52  ;;  %v1206_v62 = vld [vmem:[%s9743_s10 + $0x1d78] sm:$0xff] }
 0x444   : > { %v9059_v52 = vcombine.low %v1198_v61, %v1206_v62 }
 0x446   : > { %7661 = vmatpush1.bf16.msra.mxu0 %v8929_v35  ;;  %7825 = vmatpush1.bf16.msra.mxu1 %v8931_v59  ;;  %v1173_v35 = vld [vmem:[%s9743_s10 + $0x1c70] sm:$0xff] }
 0x447   : > { %7662 = vmatprep.subr.bf16.mxu0 %v8946_v28  ;;  %7826 = vmatprep.subr.bf16.mxu1 %v8948_v29  ;;  %v1166_v28 = vld [vmem:[%s9743_s10 + $0x1c38] sm:$0xff] }
 0x448   : > { %v1174_v29 = vld [vmem:[%s9743_s10 + $0x1c78] sm:$0xff] }
 0x44a   : > { %7663 = vmatpush1.bf16.msra.mxu0 %v8945_v33  ;;  %7827 = vmatpush1.bf16.msra.mxu1 %v8947_v2  ;;  %v9026_v33 = vcombine.high %v1165_v27, %v1173_v35 }
 0x44b   : > { %7664 = vmatprep.subr.bf16.mxu0 %v8962_v37  ;;  %7828 = vmatprep.subr.bf16.mxu1 %v8964_v39  ;;  %v9028_v37 = vcombine.high %v1166_v28, %v1174_v29  ;;  %v1181_v39 = vld [vmem:[%s9743_s10 + $0x1cb0] sm:$0xff] }
 0x44e   : > { %7665 = vmatpush1.bf16.msra.mxu0 %v8961_v49  ;;  %7829 = vmatpush1.bf16.msra.mxu1 %v8963_v51  ;;  %v9025_v49 = vcombine.low %v1165_v27, %v1173_v35  ;;  %v1262_v27 = vld [vmem:[%s9743_s10 + $0x1f38] sm:$0xff] }
 0x44f   : > { %7666 = vmatprep.subr.bf16.mxu0 %v8978_v55  ;;  %7830 = vmatprep.subr.bf16.mxu1 %v8980_v57  ;;  %v9027_v55 = vcombine.low %v1166_v28, %v1174_v29  ;;  %v9042_v57 = vcombine.high %v1181_v39, %v1189_v41  ;;  %v1270_v35 = vld [vmem:[%s9743_s10 + $0x1f78] sm:$0xff] }
 0x450   : > { %v7362_v5 = vpop.f32.mrb[8].mxu0  ;;  %v7526_v10 = vpop.f32.mrb[8].mxu1 }
 0x451   : > { %v9157_v8 = vadd.f32 %v7362_v5, %v1326_v60  ;;  %v7364_v34 = vpop.f32.mrb[9].mxu0  ;;  %v9159_v13 = vadd.f32 %v7526_v10, %v1334_v0  ;;  %v7528_v15 = vpop.f32.mrb[9].mxu1  ;;  %v1205_v60 = vld [vmem:[%s9743_s10 + $0x1d70] sm:$0xff]  ;;  %v9041_v0 = vcombine.low %v1181_v39, %v1189_v41  ;;  %v1214_v5 = vld [vmem:[%s9743_s10 + $0x1db8] sm:$0xff] }
 0x452   : > { %v9158_v14 = vadd.f32 %v7364_v34, %v1330_v40  ;;  %v7366_v16 = vpop.f32.mrb[10].mxu0  ;;  %7667 = vmatpush1.bf16.msra.mxu0 %v8977_v1  ;;  %v9160_v18 = vadd.f32 %v7528_v15, %v1338_v47  ;;  %v7530_v19 = vpop.f32.mrb[10].mxu1  ;;  %7831 = vmatpush1.bf16.msra.mxu1 %v8979_v3  ;;  %v9043_v40 = vcombine.low %v1182_v46, %v1190_v48  ;;  %v1213_v3 = vld [vmem:[%s9743_s10 + $0x1db0] sm:$0xff] }
 0x453   : > { %v7869_v17 = vmax.f32 %v9157_v8, 0.0  ;;  %v7367_v20 = vpop.f32.mrb[11].mxu0  ;;  %7668 = vmatprep.subr.bf16.mxu0 %v8994_v4  ;;  %v7871_v25 = vmax.f32 %v9159_v13, 0.0  ;;  %v7531_v24 = vpop.f32.mrb[11].mxu1  ;;  %7832 = vmatprep.subr.bf16.mxu1 %v8996_v6  ;;  %v9058_v1 = vcombine.high %v1197_v58, %v1205_v60  ;;  %v9060_v47 = vcombine.high %v1198_v61, %v1206_v62  ;;  %v1221_v4 = vld [vmem:[%s9743_s10 + $0x1df0] sm:$0xff]  ;;  %v1222_v6 = vld [vmem:[%s9743_s10 + $0x1df8] sm:$0xff] }
 0x454   : > { %v7870_v23 = vmax.f32 %v9158_v14, 0.0  ;;  %v7872_v59 = vmax.f32 %v9160_v18, 0.0  ;;  %v9057_v7 = vcombine.low %v1197_v58, %v1205_v60  ;;  %v9074_v8 = vcombine.high %v1213_v3, %v1221_v4  ;;  %v1229_v34 = vld [vmem:[%s9743_s10 + $0x1e30] sm:$0xff]  ;;  %v1238_v13 = vld [vmem:[%s9743_s10 + $0x1e78] sm:$0xff] }
 0x455   : > { %v9076_v10 = vcombine.high %v1214_v5, %v1222_v6  ;;  %v9073_v14 = vcombine.low %v1213_v3, %v1221_v4  ;;  %v9075_v15 = vcombine.low %v1214_v5, %v1222_v6  ;;  %v9090_v16 = vcombine.high %v1229_v34, %v1237_v11  ;;  %v1253_v18 = vld [vmem:[%s9743_s10 + $0x1ef0] sm:$0xff]  ;;  %v1246_v19 = vld [vmem:[%s9743_s10 + $0x1eb8] sm:$0xff] }
 0x456   : > { %v7927_v30 = vcombine.low %v7869_v17, %v7870_v23  ;;  %7669 = vmatpush1.bf16.msra.mxu0 %v8993_v56  ;;  %v7928_v31 = vcombine.low %v7871_v25, %v7872_v59  ;;  %7833 = vmatpush1.bf16.msra.mxu1 %v8995_v21  ;;  %v9092_v56 = vcombine.high %v1230_v54, %v1238_v13  ;;  %v1245_v17 = vld [vmem:[%s9743_s10 + $0x1eb0] sm:$0xff]  ;;  %v1254_v20 = vld [vmem:[%s9743_s10 + $0x1ef8] sm:$0xff] }
 0x457   : > { %7670 = vmatprep.subr.bf16.mxu0 %v9010_v22  ;;  %7834 = vmatprep.subr.bf16.mxu1 %v9012_v26  ;;  %v9089_v21 = vcombine.low %v1229_v34, %v1237_v11  ;;  %v9091_v22 = vcombine.low %v1230_v54, %v1238_v13  ;;  %v9106_v25 = vcombine.high %v1245_v17, %v1253_v18  ;;  %v1261_v24 = vld [vmem:[%s9743_s10 + $0x1f30] sm:$0xff] }
 0x458   : > { %v7935_v2 = vrot.slane %v7927_v30, %v10321_v38  ;;  %v7942_v44 = vrot.slane %v7928_v31, %v10321_v38  ;;  %v9108_v23 = vcombine.high %v1246_v19, %v1254_v20  ;;  %v1269_v26 = vld [vmem:[%s9743_s10 + $0x1f70] sm:$0xff]  ;;  %v9105_v59 = vcombine.low %v1245_v17, %v1253_v18 }
 0x459   : > { %v9107_v28 = vcombine.low %v1246_v19, %v1254_v20  ;;  %v9122_v29 = vcombine.high %v1261_v24, %v1269_v26  ;;  %v9124_v30 = vcombine.high %v1262_v27, %v1270_v35  ;;  %v1285_v31 = vld [vmem:[%s9743_s10 + $0x1ff0] sm:$0xff]  ;;  %v1342_v48 = vrot.slane %v10882_v50, %v1309_v36 }
 0x45a   : > { %7671 = vmatpush1.bf16.msra.mxu0 %v9009_v63  ;;  %v7943_v51 = vcombine.low %v7935_v2, %v7942_v44  ;;  %7835 = vmatpush1.bf16.msra.mxu1 %v9011_v32  ;;  %v1277_v63 = vld [vmem:[%s9743_s10 + $0x1fb0] sm:$0xff]  ;;  %v1278_v32 = vld [vmem:[%s9743_s10 + $0x1fb8] sm:$0xff]  ;;  %v9121_v2 = vcombine.low %v1261_v24, %v1269_v26 }
 0x45b   : > { %7672 = vmatprep.subr.bf16.mxu0 %v9026_v33  ;;  %7836 = vmatprep.subr.bf16.mxu1 %v9028_v37  ;;  %v1286_v33 = vld [vmem:[%s9743_s10 + $0x1ff8] sm:$0xff]  ;;  %v9123_v37 = vcombine.low %v1262_v27, %v1270_v35  ;;  %v9138_v39 = vcombine.high %v1277_v63, %v1285_v31  ;;  %v9137_v44 = vcombine.low %v1277_v63, %v1285_v31 }
 0x45c   : > { %7967 = vst [vmem:[%s10336_s11 + $0x10] sm:$0xff] %v7943_v51  ;;  %v9140_v41 = vcombine.high %v1278_v32, %v1286_v33  ;;  %v9139_v46 = vcombine.low %v1278_v32, %v1286_v33  ;;  %v1346_v51 = vrot.slane %v10882_v50, %v1313_v42 }
 0x45e   : > { %7673 = vmatpush1.bf16.msra.mxu0 %v9025_v49  ;;  %7837 = vmatpush1.bf16.msra.mxu1 %v9027_v55  ;;  %v1350_v49 = vrot.slane %v10882_v50, %v1317_v53  ;;  %v1354_v55 = vrot.slane %v10882_v50, %v1321_v45 }
 0x45f   : > { %7674 = vmatprep.subr.bf16.mxu0 %v9042_v57  ;;  %7838 = vmatprep.subr.bf16.mxu1 %v9044_v9 }
 0x462   : > { %7675 = vmatpush1.bf16.msra.mxu0 %v9041_v0  ;;  %7839 = vmatpush1.bf16.msra.mxu1 %v9043_v40 }
 0x463   : > { %7676 = vmatprep.subr.bf16.mxu0 %v9058_v1  ;;  %7840 = vmatprep.subr.bf16.mxu1 %v9060_v47 }
 0x466   : > { %7677 = vmatpush1.bf16.msra.mxu0 %v9057_v7  ;;  %7841 = vmatpush1.bf16.msra.mxu1 %v9059_v52 }
 0x467   : > { %7678 = vmatprep.subr.bf16.mxu0 %v9074_v8  ;;  %7842 = vmatprep.subr.bf16.mxu1 %v9076_v10 }
 0x46a   : > { %7679 = vmatpush1.bf16.msra.mxu0 %v9073_v14  ;;  %7843 = vmatpush1.bf16.msra.mxu1 %v9075_v15 }
 0x46b   : > { %7680 = vmatprep.subr.bf16.mxu0 %v9090_v16  ;;  %7844 = vmatprep.subr.bf16.mxu1 %v9092_v56 }
 0x46e   : > { %7681 = vmatpush1.bf16.msra.mxu0 %v9089_v21  ;;  %7845 = vmatpush1.bf16.msra.mxu1 %v9091_v22 }
 0x46f   : > { %7682 = vmatprep.subr.bf16.mxu0 %v9106_v25  ;;  %7846 = vmatprep.subr.bf16.mxu1 %v9108_v23 }
 0x472   : > { %7683 = vmatpush1.bf16.msra.mxu0 %v9105_v59  ;;  %7847 = vmatpush1.bf16.msra.mxu1 %v9107_v28 }
 0x473   : > { %7684 = vmatprep.subr.bf16.mxu0 %v9122_v29  ;;  %7848 = vmatprep.subr.bf16.mxu1 %v9124_v30 }
 0x476   : > { %7685 = vmatpush1.bf16.msra.mxu0 %v9121_v2  ;;  %7849 = vmatpush1.bf16.msra.mxu1 %v9123_v37 }
 0x477   : > { %7686 = vmatprep.subr.bf16.mxu0 %v9138_v39  ;;  %7850 = vmatprep.subr.bf16.mxu1 %v9140_v41 }
 0x47a   : > { %7687 = vmatpush1.bf16.msra.mxu0 %v9137_v44  ;;  %7851 = vmatpush1.bf16.msra.mxu1 %v9139_v46 }
 0x47d   : > { %7689 = vmatmul.mubr.bf16.vlgmr.msra.gmra.mrb[12].mxu0 %v10068_v12  ;;  %7853 = vmatmul.mubr.bf16.vlgmr.msra.gmra.mrb[12].mxu1 %v10068_v12 }
 0x550   : > { %v7690_v57 = vpop.f32.mrb[12].mxu0  ;;  %v7854_v58 = vpop.f32.mrb[12].mxu1 }
 0x551   : > { %v9161_v9 = vadd.f32 %v7690_v57, %v1342_v48  ;;  %v7692_v12 = vpop.f32.mrb[13].mxu0  ;;  %v9163_v60 = vadd.f32 %v7854_v58, %v1350_v49  ;;  %v7856_v61 = vpop.f32.mrb[13].mxu1 }
 0x552   : > { %v9162_v36 = vadd.f32 %v7692_v12, %v1346_v51  ;;  %v7694_v62 = vpop.f32.mrb[14].mxu0  ;;  %v9164_v53 = vadd.f32 %v7856_v61, %v1354_v55  ;;  %v7858_v40 = vpop.f32.mrb[14].mxu1 }
 0x553   : > { %v7873_v0 = vmax.f32 %v9161_v9, 0.0  ;;  %v7695_v42 = vpop.f32.mrb[15].mxu0  ;;  %v7875_v1 = vmax.f32 %v9163_v60, 0.0  ;;  %v7859_v45 = vpop.f32.mrb[15].mxu1 }
 0x554   : > { %v7874_v43 = vmax.f32 %v9162_v36, 0.0  ;;  %v7876_v50 = vmax.f32 %v9164_v53, 0.0 }
 0x556   : > { %v7944_v47 = vcombine.low %v7873_v0, %v7874_v43  ;;  %v7945_v3 = vcombine.low %v7875_v1, %v7876_v50 }
 0x558   : > { %v7952_v4 = vrot.slane %v7944_v47, %v10321_v38  ;;  %v7959_v5 = vrot.slane %v7945_v3, %v10321_v38 }
 0x55a   : > { %v7960_v6 = vcombine.low %v7952_v4, %v7959_v5 }
 0x55c   : > { %7968 = vst [vmem:[%s10336_s11 + $0x18] sm:$0xff] %v7960_v6 }
 0x55d   : > { %9447 = shalt.err (!%p9444_p2)
}
 0x55e   : > { %s9448_s23 = scalar_lea.hbm %s10960_s8, 512  ;;  %s9452_s6 = scalar_lea.hbm %s11013_s3, 1024 }
 0x55f   : > { %p9449_p6 = scmp.ne.s32.totalorder %s10960_s8, %s9448_s23  ;;  %p9453_p8 = scmp.lt.u32.totalorder %s10960_s8, %s11013_s3 }
 0x560   : > { %p9454_p5 = scmp.lt.u32.totalorder %s9452_s6, %s9448_s23  ;;  %p9456_p10 = scmp.lt.u32.totalorder %s9448_s23, %s10960_s8 }
 0x561   : > { %p9450_p12 = pnand %p9449_p6, %p11032_p13 }
 0x562   : > { %p9455_p11 = por %p9454_p5, %p9453_p8 }
 0x563   : > { %p9451_p9 = pneg %p9450_p12 }
 0x564   : > { %p9457_p0 = por %p9456_p10, %p9455_p11 }
 0x566   : > { %p9458_p7 = pnand %p9457_p0, %p9451_p9 }
 0x568   : > { %9461 = shalt.err (!%p9458_p7)
}
 0x569   : > { %9269 = dma.vmem_to_hbm [thread:$0]  (%p11032_p13), %s10962_s19, 512, %s10960_s8, %s7970_s22  }
 0x56a PF: > { %s7998_s7 = sand.u32 1, %s9500_s12   ;;  %p11033_p4 = scmp.ne.s32.totalorder %s11024_s4, 0 }
 0x56b   : > { %p11034_p1 = scmp.ge.s32.totalorder %s9520_s17, 2  ;;  %s7999_s9 = scalar_lea.sflag [#allocation4], %s7998_s7 }
 0x56d   : > { %p9283_p3 = pnand %p11034_p1, %p11033_p4 }
 0x56f   : > { %9495 = dma.done.wait (!%p9283_p3), %s7999_s9, 512  }
 0x570   : > { %9497 = vsyncadd (!%p9283_p3), %s7999_s9, 4294966784  ;;  %s20_s17 = sadd.s32 1, %s9520_s17   ;;  %s11035_s12 = smov %s9504_s13 }
 0x571   : > { %p17_p2 = scmp.ge.s32.totalorder %s20_s17, 4   ;;  %s11036_s13 = smov %s9508_s14 }
 0x572   : > { %s11037_s14 = smov %s9599_s24  ;;  %s11038_s15 = smov %s9516_s16 }
 0x573   : > { %s11039_s16 = smov %s11041_s18  ;;  %19 = sbr.rel (!%p17_p2) target bundleno = 9 (0x9), region = 94 }
 0x57a   :  { %8004 = vsyncpa [#allocation3], 1 }
 0x57b   :  { %8006 = vsyncpa [#allocation3 + $0x1], 1 }
 0x57c   :  { %8007 = vsyncpa [#allocation6], 1 }
 0x57d   :  { %8009 = vsyncpa [#allocation6 + $0x1], 1 }
 0x57e   :  { %8010 = vsyncpa [#allocation4], 1 }
 0x57f   :  { %8012 = vsyncpa [#allocation4 + $0x1], 1 }

</bundles_post_ra>
